<compile_context>
chip_gen: v5e
topology: v5e:2x2
jax: 0.10.0
libtpu: 0.0.40
codegen_flags: <defaults>
</compile_context>

<pallas_src>
import math

import numpy as np
import jax
import jax.numpy as jnp
from jax.experimental import pallas as pl
from jax.experimental.pallas import tpu as pltpu

# ----------------------------- config (small, deterministic) ----------------
SEQ_LEN = 16
LABEL_LEN = 8
PRED_LEN = 8
ENC_IN = 3
DEC_IN = 3
C_OUT = 3
D_MODEL = 32
N_HEADS = 4          # NOTE: in eval-mode AutoCorrelation the head split cancels out (see kernel)
D_FF = 32
E_LAYERS = 1
D_LAYERS = 1
MOVING_AVG = 5       # odd kernel so output length == input length
FACTOR = 1
N_DECOMP = 2         # len(configs.decomposition_variables)
C_TOTAL = ENC_IN * N_DECOMP
BATCH = 2
TOP_K = max(1, int(FACTOR * math.log(SEQ_LEN)))   # == 2 for this config
# composition_function := sum over the decomposition-variable axis

# The decoder length implied by forecast() is 2*pred_len; the shared time-operator constants below
# assume it equals the encoder length (true for this config).
assert 2 * PRED_LEN == SEQ_LEN

# ----------------------------- constant time operators ----------------------


def _build_constants():
    L, k, P, d = SEQ_LEN, MOVING_AVG, PRED_LEN, D_MODEL
    pad = (k - 1) // 2

    # replicate-padded moving average as a band matrix: mm = AVG @ x (over the time axis)
    avg = np.zeros((L, L), np.float32)
    for t in range(L):
        for j in range(k):
            s = min(max(t - pad + j, 0), L - 1)
            avg[t, s] += 1.0 / k

    def shift(sh):                      # (M @ x)[t] = x[(t + sh) % L]  (circular shift)
        m = np.zeros((L, L), np.float32)
        for t in range(L):
            m[t, (t + sh) % L] = 1.0
        return m

    # decoder-init selector: rows [0,P) pick x[L-P+t]; rows [P,L) are zero
    sel = np.zeros((L, L), np.float32)
    for t in range(P):
        sel[t, L - P + t] = 1.0

    # lag masks (include the 1/d_model mean factor): LAGM[tau, s, u] = 1/d  iff  u == (s - tau) % L
    lagm = np.zeros((L, L, L), np.float32)
    for tau in range(L):
        for s in range(L):
            lagm[tau, s, (s - tau) % L] = 1.0 / d

    return dict(AVG=jnp.asarray(avg), RM1=jnp.asarray(shift(-1)), RP1=jnp.asarray(shift(+1)),
                SEL=jnp.asarray(sel), LAGM=jnp.asarray(lagm))


_CONSTS = _build_constants()

_ENC_REFS = 6    # wqkv, bqkv, wo, bo, wff1, wff2
_DEC_REFS = 13   # s_wqkv, s_bqkv, s_wo, s_bo, c_wq, c_bq, c_wkv, c_bkv, c_wo, c_bo, wff1, wff2, wtr


# ----------------------------- the fused kernel ------------------------------


def _autoformer_kernel(*refs):
    out_ref = refs[-1]
    it = iter(refs[:-1])
    x_ref = next(it)
    avg_ref, rm1_ref, rp1_ref, sel_ref, lagm_ref = (next(it) for _ in range(5))
    tok_enc_ref, tok_dec_ref = next(it), next(it)
    enc_layers = [tuple(next(it) for _ in range(_ENC_REFS)) for _ in range(E_LAYERS)]
    enc_g_ref, enc_b_ref = next(it), next(it)
    dec_layers = [tuple(next(it) for _ in range(_DEC_REFS)) for _ in range(D_LAYERS)]
    dec_g_ref, dec_b_ref, wproj_ref, bproj_ref = (next(it) for _ in range(4))

    f32 = jnp.float32
    x_in = x_ref[...][0]                       # [L, C_TOTAL]  (time first, channels last)
    L = x_in.shape[0]
    AVG, RM1, RP1, SEL = avg_ref[...], rm1_ref[...], rp1_ref[...], sel_ref[...]
    LAGM = lagm_ref[...]                       # [L, L, L]

    # ---- small 2-D helpers (plain MXU matmuls + VPU elementwise) ------------------------------
    def mm(a, w):                              # [L,K] @ [K,N] -> [L,N]
        return jnp.dot(a, w, preferred_element_type=f32)

    def decomp(a):                             # series_decomp over time (residual, moving_mean)
        mmean = mm(AVG, a)
        return a - mmean, mmean

    def circ_conv3(a, taps):                   # Conv1d(k=3, circular, no bias); taps: [3, Cin, Cout]
        return mm(mm(RM1, a), taps[0]) + mm(a, taps[1]) + mm(mm(RP1, a), taps[2])

    def erf(z):
        # TODO(synk): float32-accurate erf (Abramowitz-Stegun 7.1.26, |err| <= 1.5e-7) evaluated with
        # exp/abs/where so we do not rely on a lax.erf lowering inside Mosaic; matches torch exact GELU
        # to ~1e-7.
        p = 0.3275911
        a1, a2, a3, a4, a5 = 0.254829592, -0.284496736, 1.421413741, -1.453152027, 1.061405429
        az = jnp.abs(z)
        t = 1.0 / (1.0 + p * az)
        poly = ((((a5 * t + a4) * t + a3) * t + a2) * t + a1) * t
        y = 1.0 - poly * jnp.exp(-az * az)
        return jnp.where(z >= 0.0, y, -y)

    def gelu(z):                               # exact-erf GELU (torch default)
        return 0.5 * z * (1.0 + erf(z * 0.7071067811865476))

    def my_layernorm(a, g, b, eps=1e-5):       # LayerNorm(last dim) then remove per-feature time mean
        mu = jnp.mean(a, axis=1, keepdims=True)
        ac = a - mu
        var = jnp.mean(ac * ac, axis=1, keepdims=True)
        ah = ac * jax.lax.rsqrt(var + eps) * g + b
        return ah - jnp.mean(ah, axis=0, keepdims=True)

    # shared iota / one-hot constants (hoisted out of the attention blocks)
    lag = jax.lax.broadcasted_iota(jnp.int32, (1, L), 1).astype(f32)          # [1, L]
    onehot = [(lag == float(tau)).astype(f32) for tau in range(L)]
    iota_t = jax.lax.broadcasted_iota(jnp.int32, (L, L), 0).astype(f32)
    iota_u = jax.lax.broadcasted_iota(jnp.int32, (L, L), 1).astype(f32)

    def autocorr(Q2, K2, V2, wo, bo):
        # AutoCorrelation (inference-mode).  The per-head correlations only ever enter through their
        # mean over heads/channels, and the delay gather is head-uniform, so the head split cancels:
        # we work directly on the flat [L, d_model] projections.
        # mean_value[tau] = (1/d_model) * sum_{s,d} Q2[s,d] * K2[(s-tau)%L,d]   (== FFT version)
        G = jnp.einsum('sd,ud->su', Q2, K2, preferred_element_type=f32)       # Gram on the MXU
        mv = jnp.zeros((1, L), f32)
        for tau in range(L):
            s_tau = jnp.sum(jnp.sum(G * LAGM[tau], axis=1, keepdims=True), axis=0, keepdims=True)
            mv = mv + s_tau * onehot[tau]
        # in-kernel top-k lags + softmax over their scores (data-dependent, no host/XLA exit)
        work = mv
        tops = []
        for _ in range(TOP_K):
            v = jnp.max(work, axis=1, keepdims=True)
            d = jnp.min(jnp.where(work >= v, lag, float(L)), axis=1, keepdims=True)
            work = jnp.where(lag == d, -1e30, work)
            tops.append((v, d))
        vmax = tops[0][0]
        es = [jnp.exp(v - vmax) for v, _ in tops]
        denom = es[0]
        for e in es[1:]:
            denom = denom + e
        inv = 1.0 / denom
        # delay aggregation as one matmul: W[t,u] = sum_i a_i * 1[u == (t + delay_i) % L]
        W = jnp.zeros((L, L), f32)
        for (_, d), e in zip(tops, es):
            td = iota_t + d
            td = jnp.where(td >= float(L), td - float(L), td)
            W = W + (e * inv) * (iota_u == td).astype(f32)
        agg = mm(W, V2)
        return mm(agg, wo) + bo

    def encoder_layer(a, lp):
        wqkv, bqkv, wo, bo, wff1, wff2 = (r[...] for r in lp)
        qkv = mm(a, wqkv) + bqkv                                   # fused Q/K/V projection
        a = a + autocorr(qkv[:, 0:D_MODEL],
                         qkv[:, D_MODEL:2 * D_MODEL],
                         qkv[:, 2 * D_MODEL:3 * D_MODEL], wo, bo)
        a, _ = decomp(a)
        y = mm(gelu(mm(a, wff1)), wff2)                            # fused FFN
        a, _ = decomp(a + y)
        return a

    def decoder_layer(a, cross, lp):
        (s_wqkv, s_bqkv, s_wo, s_bo,
         c_wq, c_bq, c_wkv, c_bkv, c_wo, c_bo,
         wff1, wff2, wtr) = (r[...] for r in lp)
        qkv = mm(a, s_wqkv) + s_bqkv
        a = a + autocorr(qkv[:, 0:D_MODEL],
                         qkv[:, D_MODEL:2 * D_MODEL],
                         qkv[:, 2 * D_MODEL:3 * D_MODEL], s_wo, s_bo)
        a, trend1 = decomp(a)
        q = mm(a, c_wq) + c_bq
        kv = mm(cross, c_wkv) + c_bkv                              # fused K/V projection
        a = a + autocorr(q, kv[:, 0:D_MODEL], kv[:, D_MODEL:2 * D_MODEL], c_wo, c_bo)
        a, trend2 = decomp(a)
        y = mm(gelu(mm(a, wff1)), wff2)
        a, trend3 = decomp(a + y)
        residual_trend = circ_conv3(trend1 + trend2 + trend3, wtr)  # [L, C_TOTAL]
        return a, residual_trend

    # ---- forecast prologue: series_decomp of the raw series + decoder inits -------------------
    seasonal, trend = decomp(x_in)
    mean_t = jnp.mean(x_in, axis=0, keepdims=True)                  # per-channel time mean [1, C]
    t_idx = jax.lax.broadcasted_iota(jnp.int32, (L, 1), 0).astype(f32)
    mask_future = (t_idx >= float(PRED_LEN)).astype(f32)            # [L, 1]
    trend_init = mm(SEL, trend) + mask_future * mean_t              # [.. -P:] then repeated mean
    seasonal_init = mm(SEL, seasonal)                               # [.. -P:] then zeros

    # ---- embeddings (TokenEmbedding: k=3 circular conv over time, no bias) --------------------
    enc_x = circ_conv3(x_in, tok_enc_ref[...])
    dec_x = circ_conv3(seasonal_init, tok_dec_ref[...])

    # ---- encoder -------------------------------------------------------------------------------
    for lp in enc_layers:
        enc_x = encoder_layer(enc_x, lp)
    enc_out = my_layernorm(enc_x, enc_g_ref[...], enc_b_ref[...])

    # ---- decoder -------------------------------------------------------------------------------
    trend_acc = trend_init
    dx = dec_x
    for lp in dec_layers:
        dx, rt = decoder_layer(dx, enc_out, lp)
        trend_acc = trend_acc + rt
    dx = my_layernorm(dx, dec_g_ref[...], dec_b_ref[...])
    seasonal_part = mm(dx, wproj_ref[...]) + bproj_ref[...]          # Linear(d_model, c_out*n_decomp)
    dec_out = trend_acc + seasonal_part                              # [L, C_TOTAL]

    # ---- composition (sum over decomposition variables) + prediction-window slice -------------
    comp = dec_out[:, 0:ENC_IN]
    for i in range(1, N_DECOMP):
        comp = comp + dec_out[:, i * ENC_IN:(i + 1) * ENC_IN]
    out_ref[...] = comp[None, L - PRED_LEN:, :]                      # [1, PRED_LEN, ENC_IN]


# ----------------------------- wrapper ---------------------------------------


def _full_spec(shape):
    nd = len(shape)
    return pl.BlockSpec(tuple(shape), lambda b, _nd=nd: (0,) * _nd)


def _batch_spec(shape):
    nd = len(shape)
    return pl.BlockSpec((1,) + tuple(shape[1:]), lambda b, _nd=nd: (b,) + (0,) * (_nd - 1))


def forecast(x_enc, params):
    B = x_enc.shape[0]
    xT = jnp.transpose(x_enc, (0, 2, 1)).astype(jnp.float32)        # [B, L, C_TOTAL]

    def taps(w):                                                    # [Cout, Cin, 3] -> [3, Cin, Cout]
        return jnp.transpose(w, (2, 1, 0)).astype(jnp.float32)

    def b2(v):                                                      # bias/scale -> [1, N]
        return v.reshape(1, -1).astype(jnp.float32)

    c = _CONSTS
    inputs = [xT, c['AVG'], c['RM1'], c['RP1'], c['SEL'], c['LAGM'],
              taps(params['w_tok_enc']), taps(params['w_tok_dec'])]
    enc = params['encoder']
    for lp in enc['layers']:
        a = lp['attn']
        inputs += [jnp.concatenate([a['wq'], a['wk'], a['wv']], axis=1),
                   b2(jnp.concatenate([a['bq'], a['bk'], a['bv']])),
                   a['wo'], b2(a['bo']), lp['w_ff1'], lp['w_ff2']]
    inputs += [b2(enc['norm_g']), b2(enc['norm_b'])]
    dec = params['decoder']
    for lp in dec['layers']:
        sa, ca = lp['self_attn'], lp['cross_attn']
        inputs += [jnp.concatenate([sa['wq'], sa['wk'], sa['wv']], axis=1),
                   b2(jnp.concatenate([sa['bq'], sa['bk'], sa['bv']])),
                   sa['wo'], b2(sa['bo']),
                   ca['wq'], b2(ca['bq']),
                   jnp.concatenate([ca['wk'], ca['wv']], axis=1),
                   b2(jnp.concatenate([ca['bk'], ca['bv']])),
                   ca['wo'], b2(ca['bo']),
                   lp['w_ff1'], lp['w_ff2'], taps(lp['w_trend_proj'])]
    inputs += [b2(dec['norm_g']), b2(dec['norm_b']), dec['w_proj'], b2(dec['b_proj'])]

    in_specs = [_batch_spec(xT.shape)] + [_full_spec(a.shape) for a in inputs[1:]]
    out = pl.pallas_call(
        _autoformer_kernel,
        out_shape=jax.ShapeDtypeStruct((B, PRED_LEN, ENC_IN), jnp.float32),
        grid=(B,),                                   # batch-parallel: shards across v7x's 2 TCs
        in_specs=in_specs,
        out_specs=_batch_spec((B, PRED_LEN, ENC_IN)),
        compiler_params=pltpu.CompilerParams(dimension_semantics=("parallel",)),
    )(*inputs)
    return jnp.transpose(out, (0, 2, 1))             # [B, C_OUT, PRED_LEN]


def autoformer_forward(x_enc, x_mark_enc, x_dec, x_mark_dec, params, mask=None):
    del x_mark_enc, x_dec, x_mark_dec, mask          # unused by forecast()
    return forecast(x_enc, params)                   # already the last pred_len window


# ----------------------------- deterministic parameter init -----------------


def init_params(key):
    keys = iter(jax.random.split(key, 64))

    def w(shape, fan_in):
        return jax.random.normal(next(keys), shape, jnp.float32) / math.sqrt(fan_in)

    def attn():
        return dict(
            wq=w((D_MODEL, D_MODEL), D_MODEL), bq=jnp.zeros((D_MODEL,), jnp.float32),
            wk=w((D_MODEL, D_MODEL), D_MODEL), bk=jnp.zeros((D_MODEL,), jnp.float32),
            wv=w((D_MODEL, D_MODEL), D_MODEL), bv=jnp.zeros((D_MODEL,), jnp.float32),
            wo=w((D_MODEL, D_MODEL), D_MODEL), bo=jnp.zeros((D_MODEL,), jnp.float32),
        )

    enc_layers = [
        dict(attn=attn(),
             w_ff1=w((D_MODEL, D_FF), D_MODEL),
             w_ff2=w((D_FF, D_MODEL), D_FF))
        for _ in range(E_LAYERS)
    ]
    dec_layers = [
        dict(self_attn=attn(), cross_attn=attn(),
             w_ff1=w((D_MODEL, D_FF), D_MODEL),
             w_ff2=w((D_FF, D_MODEL), D_FF),
             w_trend_proj=w((C_TOTAL, D_MODEL, 3), 3 * D_MODEL))
        for _ in range(D_LAYERS)
    ]
    return dict(
        w_tok_enc=w((D_MODEL, C_TOTAL, 3), 3 * C_TOTAL),
        w_tok_dec=w((D_MODEL, C_TOTAL, 3), 3 * C_TOTAL),
        encoder=dict(layers=enc_layers,
                     norm_g=jnp.ones((D_MODEL,), jnp.float32),
                     norm_b=jnp.zeros((D_MODEL,), jnp.float32)),
        decoder=dict(layers=dec_layers,
                     norm_g=jnp.ones((D_MODEL,), jnp.float32),
                     norm_b=jnp.zeros((D_MODEL,), jnp.float32),
                     w_proj=w((D_MODEL, C_TOTAL), D_MODEL),
                     b_proj=jnp.zeros((C_TOTAL,), jnp.float32)),
    )


# ----------------------------- main ------------------------------------------

if __name__ == "__main__":
    root = jax.random.PRNGKey(0)
    pkey, dkey = jax.random.split(root)
    params = init_params(pkey)

    k1, k2, k3, k4 = jax.random.split(dkey, 4)
    x_enc = jax.random.normal(k1, (BATCH, C_TOTAL, SEQ_LEN), jnp.float32)
    x_mark_enc = jax.random.normal(k2, (BATCH, SEQ_LEN, 4), jnp.float32)                  # unused
    x_dec = jax.random.normal(k3, (BATCH, C_TOTAL, LABEL_LEN + PRED_LEN), jnp.float32)    # unused
    x_mark_dec = jax.random.normal(k4, (BATCH, LABEL_LEN + PRED_LEN, 4), jnp.float32)     # unused

    fwd = jax.jit(lambda xe, xme, xd, xmd: autoformer_forward(xe, xme, xd, xmd, params))
    out = jax.block_until_ready(fwd(x_enc, x_mark_enc, x_dec, x_mark_dec))
    assert out.shape == (BATCH, C_OUT, PRED_LEN), out.shape
    assert bool(jnp.all(jnp.isfinite(out)))
    print("KERNEL_OK")
</pallas_src>

<mosaic_0001>
module attributes {stable_mosaic.version = 11 : i64} {
  func.func @_autoformer_kernel(%arg0: i32, %arg1: memref<1x16x6xf32, #tpu.memory_space<vmem>>, %arg2: memref<16x16xf32, #tpu.memory_space<vmem>>, %arg3: memref<16x16xf32, #tpu.memory_space<vmem>>, %arg4: memref<16x16xf32, #tpu.memory_space<vmem>>, %arg5: memref<16x16xf32, #tpu.memory_space<vmem>>, %arg6: memref<16x16x16xf32, #tpu.memory_space<vmem>>, %arg7: memref<3x6x32xf32, #tpu.memory_space<vmem>>, %arg8: memref<3x6x32xf32, #tpu.memory_space<vmem>>, %arg9: memref<32x96xf32, #tpu.memory_space<vmem>>, %arg10: memref<1x96xf32, #tpu.memory_space<vmem>>, %arg11: memref<32x32xf32, #tpu.memory_space<vmem>>, %arg12: memref<1x32xf32, #tpu.memory_space<vmem>>, %arg13: memref<32x32xf32, #tpu.memory_space<vmem>>, %arg14: memref<32x32xf32, #tpu.memory_space<vmem>>, %arg15: memref<1x32xf32, #tpu.memory_space<vmem>>, %arg16: memref<1x32xf32, #tpu.memory_space<vmem>>, %arg17: memref<32x96xf32, #tpu.memory_space<vmem>>, %arg18: memref<1x96xf32, #tpu.memory_space<vmem>>, %arg19: memref<32x32xf32, #tpu.memory_space<vmem>>, %arg20: memref<1x32xf32, #tpu.memory_space<vmem>>, %arg21: memref<32x32xf32, #tpu.memory_space<vmem>>, %arg22: memref<1x32xf32, #tpu.memory_space<vmem>>, %arg23: memref<32x64xf32, #tpu.memory_space<vmem>>, %arg24: memref<1x64xf32, #tpu.memory_space<vmem>>, %arg25: memref<32x32xf32, #tpu.memory_space<vmem>>, %arg26: memref<1x32xf32, #tpu.memory_space<vmem>>, %arg27: memref<32x32xf32, #tpu.memory_space<vmem>>, %arg28: memref<32x32xf32, #tpu.memory_space<vmem>>, %arg29: memref<3x32x6xf32, #tpu.memory_space<vmem>>, %arg30: memref<1x32xf32, #tpu.memory_space<vmem>>, %arg31: memref<1x32xf32, #tpu.memory_space<vmem>>, %arg32: memref<32x6xf32, #tpu.memory_space<vmem>>, %arg33: memref<1x6xf32, #tpu.memory_space<vmem>>, %arg34: memref<1x8x3xf32, #tpu.memory_space<vmem>>) attributes {dimension_semantics = [#tpu.dimension_semantics<parallel>], iteration_bounds = array<i64: 2>, scalar_prefetch = 0 : i64, scratch_operands = 0 : i64, tpu.core_type = #tpu.core_type<tc>, window_params = [{transform_indices = @transform_0, window_bounds = array<i64: 1, 16, 6>}, {pipeline_mode = #tpu.pipeline_mode<synchronous>, transform_indices = @transform_1, window_bounds = array<i64: 16, 16>}, {pipeline_mode = #tpu.pipeline_mode<synchronous>, transform_indices = @transform_2, window_bounds = array<i64: 16, 16>}, {pipeline_mode = #tpu.pipeline_mode<synchronous>, transform_indices = @transform_3, window_bounds = array<i64: 16, 16>}, {pipeline_mode = #tpu.pipeline_mode<synchronous>, transform_indices = @transform_4, window_bounds = array<i64: 16, 16>}, {pipeline_mode = #tpu.pipeline_mode<synchronous>, transform_indices = @transform_5, window_bounds = array<i64: 16, 16, 16>}, {pipeline_mode = #tpu.pipeline_mode<synchronous>, transform_indices = @transform_6, window_bounds = array<i64: 3, 6, 32>}, {pipeline_mode = #tpu.pipeline_mode<synchronous>, transform_indices = @transform_7, window_bounds = array<i64: 3, 6, 32>}, {pipeline_mode = #tpu.pipeline_mode<synchronous>, transform_indices = @transform_8, window_bounds = array<i64: 32, 96>}, {pipeline_mode = #tpu.pipeline_mode<synchronous>, transform_indices = @transform_9, window_bounds = array<i64: 1, 96>}, {pipeline_mode = #tpu.pipeline_mode<synchronous>, transform_indices = @transform_10, window_bounds = array<i64: 32, 32>}, {pipeline_mode = #tpu.pipeline_mode<synchronous>, transform_indices = @transform_11, window_bounds = array<i64: 1, 32>}, {pipeline_mode = #tpu.pipeline_mode<synchronous>, transform_indices = @transform_12, window_bounds = array<i64: 32, 32>}, {pipeline_mode = #tpu.pipeline_mode<synchronous>, transform_indices = @transform_13, window_bounds = array<i64: 32, 32>}, {pipeline_mode = #tpu.pipeline_mode<synchronous>, transform_indices = @transform_14, window_bounds = array<i64: 1, 32>}, {pipeline_mode = #tpu.pipeline_mode<synchronous>, transform_indices = @transform_15, window_bounds = array<i64: 1, 32>}, {pipeline_mode = #tpu.pipeline_mode<synchronous>, transform_indices = @transform_16, window_bounds = array<i64: 32, 96>}, {pipeline_mode = #tpu.pipeline_mode<synchronous>, transform_indices = @transform_17, window_bounds = array<i64: 1, 96>}, {pipeline_mode = #tpu.pipeline_mode<synchronous>, transform_indices = @transform_18, window_bounds = array<i64: 32, 32>}, {pipeline_mode = #tpu.pipeline_mode<synchronous>, transform_indices = @transform_19, window_bounds = array<i64: 1, 32>}, {pipeline_mode = #tpu.pipeline_mode<synchronous>, transform_indices = @transform_20, window_bounds = array<i64: 32, 32>}, {pipeline_mode = #tpu.pipeline_mode<synchronous>, transform_indices = @transform_21, window_bounds = array<i64: 1, 32>}, {pipeline_mode = #tpu.pipeline_mode<synchronous>, transform_indices = @transform_22, window_bounds = array<i64: 32, 64>}, {pipeline_mode = #tpu.pipeline_mode<synchronous>, transform_indices = @transform_23, window_bounds = array<i64: 1, 64>}, {pipeline_mode = #tpu.pipeline_mode<synchronous>, transform_indices = @transform_24, window_bounds = array<i64: 32, 32>}, {pipeline_mode = #tpu.pipeline_mode<synchronous>, transform_indices = @transform_25, window_bounds = array<i64: 1, 32>}, {pipeline_mode = #tpu.pipeline_mode<synchronous>, transform_indices = @transform_26, window_bounds = array<i64: 32, 32>}, {pipeline_mode = #tpu.pipeline_mode<synchronous>, transform_indices = @transform_27, window_bounds = array<i64: 32, 32>}, {pipeline_mode = #tpu.pipeline_mode<synchronous>, transform_indices = @transform_28, window_bounds = array<i64: 3, 32, 6>}, {pipeline_mode = #tpu.pipeline_mode<synchronous>, transform_indices = @transform_29, window_bounds = array<i64: 1, 32>}, {pipeline_mode = #tpu.pipeline_mode<synchronous>, transform_indices = @transform_30, window_bounds = array<i64: 1, 32>}, {pipeline_mode = #tpu.pipeline_mode<synchronous>, transform_indices = @transform_31, window_bounds = array<i64: 32, 6>}, {pipeline_mode = #tpu.pipeline_mode<synchronous>, transform_indices = @transform_32, window_bounds = array<i64: 1, 6>}, {transform_indices = @transform_33, window_bounds = array<i64: 1, 8, 3>}]} {
    %c0 = arith.constant 0 : index
    %c0_0 = arith.constant 0 : index
    %c0_1 = arith.constant 0 : index
    %0 = vector.load %arg1[%c0, %c0_0, %c0_1] : memref<1x16x6xf32, #tpu.memory_space<vmem>>, vector<1x16x6xf32>
    %1 = vector.shape_cast %0 : vector<1x16x6xf32> to vector<16x6xf32>
    %c0_2 = arith.constant 0 : index
    %c0_3 = arith.constant 0 : index
    %2 = vector.load %arg2[%c0_2, %c0_3] : memref<16x16xf32, #tpu.memory_space<vmem>>, vector<16x16xf32>
    %c0_4 = arith.constant 0 : index
    %c0_5 = arith.constant 0 : index
    %3 = vector.load %arg3[%c0_4, %c0_5] : memref<16x16xf32, #tpu.memory_space<vmem>>, vector<16x16xf32>
    %c0_6 = arith.constant 0 : index
    %c0_7 = arith.constant 0 : index
    %4 = vector.load %arg4[%c0_6, %c0_7] : memref<16x16xf32, #tpu.memory_space<vmem>>, vector<16x16xf32>
    %c0_8 = arith.constant 0 : index
    %c0_9 = arith.constant 0 : index
    %5 = vector.load %arg5[%c0_8, %c0_9] : memref<16x16xf32, #tpu.memory_space<vmem>>, vector<16x16xf32>
    %c0_10 = arith.constant 0 : index
    %c0_11 = arith.constant 0 : index
    %c0_12 = arith.constant 0 : index
    %6 = vector.load %arg6[%c0_10, %c0_11, %c0_12] : memref<16x16x16xf32, #tpu.memory_space<vmem>>, vector<16x16x16xf32>
    %7 = tpu.iota {dimensions = array<i32: 1>} : vector<1x16xi32>
    %8 = arith.sitofp %7 : vector<1x16xi32> to vector<1x16xf32>
    %cst = arith.constant 0.000000e+00 : f32
    %9 = vector.broadcast %cst : f32 to vector<1x16xf32>
    %10 = arith.cmpf oeq, %8, %9 : vector<1x16xf32>
    %11 = arith.extui %10 : vector<1x16xi1> to vector<1x16xi32>
    %12 = arith.sitofp %11 : vector<1x16xi32> to vector<1x16xf32>
    %cst_13 = arith.constant 1.000000e+00 : f32
    %13 = vector.broadcast %cst_13 : f32 to vector<1x16xf32>
    %14 = arith.cmpf oeq, %8, %13 : vector<1x16xf32>
    %15 = arith.extui %14 : vector<1x16xi1> to vector<1x16xi32>
    %16 = arith.sitofp %15 : vector<1x16xi32> to vector<1x16xf32>
    %cst_14 = arith.constant 2.000000e+00 : f32
    %17 = vector.broadcast %cst_14 : f32 to vector<1x16xf32>
    %18 = arith.cmpf oeq, %8, %17 : vector<1x16xf32>
    %19 = arith.extui %18 : vector<1x16xi1> to vector<1x16xi32>
    %20 = arith.sitofp %19 : vector<1x16xi32> to vector<1x16xf32>
    %cst_15 = arith.constant 3.000000e+00 : f32
    %21 = vector.broadcast %cst_15 : f32 to vector<1x16xf32>
    %22 = arith.cmpf oeq, %8, %21 : vector<1x16xf32>
    %23 = arith.extui %22 : vector<1x16xi1> to vector<1x16xi32>
    %24 = arith.sitofp %23 : vector<1x16xi32> to vector<1x16xf32>
    %cst_16 = arith.constant 4.000000e+00 : f32
    %25 = vector.broadcast %cst_16 : f32 to vector<1x16xf32>
    %26 = arith.cmpf oeq, %8, %25 : vector<1x16xf32>
    %27 = arith.extui %26 : vector<1x16xi1> to vector<1x16xi32>
    %28 = arith.sitofp %27 : vector<1x16xi32> to vector<1x16xf32>
    %cst_17 = arith.constant 5.000000e+00 : f32
    %29 = vector.broadcast %cst_17 : f32 to vector<1x16xf32>
    %30 = arith.cmpf oeq, %8, %29 : vector<1x16xf32>
    %31 = arith.extui %30 : vector<1x16xi1> to vector<1x16xi32>
    %32 = arith.sitofp %31 : vector<1x16xi32> to vector<1x16xf32>
    %cst_18 = arith.constant 6.000000e+00 : f32
    %33 = vector.broadcast %cst_18 : f32 to vector<1x16xf32>
    %34 = arith.cmpf oeq, %8, %33 : vector<1x16xf32>
    %35 = arith.extui %34 : vector<1x16xi1> to vector<1x16xi32>
    %36 = arith.sitofp %35 : vector<1x16xi32> to vector<1x16xf32>
    %cst_19 = arith.constant 7.000000e+00 : f32
    %37 = vector.broadcast %cst_19 : f32 to vector<1x16xf32>
    %38 = arith.cmpf oeq, %8, %37 : vector<1x16xf32>
    %39 = arith.extui %38 : vector<1x16xi1> to vector<1x16xi32>
    %40 = arith.sitofp %39 : vector<1x16xi32> to vector<1x16xf32>
    %cst_20 = arith.constant 8.000000e+00 : f32
    %41 = vector.broadcast %cst_20 : f32 to vector<1x16xf32>
    %42 = arith.cmpf oeq, %8, %41 : vector<1x16xf32>
    %43 = arith.extui %42 : vector<1x16xi1> to vector<1x16xi32>
    %44 = arith.sitofp %43 : vector<1x16xi32> to vector<1x16xf32>
    %cst_21 = arith.constant 9.000000e+00 : f32
    %45 = vector.broadcast %cst_21 : f32 to vector<1x16xf32>
    %46 = arith.cmpf oeq, %8, %45 : vector<1x16xf32>
    %47 = arith.extui %46 : vector<1x16xi1> to vector<1x16xi32>
    %48 = arith.sitofp %47 : vector<1x16xi32> to vector<1x16xf32>
    %cst_22 = arith.constant 1.000000e+01 : f32
    %49 = vector.broadcast %cst_22 : f32 to vector<1x16xf32>
    %50 = arith.cmpf oeq, %8, %49 : vector<1x16xf32>
    %51 = arith.extui %50 : vector<1x16xi1> to vector<1x16xi32>
    %52 = arith.sitofp %51 : vector<1x16xi32> to vector<1x16xf32>
    %cst_23 = arith.constant 1.100000e+01 : f32
    %53 = vector.broadcast %cst_23 : f32 to vector<1x16xf32>
    %54 = arith.cmpf oeq, %8, %53 : vector<1x16xf32>
    %55 = arith.extui %54 : vector<1x16xi1> to vector<1x16xi32>
    %56 = arith.sitofp %55 : vector<1x16xi32> to vector<1x16xf32>
    %cst_24 = arith.constant 1.200000e+01 : f32
    %57 = vector.broadcast %cst_24 : f32 to vector<1x16xf32>
    %58 = arith.cmpf oeq, %8, %57 : vector<1x16xf32>
    %59 = arith.extui %58 : vector<1x16xi1> to vector<1x16xi32>
    %60 = arith.sitofp %59 : vector<1x16xi32> to vector<1x16xf32>
    %cst_25 = arith.constant 1.300000e+01 : f32
    %61 = vector.broadcast %cst_25 : f32 to vector<1x16xf32>
    %62 = arith.cmpf oeq, %8, %61 : vector<1x16xf32>
    %63 = arith.extui %62 : vector<1x16xi1> to vector<1x16xi32>
    %64 = arith.sitofp %63 : vector<1x16xi32> to vector<1x16xf32>
    %cst_26 = arith.constant 1.400000e+01 : f32
    %65 = vector.broadcast %cst_26 : f32 to vector<1x16xf32>
    %66 = arith.cmpf oeq, %8, %65 : vector<1x16xf32>
    %67 = arith.extui %66 : vector<1x16xi1> to vector<1x16xi32>
    %68 = arith.sitofp %67 : vector<1x16xi32> to vector<1x16xf32>
    %cst_27 = arith.constant 1.500000e+01 : f32
    %69 = vector.broadcast %cst_27 : f32 to vector<1x16xf32>
    %70 = arith.cmpf oeq, %8, %69 : vector<1x16xf32>
    %71 = arith.extui %70 : vector<1x16xi1> to vector<1x16xi32>
    %72 = arith.sitofp %71 : vector<1x16xi32> to vector<1x16xf32>
    %73 = tpu.iota {dimensions = array<i32: 0>} : vector<16x16xi32>
    %74 = arith.sitofp %73 : vector<16x16xi32> to vector<16x16xf32>
    %75 = tpu.iota {dimensions = array<i32: 1>} : vector<16x16xi32>
    %76 = arith.sitofp %75 : vector<16x16xi32> to vector<16x16xf32>
    %cst_28 = arith.constant dense<0.000000e+00> : vector<16x6xf32>
    %77 = tpu.matmul %2, %1, %cst_28 {dimension_numbers = #tpu.dot_dimension_numbers<[1], [0], [0], [1], [0, 0, 1, 1], [], []>} : vector<16x16xf32>, vector<16x6xf32>, vector<16x6xf32> -> vector<16x6xf32>
    %78 = arith.subf %1, %77 : vector<16x6xf32>
    %cst_29 = arith.constant dense<0.000000e+00> : vector<6xf32>
    %79 = vector.multi_reduction <add>, %1, %cst_29 [0] : vector<16x6xf32> to vector<6xf32>
    %80 = vector.shape_cast %79 : vector<6xf32> to vector<1x6xf32>
    %cst_30 = arith.constant 1.600000e+01 : f32
    %81 = vector.broadcast %cst_30 : f32 to vector<1x6xf32>
    %82 = arith.divf %80, %81 : vector<1x6xf32>
    %83 = tpu.iota {dimensions = array<i32: 0>} : vector<16x1xi32>
    %84 = arith.sitofp %83 : vector<16x1xi32> to vector<16x1xf32>
    %cst_31 = arith.constant 8.000000e+00 : f32
    %85 = vector.broadcast %cst_31 : f32 to vector<16x1xf32>
    %86 = arith.cmpf oge, %84, %85 : vector<16x1xf32>
    %87 = arith.extui %86 : vector<16x1xi1> to vector<16x1xi32>
    %88 = arith.sitofp %87 : vector<16x1xi32> to vector<16x1xf32>
    %cst_32 = arith.constant dense<0.000000e+00> : vector<16x6xf32>
    %89 = tpu.matmul %5, %77, %cst_32 {dimension_numbers = #tpu.dot_dimension_numbers<[1], [0], [0], [1], [0, 0, 1, 1], [], []>} : vector<16x16xf32>, vector<16x6xf32>, vector<16x6xf32> -> vector<16x6xf32>
    %90 = vector.broadcast %88 : vector<16x1xf32> to vector<16x6xf32>
    %91 = vector.broadcast %82 : vector<1x6xf32> to vector<16x6xf32>
    %92 = arith.mulf %90, %91 : vector<16x6xf32>
    %93 = arith.addf %89, %92 : vector<16x6xf32>
    %cst_33 = arith.constant dense<0.000000e+00> : vector<16x6xf32>
    %94 = tpu.matmul %5, %78, %cst_33 {dimension_numbers = #tpu.dot_dimension_numbers<[1], [0], [0], [1], [0, 0, 1, 1], [], []>} : vector<16x16xf32>, vector<16x6xf32>, vector<16x6xf32> -> vector<16x6xf32>
    %c0_34 = arith.constant 0 : index
    %c0_35 = arith.constant 0 : index
    %c0_36 = arith.constant 0 : index
    %95 = vector.load %arg7[%c0_34, %c0_35, %c0_36] : memref<3x6x32xf32, #tpu.memory_space<vmem>>, vector<3x6x32xf32>
    %cst_37 = arith.constant dense<0.000000e+00> : vector<16x6xf32>
    %96 = tpu.matmul %3, %1, %cst_37 {dimension_numbers = #tpu.dot_dimension_numbers<[1], [0], [0], [1], [0, 0, 1, 1], [], []>} : vector<16x16xf32>, vector<16x6xf32>, vector<16x6xf32> -> vector<16x6xf32>
    %97 = vector.extract_strided_slice %95 {offsets = [0, 0, 0], sizes = [1, 6, 32], strides = [1, 1, 1]} : vector<3x6x32xf32> to vector<1x6x32xf32>
    %98 = vector.shape_cast %97 : vector<1x6x32xf32> to vector<6x32xf32>
    %cst_38 = arith.constant dense<0.000000e+00> : vector<16x32xf32>
    %99 = tpu.matmul %96, %98, %cst_38 {dimension_numbers = #tpu.dot_dimension_numbers<[1], [0], [0], [1], [0, 0, 1, 1], [], []>} : vector<16x6xf32>, vector<6x32xf32>, vector<16x32xf32> -> vector<16x32xf32>
    %100 = vector.extract_strided_slice %95 {offsets = [1, 0, 0], sizes = [1, 6, 32], strides = [1, 1, 1]} : vector<3x6x32xf32> to vector<1x6x32xf32>
    %101 = vector.shape_cast %100 : vector<1x6x32xf32> to vector<6x32xf32>
    %cst_39 = arith.constant dense<0.000000e+00> : vector<16x32xf32>
    %102 = tpu.matmul %1, %101, %cst_39 {dimension_numbers = #tpu.dot_dimension_numbers<[1], [0], [0], [1], [0, 0, 1, 1], [], []>} : vector<16x6xf32>, vector<6x32xf32>, vector<16x32xf32> -> vector<16x32xf32>
    %103 = arith.addf %99, %102 : vector<16x32xf32>
    %cst_40 = arith.constant dense<0.000000e+00> : vector<16x6xf32>
    %104 = tpu.matmul %4, %1, %cst_40 {dimension_numbers = #tpu.dot_dimension_numbers<[1], [0], [0], [1], [0, 0, 1, 1], [], []>} : vector<16x16xf32>, vector<16x6xf32>, vector<16x6xf32> -> vector<16x6xf32>
    %105 = vector.extract_strided_slice %95 {offsets = [2, 0, 0], sizes = [1, 6, 32], strides = [1, 1, 1]} : vector<3x6x32xf32> to vector<1x6x32xf32>
    %106 = vector.shape_cast %105 : vector<1x6x32xf32> to vector<6x32xf32>
    %cst_41 = arith.constant dense<0.000000e+00> : vector<16x32xf32>
    %107 = tpu.matmul %104, %106, %cst_41 {dimension_numbers = #tpu.dot_dimension_numbers<[1], [0], [0], [1], [0, 0, 1, 1], [], []>} : vector<16x6xf32>, vector<6x32xf32>, vector<16x32xf32> -> vector<16x32xf32>
    %108 = arith.addf %103, %107 : vector<16x32xf32>
    %c0_42 = arith.constant 0 : index
    %c0_43 = arith.constant 0 : index
    %c0_44 = arith.constant 0 : index
    %109 = vector.load %arg8[%c0_42, %c0_43, %c0_44] : memref<3x6x32xf32, #tpu.memory_space<vmem>>, vector<3x6x32xf32>
    %cst_45 = arith.constant dense<0.000000e+00> : vector<16x6xf32>
    %110 = tpu.matmul %3, %94, %cst_45 {dimension_numbers = #tpu.dot_dimension_numbers<[1], [0], [0], [1], [0, 0, 1, 1], [], []>} : vector<16x16xf32>, vector<16x6xf32>, vector<16x6xf32> -> vector<16x6xf32>
    %111 = vector.extract_strided_slice %109 {offsets = [0, 0, 0], sizes = [1, 6, 32], strides = [1, 1, 1]} : vector<3x6x32xf32> to vector<1x6x32xf32>
    %112 = vector.shape_cast %111 : vector<1x6x32xf32> to vector<6x32xf32>
    %cst_46 = arith.constant dense<0.000000e+00> : vector<16x32xf32>
    %113 = tpu.matmul %110, %112, %cst_46 {dimension_numbers = #tpu.dot_dimension_numbers<[1], [0], [0], [1], [0, 0, 1, 1], [], []>} : vector<16x6xf32>, vector<6x32xf32>, vector<16x32xf32> -> vector<16x32xf32>
    %114 = vector.extract_strided_slice %109 {offsets = [1, 0, 0], sizes = [1, 6, 32], strides = [1, 1, 1]} : vector<3x6x32xf32> to vector<1x6x32xf32>
    %115 = vector.shape_cast %114 : vector<1x6x32xf32> to vector<6x32xf32>
    %cst_47 = arith.constant dense<0.000000e+00> : vector<16x32xf32>
    %116 = tpu.matmul %94, %115, %cst_47 {dimension_numbers = #tpu.dot_dimension_numbers<[1], [0], [0], [1], [0, 0, 1, 1], [], []>} : vector<16x6xf32>, vector<6x32xf32>, vector<16x32xf32> -> vector<16x32xf32>
    %117 = arith.addf %113, %116 : vector<16x32xf32>
    %cst_48 = arith.constant dense<0.000000e+00> : vector<16x6xf32>
    %118 = tpu.matmul %4, %94, %cst_48 {dimension_numbers = #tpu.dot_dimension_numbers<[1], [0], [0], [1], [0, 0, 1, 1], [], []>} : vector<16x16xf32>, vector<16x6xf32>, vector<16x6xf32> -> vector<16x6xf32>
    %119 = vector.extract_strided_slice %109 {offsets = [2, 0, 0], sizes = [1, 6, 32], strides = [1, 1, 1]} : vector<3x6x32xf32> to vector<1x6x32xf32>
    %120 = vector.shape_cast %119 : vector<1x6x32xf32> to vector<6x32xf32>
    %cst_49 = arith.constant dense<0.000000e+00> : vector<16x32xf32>
    %121 = tpu.matmul %118, %120, %cst_49 {dimension_numbers = #tpu.dot_dimension_numbers<[1], [0], [0], [1], [0, 0, 1, 1], [], []>} : vector<16x6xf32>, vector<6x32xf32>, vector<16x32xf32> -> vector<16x32xf32>
    %122 = arith.addf %117, %121 : vector<16x32xf32>
    %c0_50 = arith.constant 0 : index
    %c0_51 = arith.constant 0 : index
    %123 = vector.load %arg9[%c0_50, %c0_51] : memref<32x96xf32, #tpu.memory_space<vmem>>, vector<32x96xf32>
    %c0_52 = arith.constant 0 : index
    %c0_53 = arith.constant 0 : index
    %124 = vector.load %arg10[%c0_52, %c0_53] : memref<1x96xf32, #tpu.memory_space<vmem>>, vector<1x96xf32>
    %c0_54 = arith.constant 0 : index
    %c0_55 = arith.constant 0 : index
    %125 = vector.load %arg11[%c0_54, %c0_55] : memref<32x32xf32, #tpu.memory_space<vmem>>, vector<32x32xf32>
    %c0_56 = arith.constant 0 : index
    %c0_57 = arith.constant 0 : index
    %126 = vector.load %arg12[%c0_56, %c0_57] : memref<1x32xf32, #tpu.memory_space<vmem>>, vector<1x32xf32>
    %c0_58 = arith.constant 0 : index
    %c0_59 = arith.constant 0 : index
    %127 = vector.load %arg13[%c0_58, %c0_59] : memref<32x32xf32, #tpu.memory_space<vmem>>, vector<32x32xf32>
    %c0_60 = arith.constant 0 : index
    %c0_61 = arith.constant 0 : index
    %128 = vector.load %arg14[%c0_60, %c0_61] : memref<32x32xf32, #tpu.memory_space<vmem>>, vector<32x32xf32>
    %cst_62 = arith.constant dense<0.000000e+00> : vector<16x96xf32>
    %129 = tpu.matmul %108, %123, %cst_62 {dimension_numbers = #tpu.dot_dimension_numbers<[1], [0], [0], [1], [0, 0, 1, 1], [], []>} : vector<16x32xf32>, vector<32x96xf32>, vector<16x96xf32> -> vector<16x96xf32>
    %130 = vector.broadcast %124 : vector<1x96xf32> to vector<16x96xf32>
    %131 = arith.addf %129, %130 : vector<16x96xf32>
    %132 = vector.extract_strided_slice %131 {offsets = [0, 0], sizes = [16, 32], strides = [1, 1]} : vector<16x96xf32> to vector<16x32xf32>
    %133 = vector.extract_strided_slice %131 {offsets = [0, 32], sizes = [16, 32], strides = [1, 1]} : vector<16x96xf32> to vector<16x32xf32>
    %134 = vector.extract_strided_slice %131 {offsets = [0, 64], sizes = [16, 32], strides = [1, 1]} : vector<16x96xf32> to vector<16x32xf32>
    "tpu.trace_start"() <{level = 10 : i32, message = "sd,ud->su"}> : () -> ()
    %cst_63 = arith.constant dense<0.000000e+00> : vector<16x16xf32>
    %135 = tpu.matmul %132, %133, %cst_63 {dimension_numbers = #tpu.dot_dimension_numbers<[1], [1], [0], [0], [0, 0, 1, 0], [], []>} : vector<16x32xf32>, vector<16x32xf32>, vector<16x16xf32> -> vector<16x16xf32>
    %cst_64 = arith.constant 0.000000e+00 : f32
    "tpu.trace_stop"() : () -> ()
    %136 = vector.broadcast %cst_64 : f32 to vector<1x16xf32>
    %137 = vector.extract_strided_slice %6 {offsets = [0, 0, 0], sizes = [1, 16, 16], strides = [1, 1, 1]} : vector<16x16x16xf32> to vector<1x16x16xf32>
    %138 = vector.shape_cast %137 : vector<1x16x16xf32> to vector<16x16xf32>
    %139 = arith.mulf %135, %138 : vector<16x16xf32>
    %cst_65 = arith.constant dense<0.000000e+00> : vector<16xf32>
    %140 = vector.multi_reduction <add>, %139, %cst_65 [1] : vector<16x16xf32> to vector<16xf32>
    %141 = vector.shape_cast %140 : vector<16xf32> to vector<16x1xf32>
    %cst_66 = arith.constant dense<0.000000e+00> : vector<1xf32>
    %142 = vector.multi_reduction <add>, %141, %cst_66 [0] : vector<16x1xf32> to vector<1xf32>
    %143 = vector.shape_cast %142 : vector<1xf32> to vector<1x1xf32>
    %144 = vector.broadcast %143 : vector<1x1xf32> to vector<1x16xf32>
    %145 = arith.mulf %144, %12 : vector<1x16xf32>
    %146 = arith.addf %136, %145 : vector<1x16xf32>
    %147 = vector.extract_strided_slice %6 {offsets = [1, 0, 0], sizes = [1, 16, 16], strides = [1, 1, 1]} : vector<16x16x16xf32> to vector<1x16x16xf32>
    %148 = vector.shape_cast %147 : vector<1x16x16xf32> to vector<16x16xf32>
    %149 = arith.mulf %135, %148 : vector<16x16xf32>
    %cst_67 = arith.constant dense<0.000000e+00> : vector<16xf32>
    %150 = vector.multi_reduction <add>, %149, %cst_67 [1] : vector<16x16xf32> to vector<16xf32>
    %151 = vector.shape_cast %150 : vector<16xf32> to vector<16x1xf32>
    %cst_68 = arith.constant dense<0.000000e+00> : vector<1xf32>
    %152 = vector.multi_reduction <add>, %151, %cst_68 [0] : vector<16x1xf32> to vector<1xf32>
    %153 = vector.shape_cast %152 : vector<1xf32> to vector<1x1xf32>
    %154 = vector.broadcast %153 : vector<1x1xf32> to vector<1x16xf32>
    %155 = arith.mulf %154, %16 : vector<1x16xf32>
    %156 = arith.addf %146, %155 : vector<1x16xf32>
    %157 = vector.extract_strided_slice %6 {offsets = [2, 0, 0], sizes = [1, 16, 16], strides = [1, 1, 1]} : vector<16x16x16xf32> to vector<1x16x16xf32>
    %158 = vector.shape_cast %157 : vector<1x16x16xf32> to vector<16x16xf32>
    %159 = arith.mulf %135, %158 : vector<16x16xf32>
    %cst_69 = arith.constant dense<0.000000e+00> : vector<16xf32>
    %160 = vector.multi_reduction <add>, %159, %cst_69 [1] : vector<16x16xf32> to vector<16xf32>
    %161 = vector.shape_cast %160 : vector<16xf32> to vector<16x1xf32>
    %cst_70 = arith.constant dense<0.000000e+00> : vector<1xf32>
    %162 = vector.multi_reduction <add>, %161, %cst_70 [0] : vector<16x1xf32> to vector<1xf32>
    %163 = vector.shape_cast %162 : vector<1xf32> to vector<1x1xf32>
    %164 = vector.broadcast %163 : vector<1x1xf32> to vector<1x16xf32>
    %165 = arith.mulf %164, %20 : vector<1x16xf32>
    %166 = arith.addf %156, %165 : vector<1x16xf32>
    %167 = vector.extract_strided_slice %6 {offsets = [3, 0, 0], sizes = [1, 16, 16], strides = [1, 1, 1]} : vector<16x16x16xf32> to vector<1x16x16xf32>
    %168 = vector.shape_cast %167 : vector<1x16x16xf32> to vector<16x16xf32>
    %169 = arith.mulf %135, %168 : vector<16x16xf32>
    %cst_71 = arith.constant dense<0.000000e+00> : vector<16xf32>
    %170 = vector.multi_reduction <add>, %169, %cst_71 [1] : vector<16x16xf32> to vector<16xf32>
    %171 = vector.shape_cast %170 : vector<16xf32> to vector<16x1xf32>
    %cst_72 = arith.constant dense<0.000000e+00> : vector<1xf32>
    %172 = vector.multi_reduction <add>, %171, %cst_72 [0] : vector<16x1xf32> to vector<1xf32>
    %173 = vector.shape_cast %172 : vector<1xf32> to vector<1x1xf32>
    %174 = vector.broadcast %173 : vector<1x1xf32> to vector<1x16xf32>
    %175 = arith.mulf %174, %24 : vector<1x16xf32>
    %176 = arith.addf %166, %175 : vector<1x16xf32>
    %177 = vector.extract_strided_slice %6 {offsets = [4, 0, 0], sizes = [1, 16, 16], strides = [1, 1, 1]} : vector<16x16x16xf32> to vector<1x16x16xf32>
    %178 = vector.shape_cast %177 : vector<1x16x16xf32> to vector<16x16xf32>
    %179 = arith.mulf %135, %178 : vector<16x16xf32>
    %cst_73 = arith.constant dense<0.000000e+00> : vector<16xf32>
    %180 = vector.multi_reduction <add>, %179, %cst_73 [1] : vector<16x16xf32> to vector<16xf32>
    %181 = vector.shape_cast %180 : vector<16xf32> to vector<16x1xf32>
    %cst_74 = arith.constant dense<0.000000e+00> : vector<1xf32>
    %182 = vector.multi_reduction <add>, %181, %cst_74 [0] : vector<16x1xf32> to vector<1xf32>
    %183 = vector.shape_cast %182 : vector<1xf32> to vector<1x1xf32>
    %184 = vector.broadcast %183 : vector<1x1xf32> to vector<1x16xf32>
    %185 = arith.mulf %184, %28 : vector<1x16xf32>
    %186 = arith.addf %176, %185 : vector<1x16xf32>
    %187 = vector.extract_strided_slice %6 {offsets = [5, 0, 0], sizes = [1, 16, 16], strides = [1, 1, 1]} : vector<16x16x16xf32> to vector<1x16x16xf32>
    %188 = vector.shape_cast %187 : vector<1x16x16xf32> to vector<16x16xf32>
    %189 = arith.mulf %135, %188 : vector<16x16xf32>
    %cst_75 = arith.constant dense<0.000000e+00> : vector<16xf32>
    %190 = vector.multi_reduction <add>, %189, %cst_75 [1] : vector<16x16xf32> to vector<16xf32>
    %191 = vector.shape_cast %190 : vector<16xf32> to vector<16x1xf32>
    %cst_76 = arith.constant dense<0.000000e+00> : vector<1xf32>
    %192 = vector.multi_reduction <add>, %191, %cst_76 [0] : vector<16x1xf32> to vector<1xf32>
    %193 = vector.shape_cast %192 : vector<1xf32> to vector<1x1xf32>
    %194 = vector.broadcast %193 : vector<1x1xf32> to vector<1x16xf32>
    %195 = arith.mulf %194, %32 : vector<1x16xf32>
    %196 = arith.addf %186, %195 : vector<1x16xf32>
    %197 = vector.extract_strided_slice %6 {offsets = [6, 0, 0], sizes = [1, 16, 16], strides = [1, 1, 1]} : vector<16x16x16xf32> to vector<1x16x16xf32>
    %198 = vector.shape_cast %197 : vector<1x16x16xf32> to vector<16x16xf32>
    %199 = arith.mulf %135, %198 : vector<16x16xf32>
    %cst_77 = arith.constant dense<0.000000e+00> : vector<16xf32>
    %200 = vector.multi_reduction <add>, %199, %cst_77 [1] : vector<16x16xf32> to vector<16xf32>
    %201 = vector.shape_cast %200 : vector<16xf32> to vector<16x1xf32>
    %cst_78 = arith.constant dense<0.000000e+00> : vector<1xf32>
    %202 = vector.multi_reduction <add>, %201, %cst_78 [0] : vector<16x1xf32> to vector<1xf32>
    %203 = vector.shape_cast %202 : vector<1xf32> to vector<1x1xf32>
    %204 = vector.broadcast %203 : vector<1x1xf32> to vector<1x16xf32>
    %205 = arith.mulf %204, %36 : vector<1x16xf32>
    %206 = arith.addf %196, %205 : vector<1x16xf32>
    %207 = vector.extract_strided_slice %6 {offsets = [7, 0, 0], sizes = [1, 16, 16], strides = [1, 1, 1]} : vector<16x16x16xf32> to vector<1x16x16xf32>
    %208 = vector.shape_cast %207 : vector<1x16x16xf32> to vector<16x16xf32>
    %209 = arith.mulf %135, %208 : vector<16x16xf32>
    %cst_79 = arith.constant dense<0.000000e+00> : vector<16xf32>
    %210 = vector.multi_reduction <add>, %209, %cst_79 [1] : vector<16x16xf32> to vector<16xf32>
    %211 = vector.shape_cast %210 : vector<16xf32> to vector<16x1xf32>
    %cst_80 = arith.constant dense<0.000000e+00> : vector<1xf32>
    %212 = vector.multi_reduction <add>, %211, %cst_80 [0] : vector<16x1xf32> to vector<1xf32>
    %213 = vector.shape_cast %212 : vector<1xf32> to vector<1x1xf32>
    %214 = vector.broadcast %213 : vector<1x1xf32> to vector<1x16xf32>
    %215 = arith.mulf %214, %40 : vector<1x16xf32>
    %216 = arith.addf %206, %215 : vector<1x16xf32>
    %217 = vector.extract_strided_slice %6 {offsets = [8, 0, 0], sizes = [1, 16, 16], strides = [1, 1, 1]} : vector<16x16x16xf32> to vector<1x16x16xf32>
    %218 = vector.shape_cast %217 : vector<1x16x16xf32> to vector<16x16xf32>
    %219 = arith.mulf %135, %218 : vector<16x16xf32>
    %cst_81 = arith.constant dense<0.000000e+00> : vector<16xf32>
    %220 = vector.multi_reduction <add>, %219, %cst_81 [1] : vector<16x16xf32> to vector<16xf32>
    %221 = vector.shape_cast %220 : vector<16xf32> to vector<16x1xf32>
    %cst_82 = arith.constant dense<0.000000e+00> : vector<1xf32>
    %222 = vector.multi_reduction <add>, %221, %cst_82 [0] : vector<16x1xf32> to vector<1xf32>
    %223 = vector.shape_cast %222 : vector<1xf32> to vector<1x1xf32>
    %224 = vector.broadcast %223 : vector<1x1xf32> to vector<1x16xf32>
    %225 = arith.mulf %224, %44 : vector<1x16xf32>
    %226 = arith.addf %216, %225 : vector<1x16xf32>
    %227 = vector.extract_strided_slice %6 {offsets = [9, 0, 0], sizes = [1, 16, 16], strides = [1, 1, 1]} : vector<16x16x16xf32> to vector<1x16x16xf32>
    %228 = vector.shape_cast %227 : vector<1x16x16xf32> to vector<16x16xf32>
    %229 = arith.mulf %135, %228 : vector<16x16xf32>
    %cst_83 = arith.constant dense<0.000000e+00> : vector<16xf32>
    %230 = vector.multi_reduction <add>, %229, %cst_83 [1] : vector<16x16xf32> to vector<16xf32>
    %231 = vector.shape_cast %230 : vector<16xf32> to vector<16x1xf32>
    %cst_84 = arith.constant dense<0.000000e+00> : vector<1xf32>
    %232 = vector.multi_reduction <add>, %231, %cst_84 [0] : vector<16x1xf32> to vector<1xf32>
    %233 = vector.shape_cast %232 : vector<1xf32> to vector<1x1xf32>
    %234 = vector.broadcast %233 : vector<1x1xf32> to vector<1x16xf32>
    %235 = arith.mulf %234, %48 : vector<1x16xf32>
    %236 = arith.addf %226, %235 : vector<1x16xf32>
    %237 = vector.extract_strided_slice %6 {offsets = [10, 0, 0], sizes = [1, 16, 16], strides = [1, 1, 1]} : vector<16x16x16xf32> to vector<1x16x16xf32>
    %238 = vector.shape_cast %237 : vector<1x16x16xf32> to vector<16x16xf32>
    %239 = arith.mulf %135, %238 : vector<16x16xf32>
    %cst_85 = arith.constant dense<0.000000e+00> : vector<16xf32>
    %240 = vector.multi_reduction <add>, %239, %cst_85 [1] : vector<16x16xf32> to vector<16xf32>
    %241 = vector.shape_cast %240 : vector<16xf32> to vector<16x1xf32>
    %cst_86 = arith.constant dense<0.000000e+00> : vector<1xf32>
    %242 = vector.multi_reduction <add>, %241, %cst_86 [0] : vector<16x1xf32> to vector<1xf32>
    %243 = vector.shape_cast %242 : vector<1xf32> to vector<1x1xf32>
    %244 = vector.broadcast %243 : vector<1x1xf32> to vector<1x16xf32>
    %245 = arith.mulf %244, %52 : vector<1x16xf32>
    %246 = arith.addf %236, %245 : vector<1x16xf32>
    %247 = vector.extract_strided_slice %6 {offsets = [11, 0, 0], sizes = [1, 16, 16], strides = [1, 1, 1]} : vector<16x16x16xf32> to vector<1x16x16xf32>
    %248 = vector.shape_cast %247 : vector<1x16x16xf32> to vector<16x16xf32>
    %249 = arith.mulf %135, %248 : vector<16x16xf32>
    %cst_87 = arith.constant dense<0.000000e+00> : vector<16xf32>
    %250 = vector.multi_reduction <add>, %249, %cst_87 [1] : vector<16x16xf32> to vector<16xf32>
    %251 = vector.shape_cast %250 : vector<16xf32> to vector<16x1xf32>
    %cst_88 = arith.constant dense<0.000000e+00> : vector<1xf32>
    %252 = vector.multi_reduction <add>, %251, %cst_88 [0] : vector<16x1xf32> to vector<1xf32>
    %253 = vector.shape_cast %252 : vector<1xf32> to vector<1x1xf32>
    %254 = vector.broadcast %253 : vector<1x1xf32> to vector<1x16xf32>
    %255 = arith.mulf %254, %56 : vector<1x16xf32>
    %256 = arith.addf %246, %255 : vector<1x16xf32>
    %257 = vector.extract_strided_slice %6 {offsets = [12, 0, 0], sizes = [1, 16, 16], strides = [1, 1, 1]} : vector<16x16x16xf32> to vector<1x16x16xf32>
    %258 = vector.shape_cast %257 : vector<1x16x16xf32> to vector<16x16xf32>
    %259 = arith.mulf %135, %258 : vector<16x16xf32>
    %cst_89 = arith.constant dense<0.000000e+00> : vector<16xf32>
    %260 = vector.multi_reduction <add>, %259, %cst_89 [1] : vector<16x16xf32> to vector<16xf32>
    %261 = vector.shape_cast %260 : vector<16xf32> to vector<16x1xf32>
    %cst_90 = arith.constant dense<0.000000e+00> : vector<1xf32>
    %262 = vector.multi_reduction <add>, %261, %cst_90 [0] : vector<16x1xf32> to vector<1xf32>
    %263 = vector.shape_cast %262 : vector<1xf32> to vector<1x1xf32>
    %264 = vector.broadcast %263 : vector<1x1xf32> to vector<1x16xf32>
    %265 = arith.mulf %264, %60 : vector<1x16xf32>
    %266 = arith.addf %256, %265 : vector<1x16xf32>
    %267 = vector.extract_strided_slice %6 {offsets = [13, 0, 0], sizes = [1, 16, 16], strides = [1, 1, 1]} : vector<16x16x16xf32> to vector<1x16x16xf32>
    %268 = vector.shape_cast %267 : vector<1x16x16xf32> to vector<16x16xf32>
    %269 = arith.mulf %135, %268 : vector<16x16xf32>
    %cst_91 = arith.constant dense<0.000000e+00> : vector<16xf32>
    %270 = vector.multi_reduction <add>, %269, %cst_91 [1] : vector<16x16xf32> to vector<16xf32>
    %271 = vector.shape_cast %270 : vector<16xf32> to vector<16x1xf32>
    %cst_92 = arith.constant dense<0.000000e+00> : vector<1xf32>
    %272 = vector.multi_reduction <add>, %271, %cst_92 [0] : vector<16x1xf32> to vector<1xf32>
    %273 = vector.shape_cast %272 : vector<1xf32> to vector<1x1xf32>
    %274 = vector.broadcast %273 : vector<1x1xf32> to vector<1x16xf32>
    %275 = arith.mulf %274, %64 : vector<1x16xf32>
    %276 = arith.addf %266, %275 : vector<1x16xf32>
    %277 = vector.extract_strided_slice %6 {offsets = [14, 0, 0], sizes = [1, 16, 16], strides = [1, 1, 1]} : vector<16x16x16xf32> to vector<1x16x16xf32>
    %278 = vector.shape_cast %277 : vector<1x16x16xf32> to vector<16x16xf32>
    %279 = arith.mulf %135, %278 : vector<16x16xf32>
    %cst_93 = arith.constant dense<0.000000e+00> : vector<16xf32>
    %280 = vector.multi_reduction <add>, %279, %cst_93 [1] : vector<16x16xf32> to vector<16xf32>
    %281 = vector.shape_cast %280 : vector<16xf32> to vector<16x1xf32>
    %cst_94 = arith.constant dense<0.000000e+00> : vector<1xf32>
    %282 = vector.multi_reduction <add>, %281, %cst_94 [0] : vector<16x1xf32> to vector<1xf32>
    %283 = vector.shape_cast %282 : vector<1xf32> to vector<1x1xf32>
    %284 = vector.broadcast %283 : vector<1x1xf32> to vector<1x16xf32>
    %285 = arith.mulf %284, %68 : vector<1x16xf32>
    %286 = arith.addf %276, %285 : vector<1x16xf32>
    %287 = vector.extract_strided_slice %6 {offsets = [15, 0, 0], sizes = [1, 16, 16], strides = [1, 1, 1]} : vector<16x16x16xf32> to vector<1x16x16xf32>
    %288 = vector.shape_cast %287 : vector<1x16x16xf32> to vector<16x16xf32>
    %289 = arith.mulf %135, %288 : vector<16x16xf32>
    %cst_95 = arith.constant dense<0.000000e+00> : vector<16xf32>
    %290 = vector.multi_reduction <add>, %289, %cst_95 [1] : vector<16x16xf32> to vector<16xf32>
    %291 = vector.shape_cast %290 : vector<16xf32> to vector<16x1xf32>
    %cst_96 = arith.constant dense<0.000000e+00> : vector<1xf32>
    %292 = vector.multi_reduction <add>, %291, %cst_96 [0] : vector<16x1xf32> to vector<1xf32>
    %293 = vector.shape_cast %292 : vector<1xf32> to vector<1x1xf32>
    %294 = vector.broadcast %293 : vector<1x1xf32> to vector<1x16xf32>
    %295 = arith.mulf %294, %72 : vector<1x16xf32>
    %296 = arith.addf %286, %295 : vector<1x16xf32>
    %cst_97 = arith.constant dense<0xFF800000> : vector<1xf32>
    %297 = vector.multi_reduction <maximumf>, %296, %cst_97 [1] : vector<1x16xf32> to vector<1xf32>
    %298 = vector.shape_cast %297 : vector<1xf32> to vector<1x1xf32>
    %299 = vector.broadcast %298 : vector<1x1xf32> to vector<1x16xf32>
    %300 = arith.cmpf oge, %296, %299 : vector<1x16xf32>
    %cst_98 = arith.constant 1.600000e+01 : f32
    %301 = vector.broadcast %cst_98 : f32 to vector<1x16xf32>
    %302 = arith.select %300, %8, %301 : vector<1x16xi1>, vector<1x16xf32>
    %cst_99 = arith.constant dense<0x7F800000> : vector<1xf32>
    %303 = vector.multi_reduction <minimumf>, %302, %cst_99 [1] : vector<1x16xf32> to vector<1xf32>
    %304 = vector.shape_cast %303 : vector<1xf32> to vector<1x1xf32>
    %305 = vector.broadcast %304 : vector<1x1xf32> to vector<1x16xf32>
    %306 = arith.cmpf oeq, %8, %305 : vector<1x16xf32>
    %cst_100 = arith.constant -1.000000e+30 : f32
    %307 = vector.broadcast %cst_100 : f32 to vector<1x16xf32>
    %308 = arith.select %306, %307, %296 : vector<1x16xi1>, vector<1x16xf32>
    %cst_101 = arith.constant dense<0xFF800000> : vector<1xf32>
    %309 = vector.multi_reduction <maximumf>, %308, %cst_101 [1] : vector<1x16xf32> to vector<1xf32>
    %310 = vector.shape_cast %309 : vector<1xf32> to vector<1x1xf32>
    %311 = vector.broadcast %310 : vector<1x1xf32> to vector<1x16xf32>
    %312 = arith.cmpf oge, %308, %311 : vector<1x16xf32>
    %cst_102 = arith.constant 1.600000e+01 : f32
    %313 = vector.broadcast %cst_102 : f32 to vector<1x16xf32>
    %314 = arith.select %312, %8, %313 : vector<1x16xi1>, vector<1x16xf32>
    %cst_103 = arith.constant dense<0x7F800000> : vector<1xf32>
    %315 = vector.multi_reduction <minimumf>, %314, %cst_103 [1] : vector<1x16xf32> to vector<1xf32>
    %316 = vector.shape_cast %315 : vector<1xf32> to vector<1x1xf32>
    %317 = arith.subf %298, %298 : vector<1x1xf32>
    %318 = math.exp %317 : vector<1x1xf32>
    %319 = arith.subf %310, %298 : vector<1x1xf32>
    %320 = math.exp %319 : vector<1x1xf32>
    %321 = arith.addf %318, %320 : vector<1x1xf32>
    %cst_104 = arith.constant 1.000000e+00 : f32
    %322 = vector.broadcast %cst_104 : f32 to vector<1x1xf32>
    %323 = arith.divf %322, %321 : vector<1x1xf32>
    %cst_105 = arith.constant 0.000000e+00 : f32
    %324 = vector.broadcast %cst_105 : f32 to vector<16x16xf32>
    %325 = vector.broadcast %304 : vector<1x1xf32> to vector<16x16xf32>
    %326 = arith.addf %74, %325 : vector<16x16xf32>
    %cst_106 = arith.constant 1.600000e+01 : f32
    %327 = vector.broadcast %cst_106 : f32 to vector<16x16xf32>
    %328 = arith.cmpf oge, %326, %327 : vector<16x16xf32>
    %cst_107 = arith.constant 1.600000e+01 : f32
    %329 = vector.broadcast %cst_107 : f32 to vector<16x16xf32>
    %330 = arith.subf %326, %329 : vector<16x16xf32>
    %331 = arith.select %328, %330, %326 : vector<16x16xi1>, vector<16x16xf32>
    %332 = arith.mulf %318, %323 : vector<1x1xf32>
    %333 = arith.cmpf oeq, %76, %331 : vector<16x16xf32>
    %334 = arith.extui %333 : vector<16x16xi1> to vector<16x16xi32>
    %335 = arith.sitofp %334 : vector<16x16xi32> to vector<16x16xf32>
    %336 = vector.broadcast %332 : vector<1x1xf32> to vector<16x16xf32>
    %337 = arith.mulf %336, %335 : vector<16x16xf32>
    %338 = arith.addf %324, %337 : vector<16x16xf32>
    %339 = vector.broadcast %316 : vector<1x1xf32> to vector<16x16xf32>
    %340 = arith.addf %74, %339 : vector<16x16xf32>
    %cst_108 = arith.constant 1.600000e+01 : f32
    %341 = vector.broadcast %cst_108 : f32 to vector<16x16xf32>
    %342 = arith.cmpf oge, %340, %341 : vector<16x16xf32>
    %cst_109 = arith.constant 1.600000e+01 : f32
    %343 = vector.broadcast %cst_109 : f32 to vector<16x16xf32>
    %344 = arith.subf %340, %343 : vector<16x16xf32>
    %345 = arith.select %342, %344, %340 : vector<16x16xi1>, vector<16x16xf32>
    %346 = arith.mulf %320, %323 : vector<1x1xf32>
    %347 = arith.cmpf oeq, %76, %345 : vector<16x16xf32>
    %348 = arith.extui %347 : vector<16x16xi1> to vector<16x16xi32>
    %349 = arith.sitofp %348 : vector<16x16xi32> to vector<16x16xf32>
    %350 = vector.broadcast %346 : vector<1x1xf32> to vector<16x16xf32>
    %351 = arith.mulf %350, %349 : vector<16x16xf32>
    %352 = arith.addf %338, %351 : vector<16x16xf32>
    %cst_110 = arith.constant dense<0.000000e+00> : vector<16x32xf32>
    %353 = tpu.matmul %352, %134, %cst_110 {dimension_numbers = #tpu.dot_dimension_numbers<[1], [0], [0], [1], [0, 0, 1, 1], [], []>} : vector<16x16xf32>, vector<16x32xf32>, vector<16x32xf32> -> vector<16x32xf32>
    %cst_111 = arith.constant dense<0.000000e+00> : vector<16x32xf32>
    %354 = tpu.matmul %353, %125, %cst_111 {dimension_numbers = #tpu.dot_dimension_numbers<[1], [0], [0], [1], [0, 0, 1, 1], [], []>} : vector<16x32xf32>, vector<32x32xf32>, vector<16x32xf32> -> vector<16x32xf32>
    %355 = vector.broadcast %126 : vector<1x32xf32> to vector<16x32xf32>
    %356 = arith.addf %354, %355 : vector<16x32xf32>
    %357 = arith.addf %108, %356 : vector<16x32xf32>
    %cst_112 = arith.constant dense<0.000000e+00> : vector<16x32xf32>
    %358 = tpu.matmul %2, %357, %cst_112 {dimension_numbers = #tpu.dot_dimension_numbers<[1], [0], [0], [1], [0, 0, 1, 1], [], []>} : vector<16x16xf32>, vector<16x32xf32>, vector<16x32xf32> -> vector<16x32xf32>
    %359 = arith.subf %357, %358 : vector<16x32xf32>
    %cst_113 = arith.constant dense<0.000000e+00> : vector<16x32xf32>
    %360 = tpu.matmul %359, %127, %cst_113 {dimension_numbers = #tpu.dot_dimension_numbers<[1], [0], [0], [1], [0, 0, 1, 1], [], []>} : vector<16x32xf32>, vector<32x32xf32>, vector<16x32xf32> -> vector<16x32xf32>
    %cst_114 = arith.constant 5.000000e-01 : f32
    %361 = vector.broadcast %cst_114 : f32 to vector<16x32xf32>
    %362 = arith.mulf %361, %360 : vector<16x32xf32>
    %cst_115 = arith.constant 0.707106769 : f32
    %363 = vector.broadcast %cst_115 : f32 to vector<16x32xf32>
    %364 = arith.mulf %360, %363 : vector<16x32xf32>
    %365 = math.absf %364 : vector<16x32xf32>
    %cst_116 = arith.constant 0.327591091 : f32
    %366 = vector.broadcast %cst_116 : f32 to vector<16x32xf32>
    %367 = arith.mulf %366, %365 : vector<16x32xf32>
    %cst_117 = arith.constant 1.000000e+00 : f32
    %368 = vector.broadcast %cst_117 : f32 to vector<16x32xf32>
    %369 = arith.addf %368, %367 : vector<16x32xf32>
    %cst_118 = arith.constant 1.000000e+00 : f32
    %370 = vector.broadcast %cst_118 : f32 to vector<16x32xf32>
    %371 = arith.divf %370, %369 : vector<16x32xf32>
    %cst_119 = arith.constant 1.06140542 : f32
    %372 = vector.broadcast %cst_119 : f32 to vector<16x32xf32>
    %373 = arith.mulf %372, %371 : vector<16x32xf32>
    %cst_120 = arith.constant -1.45315206 : f32
    %374 = vector.broadcast %cst_120 : f32 to vector<16x32xf32>
    %375 = arith.addf %373, %374 : vector<16x32xf32>
    %376 = arith.mulf %375, %371 : vector<16x32xf32>
    %cst_121 = arith.constant 1.42141378 : f32
    %377 = vector.broadcast %cst_121 : f32 to vector<16x32xf32>
    %378 = arith.addf %376, %377 : vector<16x32xf32>
    %379 = arith.mulf %378, %371 : vector<16x32xf32>
    %cst_122 = arith.constant -0.284496725 : f32
    %380 = vector.broadcast %cst_122 : f32 to vector<16x32xf32>
    %381 = arith.addf %379, %380 : vector<16x32xf32>
    %382 = arith.mulf %381, %371 : vector<16x32xf32>
    %cst_123 = arith.constant 0.254829586 : f32
    %383 = vector.broadcast %cst_123 : f32 to vector<16x32xf32>
    %384 = arith.addf %382, %383 : vector<16x32xf32>
    %385 = arith.mulf %384, %371 : vector<16x32xf32>
    %cst_124 = arith.constant 0.000000e+00 : f32
    %386 = vector.broadcast %cst_124 : f32 to vector<16x32xf32>
    %387 = arith.subf %386, %365 : vector<16x32xf32>
    %388 = arith.mulf %387, %365 : vector<16x32xf32>
    %389 = math.exp %388 : vector<16x32xf32>
    %390 = arith.mulf %385, %389 : vector<16x32xf32>
    %cst_125 = arith.constant 1.000000e+00 : f32
    %391 = vector.broadcast %cst_125 : f32 to vector<16x32xf32>
    %392 = arith.subf %391, %390 : vector<16x32xf32>
    %cst_126 = arith.constant 0.000000e+00 : f32
    %393 = vector.broadcast %cst_126 : f32 to vector<16x32xf32>
    %394 = arith.cmpf oge, %364, %393 : vector<16x32xf32>
    %cst_127 = arith.constant 0.000000e+00 : f32
    %395 = vector.broadcast %cst_127 : f32 to vector<16x32xf32>
    %396 = arith.subf %395, %392 : vector<16x32xf32>
    %397 = arith.select %394, %392, %396 : vector<16x32xi1>, vector<16x32xf32>
    %cst_128 = arith.constant 1.000000e+00 : f32
    %398 = vector.broadcast %cst_128 : f32 to vector<16x32xf32>
    %399 = arith.addf %398, %397 : vector<16x32xf32>
    %400 = arith.mulf %362, %399 : vector<16x32xf32>
    %cst_129 = arith.constant dense<0.000000e+00> : vector<16x32xf32>
    %401 = tpu.matmul %400, %128, %cst_129 {dimension_numbers = #tpu.dot_dimension_numbers<[1], [0], [0], [1], [0, 0, 1, 1], [], []>} : vector<16x32xf32>, vector<32x32xf32>, vector<16x32xf32> -> vector<16x32xf32>
    %402 = arith.addf %359, %401 : vector<16x32xf32>
    %cst_130 = arith.constant dense<0.000000e+00> : vector<16x32xf32>
    %403 = tpu.matmul %2, %402, %cst_130 {dimension_numbers = #tpu.dot_dimension_numbers<[1], [0], [0], [1], [0, 0, 1, 1], [], []>} : vector<16x16xf32>, vector<16x32xf32>, vector<16x32xf32> -> vector<16x32xf32>
    %404 = arith.subf %402, %403 : vector<16x32xf32>
    %c0_131 = arith.constant 0 : index
    %c0_132 = arith.constant 0 : index
    %405 = vector.load %arg15[%c0_131, %c0_132] : memref<1x32xf32, #tpu.memory_space<vmem>>, vector<1x32xf32>
    %c0_133 = arith.constant 0 : index
    %c0_134 = arith.constant 0 : index
    %406 = vector.load %arg16[%c0_133, %c0_134] : memref<1x32xf32, #tpu.memory_space<vmem>>, vector<1x32xf32>
    %cst_135 = arith.constant dense<0.000000e+00> : vector<16xf32>
    %407 = vector.multi_reduction <add>, %404, %cst_135 [1] : vector<16x32xf32> to vector<16xf32>
    %408 = vector.shape_cast %407 : vector<16xf32> to vector<16x1xf32>
    %cst_136 = arith.constant 3.200000e+01 : f32
    %409 = vector.broadcast %cst_136 : f32 to vector<16x1xf32>
    %410 = arith.divf %408, %409 : vector<16x1xf32>
    %411 = vector.broadcast %410 : vector<16x1xf32> to vector<16x32xf32>
    %412 = arith.subf %404, %411 : vector<16x32xf32>
    %413 = arith.mulf %412, %412 : vector<16x32xf32>
    %cst_137 = arith.constant dense<0.000000e+00> : vector<16xf32>
    %414 = vector.multi_reduction <add>, %413, %cst_137 [1] : vector<16x32xf32> to vector<16xf32>
    %415 = vector.shape_cast %414 : vector<16xf32> to vector<16x1xf32>
    %cst_138 = arith.constant 3.200000e+01 : f32
    %416 = vector.broadcast %cst_138 : f32 to vector<16x1xf32>
    %417 = arith.divf %415, %416 : vector<16x1xf32>
    %cst_139 = arith.constant 9.99999974E-6 : f32
    %418 = vector.broadcast %cst_139 : f32 to vector<16x1xf32>
    %419 = arith.addf %417, %418 : vector<16x1xf32>
    %420 = math.rsqrt %419 : vector<16x1xf32>
    %421 = vector.broadcast %420 : vector<16x1xf32> to vector<16x32xf32>
    %422 = arith.mulf %412, %421 : vector<16x32xf32>
    %423 = vector.broadcast %405 : vector<1x32xf32> to vector<16x32xf32>
    %424 = arith.mulf %422, %423 : vector<16x32xf32>
    %425 = vector.broadcast %406 : vector<1x32xf32> to vector<16x32xf32>
    %426 = arith.addf %424, %425 : vector<16x32xf32>
    %cst_140 = arith.constant dense<0.000000e+00> : vector<32xf32>
    %427 = vector.multi_reduction <add>, %426, %cst_140 [0] : vector<16x32xf32> to vector<32xf32>
    %428 = vector.shape_cast %427 : vector<32xf32> to vector<1x32xf32>
    %cst_141 = arith.constant 1.600000e+01 : f32
    %429 = vector.broadcast %cst_141 : f32 to vector<1x32xf32>
    %430 = arith.divf %428, %429 : vector<1x32xf32>
    %431 = vector.broadcast %430 : vector<1x32xf32> to vector<16x32xf32>
    %432 = arith.subf %426, %431 : vector<16x32xf32>
    %c0_142 = arith.constant 0 : index
    %c0_143 = arith.constant 0 : index
    %433 = vector.load %arg17[%c0_142, %c0_143] : memref<32x96xf32, #tpu.memory_space<vmem>>, vector<32x96xf32>
    %c0_144 = arith.constant 0 : index
    %c0_145 = arith.constant 0 : index
    %434 = vector.load %arg18[%c0_144, %c0_145] : memref<1x96xf32, #tpu.memory_space<vmem>>, vector<1x96xf32>
    %c0_146 = arith.constant 0 : index
    %c0_147 = arith.constant 0 : index
    %435 = vector.load %arg19[%c0_146, %c0_147] : memref<32x32xf32, #tpu.memory_space<vmem>>, vector<32x32xf32>
    %c0_148 = arith.constant 0 : index
    %c0_149 = arith.constant 0 : index
    %436 = vector.load %arg20[%c0_148, %c0_149] : memref<1x32xf32, #tpu.memory_space<vmem>>, vector<1x32xf32>
    %c0_150 = arith.constant 0 : index
    %c0_151 = arith.constant 0 : index
    %437 = vector.load %arg21[%c0_150, %c0_151] : memref<32x32xf32, #tpu.memory_space<vmem>>, vector<32x32xf32>
    %c0_152 = arith.constant 0 : index
    %c0_153 = arith.constant 0 : index
    %438 = vector.load %arg22[%c0_152, %c0_153] : memref<1x32xf32, #tpu.memory_space<vmem>>, vector<1x32xf32>
    %c0_154 = arith.constant 0 : index
    %c0_155 = arith.constant 0 : index
    %439 = vector.load %arg23[%c0_154, %c0_155] : memref<32x64xf32, #tpu.memory_space<vmem>>, vector<32x64xf32>
    %c0_156 = arith.constant 0 : index
    %c0_157 = arith.constant 0 : index
    %440 = vector.load %arg24[%c0_156, %c0_157] : memref<1x64xf32, #tpu.memory_space<vmem>>, vector<1x64xf32>
    %c0_158 = arith.constant 0 : index
    %c0_159 = arith.constant 0 : index
    %441 = vector.load %arg25[%c0_158, %c0_159] : memref<32x32xf32, #tpu.memory_space<vmem>>, vector<32x32xf32>
    %c0_160 = arith.constant 0 : index
    %c0_161 = arith.constant 0 : index
    %442 = vector.load %arg26[%c0_160, %c0_161] : memref<1x32xf32, #tpu.memory_space<vmem>>, vector<1x32xf32>
    %c0_162 = arith.constant 0 : index
    %c0_163 = arith.constant 0 : index
    %443 = vector.load %arg27[%c0_162, %c0_163] : memref<32x32xf32, #tpu.memory_space<vmem>>, vector<32x32xf32>
    %c0_164 = arith.constant 0 : index
    %c0_165 = arith.constant 0 : index
    %444 = vector.load %arg28[%c0_164, %c0_165] : memref<32x32xf32, #tpu.memory_space<vmem>>, vector<32x32xf32>
    %c0_166 = arith.constant 0 : index
    %c0_167 = arith.constant 0 : index
    %c0_168 = arith.constant 0 : index
    %445 = vector.load %arg29[%c0_166, %c0_167, %c0_168] : memref<3x32x6xf32, #tpu.memory_space<vmem>>, vector<3x32x6xf32>
    %cst_169 = arith.constant dense<0.000000e+00> : vector<16x96xf32>
    %446 = tpu.matmul %122, %433, %cst_169 {dimension_numbers = #tpu.dot_dimension_numbers<[1], [0], [0], [1], [0, 0, 1, 1], [], []>} : vector<16x32xf32>, vector<32x96xf32>, vector<16x96xf32> -> vector<16x96xf32>
    %447 = vector.broadcast %434 : vector<1x96xf32> to vector<16x96xf32>
    %448 = arith.addf %446, %447 : vector<16x96xf32>
    %449 = vector.extract_strided_slice %448 {offsets = [0, 0], sizes = [16, 32], strides = [1, 1]} : vector<16x96xf32> to vector<16x32xf32>
    %450 = vector.extract_strided_slice %448 {offsets = [0, 32], sizes = [16, 32], strides = [1, 1]} : vector<16x96xf32> to vector<16x32xf32>
    %451 = vector.extract_strided_slice %448 {offsets = [0, 64], sizes = [16, 32], strides = [1, 1]} : vector<16x96xf32> to vector<16x32xf32>
    "tpu.trace_start"() <{level = 10 : i32, message = "sd,ud->su"}> : () -> ()
    %cst_170 = arith.constant dense<0.000000e+00> : vector<16x16xf32>
    %452 = tpu.matmul %449, %450, %cst_170 {dimension_numbers = #tpu.dot_dimension_numbers<[1], [1], [0], [0], [0, 0, 1, 0], [], []>} : vector<16x32xf32>, vector<16x32xf32>, vector<16x16xf32> -> vector<16x16xf32>
    %cst_171 = arith.constant 0.000000e+00 : f32
    "tpu.trace_stop"() : () -> ()
    %453 = vector.broadcast %cst_171 : f32 to vector<1x16xf32>
    %454 = vector.extract_strided_slice %6 {offsets = [0, 0, 0], sizes = [1, 16, 16], strides = [1, 1, 1]} : vector<16x16x16xf32> to vector<1x16x16xf32>
    %455 = vector.shape_cast %454 : vector<1x16x16xf32> to vector<16x16xf32>
    %456 = arith.mulf %452, %455 : vector<16x16xf32>
    %cst_172 = arith.constant dense<0.000000e+00> : vector<16xf32>
    %457 = vector.multi_reduction <add>, %456, %cst_172 [1] : vector<16x16xf32> to vector<16xf32>
    %458 = vector.shape_cast %457 : vector<16xf32> to vector<16x1xf32>
    %cst_173 = arith.constant dense<0.000000e+00> : vector<1xf32>
    %459 = vector.multi_reduction <add>, %458, %cst_173 [0] : vector<16x1xf32> to vector<1xf32>
    %460 = vector.shape_cast %459 : vector<1xf32> to vector<1x1xf32>
    %461 = vector.broadcast %460 : vector<1x1xf32> to vector<1x16xf32>
    %462 = arith.mulf %461, %12 : vector<1x16xf32>
    %463 = arith.addf %453, %462 : vector<1x16xf32>
    %464 = vector.extract_strided_slice %6 {offsets = [1, 0, 0], sizes = [1, 16, 16], strides = [1, 1, 1]} : vector<16x16x16xf32> to vector<1x16x16xf32>
    %465 = vector.shape_cast %464 : vector<1x16x16xf32> to vector<16x16xf32>
    %466 = arith.mulf %452, %465 : vector<16x16xf32>
    %cst_174 = arith.constant dense<0.000000e+00> : vector<16xf32>
    %467 = vector.multi_reduction <add>, %466, %cst_174 [1] : vector<16x16xf32> to vector<16xf32>
    %468 = vector.shape_cast %467 : vector<16xf32> to vector<16x1xf32>
    %cst_175 = arith.constant dense<0.000000e+00> : vector<1xf32>
    %469 = vector.multi_reduction <add>, %468, %cst_175 [0] : vector<16x1xf32> to vector<1xf32>
    %470 = vector.shape_cast %469 : vector<1xf32> to vector<1x1xf32>
    %471 = vector.broadcast %470 : vector<1x1xf32> to vector<1x16xf32>
    %472 = arith.mulf %471, %16 : vector<1x16xf32>
    %473 = arith.addf %463, %472 : vector<1x16xf32>
    %474 = vector.extract_strided_slice %6 {offsets = [2, 0, 0], sizes = [1, 16, 16], strides = [1, 1, 1]} : vector<16x16x16xf32> to vector<1x16x16xf32>
    %475 = vector.shape_cast %474 : vector<1x16x16xf32> to vector<16x16xf32>
    %476 = arith.mulf %452, %475 : vector<16x16xf32>
    %cst_176 = arith.constant dense<0.000000e+00> : vector<16xf32>
    %477 = vector.multi_reduction <add>, %476, %cst_176 [1] : vector<16x16xf32> to vector<16xf32>
    %478 = vector.shape_cast %477 : vector<16xf32> to vector<16x1xf32>
    %cst_177 = arith.constant dense<0.000000e+00> : vector<1xf32>
    %479 = vector.multi_reduction <add>, %478, %cst_177 [0] : vector<16x1xf32> to vector<1xf32>
    %480 = vector.shape_cast %479 : vector<1xf32> to vector<1x1xf32>
    %481 = vector.broadcast %480 : vector<1x1xf32> to vector<1x16xf32>
    %482 = arith.mulf %481, %20 : vector<1x16xf32>
    %483 = arith.addf %473, %482 : vector<1x16xf32>
    %484 = vector.extract_strided_slice %6 {offsets = [3, 0, 0], sizes = [1, 16, 16], strides = [1, 1, 1]} : vector<16x16x16xf32> to vector<1x16x16xf32>
    %485 = vector.shape_cast %484 : vector<1x16x16xf32> to vector<16x16xf32>
    %486 = arith.mulf %452, %485 : vector<16x16xf32>
    %cst_178 = arith.constant dense<0.000000e+00> : vector<16xf32>
    %487 = vector.multi_reduction <add>, %486, %cst_178 [1] : vector<16x16xf32> to vector<16xf32>
    %488 = vector.shape_cast %487 : vector<16xf32> to vector<16x1xf32>
    %cst_179 = arith.constant dense<0.000000e+00> : vector<1xf32>
    %489 = vector.multi_reduction <add>, %488, %cst_179 [0] : vector<16x1xf32> to vector<1xf32>
    %490 = vector.shape_cast %489 : vector<1xf32> to vector<1x1xf32>
    %491 = vector.broadcast %490 : vector<1x1xf32> to vector<1x16xf32>
    %492 = arith.mulf %491, %24 : vector<1x16xf32>
    %493 = arith.addf %483, %492 : vector<1x16xf32>
    %494 = vector.extract_strided_slice %6 {offsets = [4, 0, 0], sizes = [1, 16, 16], strides = [1, 1, 1]} : vector<16x16x16xf32> to vector<1x16x16xf32>
    %495 = vector.shape_cast %494 : vector<1x16x16xf32> to vector<16x16xf32>
    %496 = arith.mulf %452, %495 : vector<16x16xf32>
    %cst_180 = arith.constant dense<0.000000e+00> : vector<16xf32>
    %497 = vector.multi_reduction <add>, %496, %cst_180 [1] : vector<16x16xf32> to vector<16xf32>
    %498 = vector.shape_cast %497 : vector<16xf32> to vector<16x1xf32>
    %cst_181 = arith.constant dense<0.000000e+00> : vector<1xf32>
    %499 = vector.multi_reduction <add>, %498, %cst_181 [0] : vector<16x1xf32> to vector<1xf32>
    %500 = vector.shape_cast %499 : vector<1xf32> to vector<1x1xf32>
    %501 = vector.broadcast %500 : vector<1x1xf32> to vector<1x16xf32>
    %502 = arith.mulf %501, %28 : vector<1x16xf32>
    %503 = arith.addf %493, %502 : vector<1x16xf32>
    %504 = vector.extract_strided_slice %6 {offsets = [5, 0, 0], sizes = [1, 16, 16], strides = [1, 1, 1]} : vector<16x16x16xf32> to vector<1x16x16xf32>
    %505 = vector.shape_cast %504 : vector<1x16x16xf32> to vector<16x16xf32>
    %506 = arith.mulf %452, %505 : vector<16x16xf32>
    %cst_182 = arith.constant dense<0.000000e+00> : vector<16xf32>
    %507 = vector.multi_reduction <add>, %506, %cst_182 [1] : vector<16x16xf32> to vector<16xf32>
    %508 = vector.shape_cast %507 : vector<16xf32> to vector<16x1xf32>
    %cst_183 = arith.constant dense<0.000000e+00> : vector<1xf32>
    %509 = vector.multi_reduction <add>, %508, %cst_183 [0] : vector<16x1xf32> to vector<1xf32>
    %510 = vector.shape_cast %509 : vector<1xf32> to vector<1x1xf32>
    %511 = vector.broadcast %510 : vector<1x1xf32> to vector<1x16xf32>
    %512 = arith.mulf %511, %32 : vector<1x16xf32>
    %513 = arith.addf %503, %512 : vector<1x16xf32>
    %514 = vector.extract_strided_slice %6 {offsets = [6, 0, 0], sizes = [1, 16, 16], strides = [1, 1, 1]} : vector<16x16x16xf32> to vector<1x16x16xf32>
    %515 = vector.shape_cast %514 : vector<1x16x16xf32> to vector<16x16xf32>
    %516 = arith.mulf %452, %515 : vector<16x16xf32>
    %cst_184 = arith.constant dense<0.000000e+00> : vector<16xf32>
    %517 = vector.multi_reduction <add>, %516, %cst_184 [1] : vector<16x16xf32> to vector<16xf32>
    %518 = vector.shape_cast %517 : vector<16xf32> to vector<16x1xf32>
    %cst_185 = arith.constant dense<0.000000e+00> : vector<1xf32>
    %519 = vector.multi_reduction <add>, %518, %cst_185 [0] : vector<16x1xf32> to vector<1xf32>
    %520 = vector.shape_cast %519 : vector<1xf32> to vector<1x1xf32>
    %521 = vector.broadcast %520 : vector<1x1xf32> to vector<1x16xf32>
    %522 = arith.mulf %521, %36 : vector<1x16xf32>
    %523 = arith.addf %513, %522 : vector<1x16xf32>
    %524 = vector.extract_strided_slice %6 {offsets = [7, 0, 0], sizes = [1, 16, 16], strides = [1, 1, 1]} : vector<16x16x16xf32> to vector<1x16x16xf32>
    %525 = vector.shape_cast %524 : vector<1x16x16xf32> to vector<16x16xf32>
    %526 = arith.mulf %452, %525 : vector<16x16xf32>
    %cst_186 = arith.constant dense<0.000000e+00> : vector<16xf32>
    %527 = vector.multi_reduction <add>, %526, %cst_186 [1] : vector<16x16xf32> to vector<16xf32>
    %528 = vector.shape_cast %527 : vector<16xf32> to vector<16x1xf32>
    %cst_187 = arith.constant dense<0.000000e+00> : vector<1xf32>
    %529 = vector.multi_reduction <add>, %528, %cst_187 [0] : vector<16x1xf32> to vector<1xf32>
    %530 = vector.shape_cast %529 : vector<1xf32> to vector<1x1xf32>
    %531 = vector.broadcast %530 : vector<1x1xf32> to vector<1x16xf32>
    %532 = arith.mulf %531, %40 : vector<1x16xf32>
    %533 = arith.addf %523, %532 : vector<1x16xf32>
    %534 = vector.extract_strided_slice %6 {offsets = [8, 0, 0], sizes = [1, 16, 16], strides = [1, 1, 1]} : vector<16x16x16xf32> to vector<1x16x16xf32>
    %535 = vector.shape_cast %534 : vector<1x16x16xf32> to vector<16x16xf32>
    %536 = arith.mulf %452, %535 : vector<16x16xf32>
    %cst_188 = arith.constant dense<0.000000e+00> : vector<16xf32>
    %537 = vector.multi_reduction <add>, %536, %cst_188 [1] : vector<16x16xf32> to vector<16xf32>
    %538 = vector.shape_cast %537 : vector<16xf32> to vector<16x1xf32>
    %cst_189 = arith.constant dense<0.000000e+00> : vector<1xf32>
    %539 = vector.multi_reduction <add>, %538, %cst_189 [0] : vector<16x1xf32> to vector<1xf32>
    %540 = vector.shape_cast %539 : vector<1xf32> to vector<1x1xf32>
    %541 = vector.broadcast %540 : vector<1x1xf32> to vector<1x16xf32>
    %542 = arith.mulf %541, %44 : vector<1x16xf32>
    %543 = arith.addf %533, %542 : vector<1x16xf32>
    %544 = vector.extract_strided_slice %6 {offsets = [9, 0, 0], sizes = [1, 16, 16], strides = [1, 1, 1]} : vector<16x16x16xf32> to vector<1x16x16xf32>
    %545 = vector.shape_cast %544 : vector<1x16x16xf32> to vector<16x16xf32>
    %546 = arith.mulf %452, %545 : vector<16x16xf32>
    %cst_190 = arith.constant dense<0.000000e+00> : vector<16xf32>
    %547 = vector.multi_reduction <add>, %546, %cst_190 [1] : vector<16x16xf32> to vector<16xf32>
    %548 = vector.shape_cast %547 : vector<16xf32> to vector<16x1xf32>
    %cst_191 = arith.constant dense<0.000000e+00> : vector<1xf32>
    %549 = vector.multi_reduction <add>, %548, %cst_191 [0] : vector<16x1xf32> to vector<1xf32>
    %550 = vector.shape_cast %549 : vector<1xf32> to vector<1x1xf32>
    %551 = vector.broadcast %550 : vector<1x1xf32> to vector<1x16xf32>
    %552 = arith.mulf %551, %48 : vector<1x16xf32>
    %553 = arith.addf %543, %552 : vector<1x16xf32>
    %554 = vector.extract_strided_slice %6 {offsets = [10, 0, 0], sizes = [1, 16, 16], strides = [1, 1, 1]} : vector<16x16x16xf32> to vector<1x16x16xf32>
    %555 = vector.shape_cast %554 : vector<1x16x16xf32> to vector<16x16xf32>
    %556 = arith.mulf %452, %555 : vector<16x16xf32>
    %cst_192 = arith.constant dense<0.000000e+00> : vector<16xf32>
    %557 = vector.multi_reduction <add>, %556, %cst_192 [1] : vector<16x16xf32> to vector<16xf32>
    %558 = vector.shape_cast %557 : vector<16xf32> to vector<16x1xf32>
    %cst_193 = arith.constant dense<0.000000e+00> : vector<1xf32>
    %559 = vector.multi_reduction <add>, %558, %cst_193 [0] : vector<16x1xf32> to vector<1xf32>
    %560 = vector.shape_cast %559 : vector<1xf32> to vector<1x1xf32>
    %561 = vector.broadcast %560 : vector<1x1xf32> to vector<1x16xf32>
    %562 = arith.mulf %561, %52 : vector<1x16xf32>
    %563 = arith.addf %553, %562 : vector<1x16xf32>
    %564 = vector.extract_strided_slice %6 {offsets = [11, 0, 0], sizes = [1, 16, 16], strides = [1, 1, 1]} : vector<16x16x16xf32> to vector<1x16x16xf32>
    %565 = vector.shape_cast %564 : vector<1x16x16xf32> to vector<16x16xf32>
    %566 = arith.mulf %452, %565 : vector<16x16xf32>
    %cst_194 = arith.constant dense<0.000000e+00> : vector<16xf32>
    %567 = vector.multi_reduction <add>, %566, %cst_194 [1] : vector<16x16xf32> to vector<16xf32>
    %568 = vector.shape_cast %567 : vector<16xf32> to vector<16x1xf32>
    %cst_195 = arith.constant dense<0.000000e+00> : vector<1xf32>
    %569 = vector.multi_reduction <add>, %568, %cst_195 [0] : vector<16x1xf32> to vector<1xf32>
    %570 = vector.shape_cast %569 : vector<1xf32> to vector<1x1xf32>
    %571 = vector.broadcast %570 : vector<1x1xf32> to vector<1x16xf32>
    %572 = arith.mulf %571, %56 : vector<1x16xf32>
    %573 = arith.addf %563, %572 : vector<1x16xf32>
    %574 = vector.extract_strided_slice %6 {offsets = [12, 0, 0], sizes = [1, 16, 16], strides = [1, 1, 1]} : vector<16x16x16xf32> to vector<1x16x16xf32>
    %575 = vector.shape_cast %574 : vector<1x16x16xf32> to vector<16x16xf32>
    %576 = arith.mulf %452, %575 : vector<16x16xf32>
    %cst_196 = arith.constant dense<0.000000e+00> : vector<16xf32>
    %577 = vector.multi_reduction <add>, %576, %cst_196 [1] : vector<16x16xf32> to vector<16xf32>
    %578 = vector.shape_cast %577 : vector<16xf32> to vector<16x1xf32>
    %cst_197 = arith.constant dense<0.000000e+00> : vector<1xf32>
    %579 = vector.multi_reduction <add>, %578, %cst_197 [0] : vector<16x1xf32> to vector<1xf32>
    %580 = vector.shape_cast %579 : vector<1xf32> to vector<1x1xf32>
    %581 = vector.broadcast %580 : vector<1x1xf32> to vector<1x16xf32>
    %582 = arith.mulf %581, %60 : vector<1x16xf32>
    %583 = arith.addf %573, %582 : vector<1x16xf32>
    %584 = vector.extract_strided_slice %6 {offsets = [13, 0, 0], sizes = [1, 16, 16], strides = [1, 1, 1]} : vector<16x16x16xf32> to vector<1x16x16xf32>
    %585 = vector.shape_cast %584 : vector<1x16x16xf32> to vector<16x16xf32>
    %586 = arith.mulf %452, %585 : vector<16x16xf32>
    %cst_198 = arith.constant dense<0.000000e+00> : vector<16xf32>
    %587 = vector.multi_reduction <add>, %586, %cst_198 [1] : vector<16x16xf32> to vector<16xf32>
    %588 = vector.shape_cast %587 : vector<16xf32> to vector<16x1xf32>
    %cst_199 = arith.constant dense<0.000000e+00> : vector<1xf32>
    %589 = vector.multi_reduction <add>, %588, %cst_199 [0] : vector<16x1xf32> to vector<1xf32>
    %590 = vector.shape_cast %589 : vector<1xf32> to vector<1x1xf32>
    %591 = vector.broadcast %590 : vector<1x1xf32> to vector<1x16xf32>
    %592 = arith.mulf %591, %64 : vector<1x16xf32>
    %593 = arith.addf %583, %592 : vector<1x16xf32>
    %594 = vector.extract_strided_slice %6 {offsets = [14, 0, 0], sizes = [1, 16, 16], strides = [1, 1, 1]} : vector<16x16x16xf32> to vector<1x16x16xf32>
    %595 = vector.shape_cast %594 : vector<1x16x16xf32> to vector<16x16xf32>
    %596 = arith.mulf %452, %595 : vector<16x16xf32>
    %cst_200 = arith.constant dense<0.000000e+00> : vector<16xf32>
    %597 = vector.multi_reduction <add>, %596, %cst_200 [1] : vector<16x16xf32> to vector<16xf32>
    %598 = vector.shape_cast %597 : vector<16xf32> to vector<16x1xf32>
    %cst_201 = arith.constant dense<0.000000e+00> : vector<1xf32>
    %599 = vector.multi_reduction <add>, %598, %cst_201 [0] : vector<16x1xf32> to vector<1xf32>
    %600 = vector.shape_cast %599 : vector<1xf32> to vector<1x1xf32>
    %601 = vector.broadcast %600 : vector<1x1xf32> to vector<1x16xf32>
    %602 = arith.mulf %601, %68 : vector<1x16xf32>
    %603 = arith.addf %593, %602 : vector<1x16xf32>
    %604 = vector.extract_strided_slice %6 {offsets = [15, 0, 0], sizes = [1, 16, 16], strides = [1, 1, 1]} : vector<16x16x16xf32> to vector<1x16x16xf32>
    %605 = vector.shape_cast %604 : vector<1x16x16xf32> to vector<16x16xf32>
    %606 = arith.mulf %452, %605 : vector<16x16xf32>
    %cst_202 = arith.constant dense<0.000000e+00> : vector<16xf32>
    %607 = vector.multi_reduction <add>, %606, %cst_202 [1] : vector<16x16xf32> to vector<16xf32>
    %608 = vector.shape_cast %607 : vector<16xf32> to vector<16x1xf32>
    %cst_203 = arith.constant dense<0.000000e+00> : vector<1xf32>
    %609 = vector.multi_reduction <add>, %608, %cst_203 [0] : vector<16x1xf32> to vector<1xf32>
    %610 = vector.shape_cast %609 : vector<1xf32> to vector<1x1xf32>
    %611 = vector.broadcast %610 : vector<1x1xf32> to vector<1x16xf32>
    %612 = arith.mulf %611, %72 : vector<1x16xf32>
    %613 = arith.addf %603, %612 : vector<1x16xf32>
    %cst_204 = arith.constant dense<0xFF800000> : vector<1xf32>
    %614 = vector.multi_reduction <maximumf>, %613, %cst_204 [1] : vector<1x16xf32> to vector<1xf32>
    %615 = vector.shape_cast %614 : vector<1xf32> to vector<1x1xf32>
    %616 = vector.broadcast %615 : vector<1x1xf32> to vector<1x16xf32>
    %617 = arith.cmpf oge, %613, %616 : vector<1x16xf32>
    %cst_205 = arith.constant 1.600000e+01 : f32
    %618 = vector.broadcast %cst_205 : f32 to vector<1x16xf32>
    %619 = arith.select %617, %8, %618 : vector<1x16xi1>, vector<1x16xf32>
    %cst_206 = arith.constant dense<0x7F800000> : vector<1xf32>
    %620 = vector.multi_reduction <minimumf>, %619, %cst_206 [1] : vector<1x16xf32> to vector<1xf32>
    %621 = vector.shape_cast %620 : vector<1xf32> to vector<1x1xf32>
    %622 = vector.broadcast %621 : vector<1x1xf32> to vector<1x16xf32>
    %623 = arith.cmpf oeq, %8, %622 : vector<1x16xf32>
    %cst_207 = arith.constant -1.000000e+30 : f32
    %624 = vector.broadcast %cst_207 : f32 to vector<1x16xf32>
    %625 = arith.select %623, %624, %613 : vector<1x16xi1>, vector<1x16xf32>
    %cst_208 = arith.constant dense<0xFF800000> : vector<1xf32>
    %626 = vector.multi_reduction <maximumf>, %625, %cst_208 [1] : vector<1x16xf32> to vector<1xf32>
    %627 = vector.shape_cast %626 : vector<1xf32> to vector<1x1xf32>
    %628 = vector.broadcast %627 : vector<1x1xf32> to vector<1x16xf32>
    %629 = arith.cmpf oge, %625, %628 : vector<1x16xf32>
    %cst_209 = arith.constant 1.600000e+01 : f32
    %630 = vector.broadcast %cst_209 : f32 to vector<1x16xf32>
    %631 = arith.select %629, %8, %630 : vector<1x16xi1>, vector<1x16xf32>
    %cst_210 = arith.constant dense<0x7F800000> : vector<1xf32>
    %632 = vector.multi_reduction <minimumf>, %631, %cst_210 [1] : vector<1x16xf32> to vector<1xf32>
    %633 = vector.shape_cast %632 : vector<1xf32> to vector<1x1xf32>
    %634 = arith.subf %615, %615 : vector<1x1xf32>
    %635 = math.exp %634 : vector<1x1xf32>
    %636 = arith.subf %627, %615 : vector<1x1xf32>
    %637 = math.exp %636 : vector<1x1xf32>
    %638 = arith.addf %635, %637 : vector<1x1xf32>
    %cst_211 = arith.constant 1.000000e+00 : f32
    %639 = vector.broadcast %cst_211 : f32 to vector<1x1xf32>
    %640 = arith.divf %639, %638 : vector<1x1xf32>
    %cst_212 = arith.constant 0.000000e+00 : f32
    %641 = vector.broadcast %cst_212 : f32 to vector<16x16xf32>
    %642 = vector.broadcast %621 : vector<1x1xf32> to vector<16x16xf32>
    %643 = arith.addf %74, %642 : vector<16x16xf32>
    %cst_213 = arith.constant 1.600000e+01 : f32
    %644 = vector.broadcast %cst_213 : f32 to vector<16x16xf32>
    %645 = arith.cmpf oge, %643, %644 : vector<16x16xf32>
    %cst_214 = arith.constant 1.600000e+01 : f32
    %646 = vector.broadcast %cst_214 : f32 to vector<16x16xf32>
    %647 = arith.subf %643, %646 : vector<16x16xf32>
    %648 = arith.select %645, %647, %643 : vector<16x16xi1>, vector<16x16xf32>
    %649 = arith.mulf %635, %640 : vector<1x1xf32>
    %650 = arith.cmpf oeq, %76, %648 : vector<16x16xf32>
    %651 = arith.extui %650 : vector<16x16xi1> to vector<16x16xi32>
    %652 = arith.sitofp %651 : vector<16x16xi32> to vector<16x16xf32>
    %653 = vector.broadcast %649 : vector<1x1xf32> to vector<16x16xf32>
    %654 = arith.mulf %653, %652 : vector<16x16xf32>
    %655 = arith.addf %641, %654 : vector<16x16xf32>
    %656 = vector.broadcast %633 : vector<1x1xf32> to vector<16x16xf32>
    %657 = arith.addf %74, %656 : vector<16x16xf32>
    %cst_215 = arith.constant 1.600000e+01 : f32
    %658 = vector.broadcast %cst_215 : f32 to vector<16x16xf32>
    %659 = arith.cmpf oge, %657, %658 : vector<16x16xf32>
    %cst_216 = arith.constant 1.600000e+01 : f32
    %660 = vector.broadcast %cst_216 : f32 to vector<16x16xf32>
    %661 = arith.subf %657, %660 : vector<16x16xf32>
    %662 = arith.select %659, %661, %657 : vector<16x16xi1>, vector<16x16xf32>
    %663 = arith.mulf %637, %640 : vector<1x1xf32>
    %664 = arith.cmpf oeq, %76, %662 : vector<16x16xf32>
    %665 = arith.extui %664 : vector<16x16xi1> to vector<16x16xi32>
    %666 = arith.sitofp %665 : vector<16x16xi32> to vector<16x16xf32>
    %667 = vector.broadcast %663 : vector<1x1xf32> to vector<16x16xf32>
    %668 = arith.mulf %667, %666 : vector<16x16xf32>
    %669 = arith.addf %655, %668 : vector<16x16xf32>
    %cst_217 = arith.constant dense<0.000000e+00> : vector<16x32xf32>
    %670 = tpu.matmul %669, %451, %cst_217 {dimension_numbers = #tpu.dot_dimension_numbers<[1], [0], [0], [1], [0, 0, 1, 1], [], []>} : vector<16x16xf32>, vector<16x32xf32>, vector<16x32xf32> -> vector<16x32xf32>
    %cst_218 = arith.constant dense<0.000000e+00> : vector<16x32xf32>
    %671 = tpu.matmul %670, %435, %cst_218 {dimension_numbers = #tpu.dot_dimension_numbers<[1], [0], [0], [1], [0, 0, 1, 1], [], []>} : vector<16x32xf32>, vector<32x32xf32>, vector<16x32xf32> -> vector<16x32xf32>
    %672 = vector.broadcast %436 : vector<1x32xf32> to vector<16x32xf32>
    %673 = arith.addf %671, %672 : vector<16x32xf32>
    %674 = arith.addf %122, %673 : vector<16x32xf32>
    %cst_219 = arith.constant dense<0.000000e+00> : vector<16x32xf32>
    %675 = tpu.matmul %2, %674, %cst_219 {dimension_numbers = #tpu.dot_dimension_numbers<[1], [0], [0], [1], [0, 0, 1, 1], [], []>} : vector<16x16xf32>, vector<16x32xf32>, vector<16x32xf32> -> vector<16x32xf32>
    %676 = arith.subf %674, %675 : vector<16x32xf32>
    %cst_220 = arith.constant dense<0.000000e+00> : vector<16x32xf32>
    %677 = tpu.matmul %676, %437, %cst_220 {dimension_numbers = #tpu.dot_dimension_numbers<[1], [0], [0], [1], [0, 0, 1, 1], [], []>} : vector<16x32xf32>, vector<32x32xf32>, vector<16x32xf32> -> vector<16x32xf32>
    %678 = vector.broadcast %438 : vector<1x32xf32> to vector<16x32xf32>
    %679 = arith.addf %677, %678 : vector<16x32xf32>
    %cst_221 = arith.constant dense<0.000000e+00> : vector<16x64xf32>
    %680 = tpu.matmul %432, %439, %cst_221 {dimension_numbers = #tpu.dot_dimension_numbers<[1], [0], [0], [1], [0, 0, 1, 1], [], []>} : vector<16x32xf32>, vector<32x64xf32>, vector<16x64xf32> -> vector<16x64xf32>
    %681 = vector.broadcast %440 : vector<1x64xf32> to vector<16x64xf32>
    %682 = arith.addf %680, %681 : vector<16x64xf32>
    %683 = vector.extract_strided_slice %682 {offsets = [0, 0], sizes = [16, 32], strides = [1, 1]} : vector<16x64xf32> to vector<16x32xf32>
    %684 = vector.extract_strided_slice %682 {offsets = [0, 32], sizes = [16, 32], strides = [1, 1]} : vector<16x64xf32> to vector<16x32xf32>
    "tpu.trace_start"() <{level = 10 : i32, message = "sd,ud->su"}> : () -> ()
    %cst_222 = arith.constant dense<0.000000e+00> : vector<16x16xf32>
    %685 = tpu.matmul %679, %683, %cst_222 {dimension_numbers = #tpu.dot_dimension_numbers<[1], [1], [0], [0], [0, 0, 1, 0], [], []>} : vector<16x32xf32>, vector<16x32xf32>, vector<16x16xf32> -> vector<16x16xf32>
    %cst_223 = arith.constant 0.000000e+00 : f32
    "tpu.trace_stop"() : () -> ()
    %686 = vector.broadcast %cst_223 : f32 to vector<1x16xf32>
    %687 = vector.extract_strided_slice %6 {offsets = [0, 0, 0], sizes = [1, 16, 16], strides = [1, 1, 1]} : vector<16x16x16xf32> to vector<1x16x16xf32>
    %688 = vector.shape_cast %687 : vector<1x16x16xf32> to vector<16x16xf32>
    %689 = arith.mulf %685, %688 : vector<16x16xf32>
    %cst_224 = arith.constant dense<0.000000e+00> : vector<16xf32>
    %690 = vector.multi_reduction <add>, %689, %cst_224 [1] : vector<16x16xf32> to vector<16xf32>
    %691 = vector.shape_cast %690 : vector<16xf32> to vector<16x1xf32>
    %cst_225 = arith.constant dense<0.000000e+00> : vector<1xf32>
    %692 = vector.multi_reduction <add>, %691, %cst_225 [0] : vector<16x1xf32> to vector<1xf32>
    %693 = vector.shape_cast %692 : vector<1xf32> to vector<1x1xf32>
    %694 = vector.broadcast %693 : vector<1x1xf32> to vector<1x16xf32>
    %695 = arith.mulf %694, %12 : vector<1x16xf32>
    %696 = arith.addf %686, %695 : vector<1x16xf32>
    %697 = vector.extract_strided_slice %6 {offsets = [1, 0, 0], sizes = [1, 16, 16], strides = [1, 1, 1]} : vector<16x16x16xf32> to vector<1x16x16xf32>
    %698 = vector.shape_cast %697 : vector<1x16x16xf32> to vector<16x16xf32>
    %699 = arith.mulf %685, %698 : vector<16x16xf32>
    %cst_226 = arith.constant dense<0.000000e+00> : vector<16xf32>
    %700 = vector.multi_reduction <add>, %699, %cst_226 [1] : vector<16x16xf32> to vector<16xf32>
    %701 = vector.shape_cast %700 : vector<16xf32> to vector<16x1xf32>
    %cst_227 = arith.constant dense<0.000000e+00> : vector<1xf32>
    %702 = vector.multi_reduction <add>, %701, %cst_227 [0] : vector<16x1xf32> to vector<1xf32>
    %703 = vector.shape_cast %702 : vector<1xf32> to vector<1x1xf32>
    %704 = vector.broadcast %703 : vector<1x1xf32> to vector<1x16xf32>
    %705 = arith.mulf %704, %16 : vector<1x16xf32>
    %706 = arith.addf %696, %705 : vector<1x16xf32>
    %707 = vector.extract_strided_slice %6 {offsets = [2, 0, 0], sizes = [1, 16, 16], strides = [1, 1, 1]} : vector<16x16x16xf32> to vector<1x16x16xf32>
    %708 = vector.shape_cast %707 : vector<1x16x16xf32> to vector<16x16xf32>
    %709 = arith.mulf %685, %708 : vector<16x16xf32>
    %cst_228 = arith.constant dense<0.000000e+00> : vector<16xf32>
    %710 = vector.multi_reduction <add>, %709, %cst_228 [1] : vector<16x16xf32> to vector<16xf32>
    %711 = vector.shape_cast %710 : vector<16xf32> to vector<16x1xf32>
    %cst_229 = arith.constant dense<0.000000e+00> : vector<1xf32>
    %712 = vector.multi_reduction <add>, %711, %cst_229 [0] : vector<16x1xf32> to vector<1xf32>
    %713 = vector.shape_cast %712 : vector<1xf32> to vector<1x1xf32>
    %714 = vector.broadcast %713 : vector<1x1xf32> to vector<1x16xf32>
    %715 = arith.mulf %714, %20 : vector<1x16xf32>
    %716 = arith.addf %706, %715 : vector<1x16xf32>
    %717 = vector.extract_strided_slice %6 {offsets = [3, 0, 0], sizes = [1, 16, 16], strides = [1, 1, 1]} : vector<16x16x16xf32> to vector<1x16x16xf32>
    %718 = vector.shape_cast %717 : vector<1x16x16xf32> to vector<16x16xf32>
    %719 = arith.mulf %685, %718 : vector<16x16xf32>
    %cst_230 = arith.constant dense<0.000000e+00> : vector<16xf32>
    %720 = vector.multi_reduction <add>, %719, %cst_230 [1] : vector<16x16xf32> to vector<16xf32>
    %721 = vector.shape_cast %720 : vector<16xf32> to vector<16x1xf32>
    %cst_231 = arith.constant dense<0.000000e+00> : vector<1xf32>
    %722 = vector.multi_reduction <add>, %721, %cst_231 [0] : vector<16x1xf32> to vector<1xf32>
    %723 = vector.shape_cast %722 : vector<1xf32> to vector<1x1xf32>
    %724 = vector.broadcast %723 : vector<1x1xf32> to vector<1x16xf32>
    %725 = arith.mulf %724, %24 : vector<1x16xf32>
    %726 = arith.addf %716, %725 : vector<1x16xf32>
    %727 = vector.extract_strided_slice %6 {offsets = [4, 0, 0], sizes = [1, 16, 16], strides = [1, 1, 1]} : vector<16x16x16xf32> to vector<1x16x16xf32>
    %728 = vector.shape_cast %727 : vector<1x16x16xf32> to vector<16x16xf32>
    %729 = arith.mulf %685, %728 : vector<16x16xf32>
    %cst_232 = arith.constant dense<0.000000e+00> : vector<16xf32>
    %730 = vector.multi_reduction <add>, %729, %cst_232 [1] : vector<16x16xf32> to vector<16xf32>
    %731 = vector.shape_cast %730 : vector<16xf32> to vector<16x1xf32>
    %cst_233 = arith.constant dense<0.000000e+00> : vector<1xf32>
    %732 = vector.multi_reduction <add>, %731, %cst_233 [0] : vector<16x1xf32> to vector<1xf32>
    %733 = vector.shape_cast %732 : vector<1xf32> to vector<1x1xf32>
    %734 = vector.broadcast %733 : vector<1x1xf32> to vector<1x16xf32>
    %735 = arith.mulf %734, %28 : vector<1x16xf32>
    %736 = arith.addf %726, %735 : vector<1x16xf32>
    %737 = vector.extract_strided_slice %6 {offsets = [5, 0, 0], sizes = [1, 16, 16], strides = [1, 1, 1]} : vector<16x16x16xf32> to vector<1x16x16xf32>
    %738 = vector.shape_cast %737 : vector<1x16x16xf32> to vector<16x16xf32>
    %739 = arith.mulf %685, %738 : vector<16x16xf32>
    %cst_234 = arith.constant dense<0.000000e+00> : vector<16xf32>
    %740 = vector.multi_reduction <add>, %739, %cst_234 [1] : vector<16x16xf32> to vector<16xf32>
    %741 = vector.shape_cast %740 : vector<16xf32> to vector<16x1xf32>
    %cst_235 = arith.constant dense<0.000000e+00> : vector<1xf32>
    %742 = vector.multi_reduction <add>, %741, %cst_235 [0] : vector<16x1xf32> to vector<1xf32>
    %743 = vector.shape_cast %742 : vector<1xf32> to vector<1x1xf32>
    %744 = vector.broadcast %743 : vector<1x1xf32> to vector<1x16xf32>
    %745 = arith.mulf %744, %32 : vector<1x16xf32>
    %746 = arith.addf %736, %745 : vector<1x16xf32>
    %747 = vector.extract_strided_slice %6 {offsets = [6, 0, 0], sizes = [1, 16, 16], strides = [1, 1, 1]} : vector<16x16x16xf32> to vector<1x16x16xf32>
    %748 = vector.shape_cast %747 : vector<1x16x16xf32> to vector<16x16xf32>
    %749 = arith.mulf %685, %748 : vector<16x16xf32>
    %cst_236 = arith.constant dense<0.000000e+00> : vector<16xf32>
    %750 = vector.multi_reduction <add>, %749, %cst_236 [1] : vector<16x16xf32> to vector<16xf32>
    %751 = vector.shape_cast %750 : vector<16xf32> to vector<16x1xf32>
    %cst_237 = arith.constant dense<0.000000e+00> : vector<1xf32>
    %752 = vector.multi_reduction <add>, %751, %cst_237 [0] : vector<16x1xf32> to vector<1xf32>
    %753 = vector.shape_cast %752 : vector<1xf32> to vector<1x1xf32>
    %754 = vector.broadcast %753 : vector<1x1xf32> to vector<1x16xf32>
    %755 = arith.mulf %754, %36 : vector<1x16xf32>
    %756 = arith.addf %746, %755 : vector<1x16xf32>
    %757 = vector.extract_strided_slice %6 {offsets = [7, 0, 0], sizes = [1, 16, 16], strides = [1, 1, 1]} : vector<16x16x16xf32> to vector<1x16x16xf32>
    %758 = vector.shape_cast %757 : vector<1x16x16xf32> to vector<16x16xf32>
    %759 = arith.mulf %685, %758 : vector<16x16xf32>
    %cst_238 = arith.constant dense<0.000000e+00> : vector<16xf32>
    %760 = vector.multi_reduction <add>, %759, %cst_238 [1] : vector<16x16xf32> to vector<16xf32>
    %761 = vector.shape_cast %760 : vector<16xf32> to vector<16x1xf32>
    %cst_239 = arith.constant dense<0.000000e+00> : vector<1xf32>
    %762 = vector.multi_reduction <add>, %761, %cst_239 [0] : vector<16x1xf32> to vector<1xf32>
    %763 = vector.shape_cast %762 : vector<1xf32> to vector<1x1xf32>
    %764 = vector.broadcast %763 : vector<1x1xf32> to vector<1x16xf32>
    %765 = arith.mulf %764, %40 : vector<1x16xf32>
    %766 = arith.addf %756, %765 : vector<1x16xf32>
    %767 = vector.extract_strided_slice %6 {offsets = [8, 0, 0], sizes = [1, 16, 16], strides = [1, 1, 1]} : vector<16x16x16xf32> to vector<1x16x16xf32>
    %768 = vector.shape_cast %767 : vector<1x16x16xf32> to vector<16x16xf32>
    %769 = arith.mulf %685, %768 : vector<16x16xf32>
    %cst_240 = arith.constant dense<0.000000e+00> : vector<16xf32>
    %770 = vector.multi_reduction <add>, %769, %cst_240 [1] : vector<16x16xf32> to vector<16xf32>
    %771 = vector.shape_cast %770 : vector<16xf32> to vector<16x1xf32>
    %cst_241 = arith.constant dense<0.000000e+00> : vector<1xf32>
    %772 = vector.multi_reduction <add>, %771, %cst_241 [0] : vector<16x1xf32> to vector<1xf32>
    %773 = vector.shape_cast %772 : vector<1xf32> to vector<1x1xf32>
    %774 = vector.broadcast %773 : vector<1x1xf32> to vector<1x16xf32>
    %775 = arith.mulf %774, %44 : vector<1x16xf32>
    %776 = arith.addf %766, %775 : vector<1x16xf32>
    %777 = vector.extract_strided_slice %6 {offsets = [9, 0, 0], sizes = [1, 16, 16], strides = [1, 1, 1]} : vector<16x16x16xf32> to vector<1x16x16xf32>
    %778 = vector.shape_cast %777 : vector<1x16x16xf32> to vector<16x16xf32>
    %779 = arith.mulf %685, %778 : vector<16x16xf32>
    %cst_242 = arith.constant dense<0.000000e+00> : vector<16xf32>
    %780 = vector.multi_reduction <add>, %779, %cst_242 [1] : vector<16x16xf32> to vector<16xf32>
    %781 = vector.shape_cast %780 : vector<16xf32> to vector<16x1xf32>
    %cst_243 = arith.constant dense<0.000000e+00> : vector<1xf32>
    %782 = vector.multi_reduction <add>, %781, %cst_243 [0] : vector<16x1xf32> to vector<1xf32>
    %783 = vector.shape_cast %782 : vector<1xf32> to vector<1x1xf32>
    %784 = vector.broadcast %783 : vector<1x1xf32> to vector<1x16xf32>
    %785 = arith.mulf %784, %48 : vector<1x16xf32>
    %786 = arith.addf %776, %785 : vector<1x16xf32>
    %787 = vector.extract_strided_slice %6 {offsets = [10, 0, 0], sizes = [1, 16, 16], strides = [1, 1, 1]} : vector<16x16x16xf32> to vector<1x16x16xf32>
    %788 = vector.shape_cast %787 : vector<1x16x16xf32> to vector<16x16xf32>
    %789 = arith.mulf %685, %788 : vector<16x16xf32>
    %cst_244 = arith.constant dense<0.000000e+00> : vector<16xf32>
    %790 = vector.multi_reduction <add>, %789, %cst_244 [1] : vector<16x16xf32> to vector<16xf32>
    %791 = vector.shape_cast %790 : vector<16xf32> to vector<16x1xf32>
    %cst_245 = arith.constant dense<0.000000e+00> : vector<1xf32>
    %792 = vector.multi_reduction <add>, %791, %cst_245 [0] : vector<16x1xf32> to vector<1xf32>
    %793 = vector.shape_cast %792 : vector<1xf32> to vector<1x1xf32>
    %794 = vector.broadcast %793 : vector<1x1xf32> to vector<1x16xf32>
    %795 = arith.mulf %794, %52 : vector<1x16xf32>
    %796 = arith.addf %786, %795 : vector<1x16xf32>
    %797 = vector.extract_strided_slice %6 {offsets = [11, 0, 0], sizes = [1, 16, 16], strides = [1, 1, 1]} : vector<16x16x16xf32> to vector<1x16x16xf32>
    %798 = vector.shape_cast %797 : vector<1x16x16xf32> to vector<16x16xf32>
    %799 = arith.mulf %685, %798 : vector<16x16xf32>
    %cst_246 = arith.constant dense<0.000000e+00> : vector<16xf32>
    %800 = vector.multi_reduction <add>, %799, %cst_246 [1] : vector<16x16xf32> to vector<16xf32>
    %801 = vector.shape_cast %800 : vector<16xf32> to vector<16x1xf32>
    %cst_247 = arith.constant dense<0.000000e+00> : vector<1xf32>
    %802 = vector.multi_reduction <add>, %801, %cst_247 [0] : vector<16x1xf32> to vector<1xf32>
    %803 = vector.shape_cast %802 : vector<1xf32> to vector<1x1xf32>
    %804 = vector.broadcast %803 : vector<1x1xf32> to vector<1x16xf32>
    %805 = arith.mulf %804, %56 : vector<1x16xf32>
    %806 = arith.addf %796, %805 : vector<1x16xf32>
    %807 = vector.extract_strided_slice %6 {offsets = [12, 0, 0], sizes = [1, 16, 16], strides = [1, 1, 1]} : vector<16x16x16xf32> to vector<1x16x16xf32>
    %808 = vector.shape_cast %807 : vector<1x16x16xf32> to vector<16x16xf32>
    %809 = arith.mulf %685, %808 : vector<16x16xf32>
    %cst_248 = arith.constant dense<0.000000e+00> : vector<16xf32>
    %810 = vector.multi_reduction <add>, %809, %cst_248 [1] : vector<16x16xf32> to vector<16xf32>
    %811 = vector.shape_cast %810 : vector<16xf32> to vector<16x1xf32>
    %cst_249 = arith.constant dense<0.000000e+00> : vector<1xf32>
    %812 = vector.multi_reduction <add>, %811, %cst_249 [0] : vector<16x1xf32> to vector<1xf32>
    %813 = vector.shape_cast %812 : vector<1xf32> to vector<1x1xf32>
    %814 = vector.broadcast %813 : vector<1x1xf32> to vector<1x16xf32>
    %815 = arith.mulf %814, %60 : vector<1x16xf32>
    %816 = arith.addf %806, %815 : vector<1x16xf32>
    %817 = vector.extract_strided_slice %6 {offsets = [13, 0, 0], sizes = [1, 16, 16], strides = [1, 1, 1]} : vector<16x16x16xf32> to vector<1x16x16xf32>
    %818 = vector.shape_cast %817 : vector<1x16x16xf32> to vector<16x16xf32>
    %819 = arith.mulf %685, %818 : vector<16x16xf32>
    %cst_250 = arith.constant dense<0.000000e+00> : vector<16xf32>
    %820 = vector.multi_reduction <add>, %819, %cst_250 [1] : vector<16x16xf32> to vector<16xf32>
    %821 = vector.shape_cast %820 : vector<16xf32> to vector<16x1xf32>
    %cst_251 = arith.constant dense<0.000000e+00> : vector<1xf32>
    %822 = vector.multi_reduction <add>, %821, %cst_251 [0] : vector<16x1xf32> to vector<1xf32>
    %823 = vector.shape_cast %822 : vector<1xf32> to vector<1x1xf32>
    %824 = vector.broadcast %823 : vector<1x1xf32> to vector<1x16xf32>
    %825 = arith.mulf %824, %64 : vector<1x16xf32>
    %826 = arith.addf %816, %825 : vector<1x16xf32>
    %827 = vector.extract_strided_slice %6 {offsets = [14, 0, 0], sizes = [1, 16, 16], strides = [1, 1, 1]} : vector<16x16x16xf32> to vector<1x16x16xf32>
    %828 = vector.shape_cast %827 : vector<1x16x16xf32> to vector<16x16xf32>
    %829 = arith.mulf %685, %828 : vector<16x16xf32>
    %cst_252 = arith.constant dense<0.000000e+00> : vector<16xf32>
    %830 = vector.multi_reduction <add>, %829, %cst_252 [1] : vector<16x16xf32> to vector<16xf32>
    %831 = vector.shape_cast %830 : vector<16xf32> to vector<16x1xf32>
    %cst_253 = arith.constant dense<0.000000e+00> : vector<1xf32>
    %832 = vector.multi_reduction <add>, %831, %cst_253 [0] : vector<16x1xf32> to vector<1xf32>
    %833 = vector.shape_cast %832 : vector<1xf32> to vector<1x1xf32>
    %834 = vector.broadcast %833 : vector<1x1xf32> to vector<1x16xf32>
    %835 = arith.mulf %834, %68 : vector<1x16xf32>
    %836 = arith.addf %826, %835 : vector<1x16xf32>
    %837 = vector.extract_strided_slice %6 {offsets = [15, 0, 0], sizes = [1, 16, 16], strides = [1, 1, 1]} : vector<16x16x16xf32> to vector<1x16x16xf32>
    %838 = vector.shape_cast %837 : vector<1x16x16xf32> to vector<16x16xf32>
    %839 = arith.mulf %685, %838 : vector<16x16xf32>
    %cst_254 = arith.constant dense<0.000000e+00> : vector<16xf32>
    %840 = vector.multi_reduction <add>, %839, %cst_254 [1] : vector<16x16xf32> to vector<16xf32>
    %841 = vector.shape_cast %840 : vector<16xf32> to vector<16x1xf32>
    %cst_255 = arith.constant dense<0.000000e+00> : vector<1xf32>
    %842 = vector.multi_reduction <add>, %841, %cst_255 [0] : vector<16x1xf32> to vector<1xf32>
    %843 = vector.shape_cast %842 : vector<1xf32> to vector<1x1xf32>
    %844 = vector.broadcast %843 : vector<1x1xf32> to vector<1x16xf32>
    %845 = arith.mulf %844, %72 : vector<1x16xf32>
    %846 = arith.addf %836, %845 : vector<1x16xf32>
    %cst_256 = arith.constant dense<0xFF800000> : vector<1xf32>
    %847 = vector.multi_reduction <maximumf>, %846, %cst_256 [1] : vector<1x16xf32> to vector<1xf32>
    %848 = vector.shape_cast %847 : vector<1xf32> to vector<1x1xf32>
    %849 = vector.broadcast %848 : vector<1x1xf32> to vector<1x16xf32>
    %850 = arith.cmpf oge, %846, %849 : vector<1x16xf32>
    %cst_257 = arith.constant 1.600000e+01 : f32
    %851 = vector.broadcast %cst_257 : f32 to vector<1x16xf32>
    %852 = arith.select %850, %8, %851 : vector<1x16xi1>, vector<1x16xf32>
    %cst_258 = arith.constant dense<0x7F800000> : vector<1xf32>
    %853 = vector.multi_reduction <minimumf>, %852, %cst_258 [1] : vector<1x16xf32> to vector<1xf32>
    %854 = vector.shape_cast %853 : vector<1xf32> to vector<1x1xf32>
    %855 = vector.broadcast %854 : vector<1x1xf32> to vector<1x16xf32>
    %856 = arith.cmpf oeq, %8, %855 : vector<1x16xf32>
    %cst_259 = arith.constant -1.000000e+30 : f32
    %857 = vector.broadcast %cst_259 : f32 to vector<1x16xf32>
    %858 = arith.select %856, %857, %846 : vector<1x16xi1>, vector<1x16xf32>
    %cst_260 = arith.constant dense<0xFF800000> : vector<1xf32>
    %859 = vector.multi_reduction <maximumf>, %858, %cst_260 [1] : vector<1x16xf32> to vector<1xf32>
    %860 = vector.shape_cast %859 : vector<1xf32> to vector<1x1xf32>
    %861 = vector.broadcast %860 : vector<1x1xf32> to vector<1x16xf32>
    %862 = arith.cmpf oge, %858, %861 : vector<1x16xf32>
    %cst_261 = arith.constant 1.600000e+01 : f32
    %863 = vector.broadcast %cst_261 : f32 to vector<1x16xf32>
    %864 = arith.select %862, %8, %863 : vector<1x16xi1>, vector<1x16xf32>
    %cst_262 = arith.constant dense<0x7F800000> : vector<1xf32>
    %865 = vector.multi_reduction <minimumf>, %864, %cst_262 [1] : vector<1x16xf32> to vector<1xf32>
    %866 = vector.shape_cast %865 : vector<1xf32> to vector<1x1xf32>
    %867 = arith.subf %848, %848 : vector<1x1xf32>
    %868 = math.exp %867 : vector<1x1xf32>
    %869 = arith.subf %860, %848 : vector<1x1xf32>
    %870 = math.exp %869 : vector<1x1xf32>
    %871 = arith.addf %868, %870 : vector<1x1xf32>
    %cst_263 = arith.constant 1.000000e+00 : f32
    %872 = vector.broadcast %cst_263 : f32 to vector<1x1xf32>
    %873 = arith.divf %872, %871 : vector<1x1xf32>
    %cst_264 = arith.constant 0.000000e+00 : f32
    %874 = vector.broadcast %cst_264 : f32 to vector<16x16xf32>
    %875 = vector.broadcast %854 : vector<1x1xf32> to vector<16x16xf32>
    %876 = arith.addf %74, %875 : vector<16x16xf32>
    %cst_265 = arith.constant 1.600000e+01 : f32
    %877 = vector.broadcast %cst_265 : f32 to vector<16x16xf32>
    %878 = arith.cmpf oge, %876, %877 : vector<16x16xf32>
    %cst_266 = arith.constant 1.600000e+01 : f32
    %879 = vector.broadcast %cst_266 : f32 to vector<16x16xf32>
    %880 = arith.subf %876, %879 : vector<16x16xf32>
    %881 = arith.select %878, %880, %876 : vector<16x16xi1>, vector<16x16xf32>
    %882 = arith.mulf %868, %873 : vector<1x1xf32>
    %883 = arith.cmpf oeq, %76, %881 : vector<16x16xf32>
    %884 = arith.extui %883 : vector<16x16xi1> to vector<16x16xi32>
    %885 = arith.sitofp %884 : vector<16x16xi32> to vector<16x16xf32>
    %886 = vector.broadcast %882 : vector<1x1xf32> to vector<16x16xf32>
    %887 = arith.mulf %886, %885 : vector<16x16xf32>
    %888 = arith.addf %874, %887 : vector<16x16xf32>
    %889 = vector.broadcast %866 : vector<1x1xf32> to vector<16x16xf32>
    %890 = arith.addf %74, %889 : vector<16x16xf32>
    %cst_267 = arith.constant 1.600000e+01 : f32
    %891 = vector.broadcast %cst_267 : f32 to vector<16x16xf32>
    %892 = arith.cmpf oge, %890, %891 : vector<16x16xf32>
    %cst_268 = arith.constant 1.600000e+01 : f32
    %893 = vector.broadcast %cst_268 : f32 to vector<16x16xf32>
    %894 = arith.subf %890, %893 : vector<16x16xf32>
    %895 = arith.select %892, %894, %890 : vector<16x16xi1>, vector<16x16xf32>
    %896 = arith.mulf %870, %873 : vector<1x1xf32>
    %897 = arith.cmpf oeq, %76, %895 : vector<16x16xf32>
    %898 = arith.extui %897 : vector<16x16xi1> to vector<16x16xi32>
    %899 = arith.sitofp %898 : vector<16x16xi32> to vector<16x16xf32>
    %900 = vector.broadcast %896 : vector<1x1xf32> to vector<16x16xf32>
    %901 = arith.mulf %900, %899 : vector<16x16xf32>
    %902 = arith.addf %888, %901 : vector<16x16xf32>
    %cst_269 = arith.constant dense<0.000000e+00> : vector<16x32xf32>
    %903 = tpu.matmul %902, %684, %cst_269 {dimension_numbers = #tpu.dot_dimension_numbers<[1], [0], [0], [1], [0, 0, 1, 1], [], []>} : vector<16x16xf32>, vector<16x32xf32>, vector<16x32xf32> -> vector<16x32xf32>
    %cst_270 = arith.constant dense<0.000000e+00> : vector<16x32xf32>
    %904 = tpu.matmul %903, %441, %cst_270 {dimension_numbers = #tpu.dot_dimension_numbers<[1], [0], [0], [1], [0, 0, 1, 1], [], []>} : vector<16x32xf32>, vector<32x32xf32>, vector<16x32xf32> -> vector<16x32xf32>
    %905 = vector.broadcast %442 : vector<1x32xf32> to vector<16x32xf32>
    %906 = arith.addf %904, %905 : vector<16x32xf32>
    %907 = arith.addf %676, %906 : vector<16x32xf32>
    %cst_271 = arith.constant dense<0.000000e+00> : vector<16x32xf32>
    %908 = tpu.matmul %2, %907, %cst_271 {dimension_numbers = #tpu.dot_dimension_numbers<[1], [0], [0], [1], [0, 0, 1, 1], [], []>} : vector<16x16xf32>, vector<16x32xf32>, vector<16x32xf32> -> vector<16x32xf32>
    %909 = arith.subf %907, %908 : vector<16x32xf32>
    %cst_272 = arith.constant dense<0.000000e+00> : vector<16x32xf32>
    %910 = tpu.matmul %909, %443, %cst_272 {dimension_numbers = #tpu.dot_dimension_numbers<[1], [0], [0], [1], [0, 0, 1, 1], [], []>} : vector<16x32xf32>, vector<32x32xf32>, vector<16x32xf32> -> vector<16x32xf32>
    %cst_273 = arith.constant 5.000000e-01 : f32
    %911 = vector.broadcast %cst_273 : f32 to vector<16x32xf32>
    %912 = arith.mulf %911, %910 : vector<16x32xf32>
    %cst_274 = arith.constant 0.707106769 : f32
    %913 = vector.broadcast %cst_274 : f32 to vector<16x32xf32>
    %914 = arith.mulf %910, %913 : vector<16x32xf32>
    %915 = math.absf %914 : vector<16x32xf32>
    %cst_275 = arith.constant 0.327591091 : f32
    %916 = vector.broadcast %cst_275 : f32 to vector<16x32xf32>
    %917 = arith.mulf %916, %915 : vector<16x32xf32>
    %cst_276 = arith.constant 1.000000e+00 : f32
    %918 = vector.broadcast %cst_276 : f32 to vector<16x32xf32>
    %919 = arith.addf %918, %917 : vector<16x32xf32>
    %cst_277 = arith.constant 1.000000e+00 : f32
    %920 = vector.broadcast %cst_277 : f32 to vector<16x32xf32>
    %921 = arith.divf %920, %919 : vector<16x32xf32>
    %cst_278 = arith.constant 1.06140542 : f32
    %922 = vector.broadcast %cst_278 : f32 to vector<16x32xf32>
    %923 = arith.mulf %922, %921 : vector<16x32xf32>
    %cst_279 = arith.constant -1.45315206 : f32
    %924 = vector.broadcast %cst_279 : f32 to vector<16x32xf32>
    %925 = arith.addf %923, %924 : vector<16x32xf32>
    %926 = arith.mulf %925, %921 : vector<16x32xf32>
    %cst_280 = arith.constant 1.42141378 : f32
    %927 = vector.broadcast %cst_280 : f32 to vector<16x32xf32>
    %928 = arith.addf %926, %927 : vector<16x32xf32>
    %929 = arith.mulf %928, %921 : vector<16x32xf32>
    %cst_281 = arith.constant -0.284496725 : f32
    %930 = vector.broadcast %cst_281 : f32 to vector<16x32xf32>
    %931 = arith.addf %929, %930 : vector<16x32xf32>
    %932 = arith.mulf %931, %921 : vector<16x32xf32>
    %cst_282 = arith.constant 0.254829586 : f32
    %933 = vector.broadcast %cst_282 : f32 to vector<16x32xf32>
    %934 = arith.addf %932, %933 : vector<16x32xf32>
    %935 = arith.mulf %934, %921 : vector<16x32xf32>
    %cst_283 = arith.constant 0.000000e+00 : f32
    %936 = vector.broadcast %cst_283 : f32 to vector<16x32xf32>
    %937 = arith.subf %936, %915 : vector<16x32xf32>
    %938 = arith.mulf %937, %915 : vector<16x32xf32>
    %939 = math.exp %938 : vector<16x32xf32>
    %940 = arith.mulf %935, %939 : vector<16x32xf32>
    %cst_284 = arith.constant 1.000000e+00 : f32
    %941 = vector.broadcast %cst_284 : f32 to vector<16x32xf32>
    %942 = arith.subf %941, %940 : vector<16x32xf32>
    %cst_285 = arith.constant 0.000000e+00 : f32
    %943 = vector.broadcast %cst_285 : f32 to vector<16x32xf32>
    %944 = arith.cmpf oge, %914, %943 : vector<16x32xf32>
    %cst_286 = arith.constant 0.000000e+00 : f32
    %945 = vector.broadcast %cst_286 : f32 to vector<16x32xf32>
    %946 = arith.subf %945, %942 : vector<16x32xf32>
    %947 = arith.select %944, %942, %946 : vector<16x32xi1>, vector<16x32xf32>
    %cst_287 = arith.constant 1.000000e+00 : f32
    %948 = vector.broadcast %cst_287 : f32 to vector<16x32xf32>
    %949 = arith.addf %948, %947 : vector<16x32xf32>
    %950 = arith.mulf %912, %949 : vector<16x32xf32>
    %cst_288 = arith.constant dense<0.000000e+00> : vector<16x32xf32>
    %951 = tpu.matmul %950, %444, %cst_288 {dimension_numbers = #tpu.dot_dimension_numbers<[1], [0], [0], [1], [0, 0, 1, 1], [], []>} : vector<16x32xf32>, vector<32x32xf32>, vector<16x32xf32> -> vector<16x32xf32>
    %952 = arith.addf %909, %951 : vector<16x32xf32>
    %cst_289 = arith.constant dense<0.000000e+00> : vector<16x32xf32>
    %953 = tpu.matmul %2, %952, %cst_289 {dimension_numbers = #tpu.dot_dimension_numbers<[1], [0], [0], [1], [0, 0, 1, 1], [], []>} : vector<16x16xf32>, vector<16x32xf32>, vector<16x32xf32> -> vector<16x32xf32>
    %954 = arith.subf %952, %953 : vector<16x32xf32>
    %955 = arith.addf %675, %908 : vector<16x32xf32>
    %956 = arith.addf %955, %953 : vector<16x32xf32>
    %cst_290 = arith.constant dense<0.000000e+00> : vector<16x32xf32>
    %957 = tpu.matmul %3, %956, %cst_290 {dimension_numbers = #tpu.dot_dimension_numbers<[1], [0], [0], [1], [0, 0, 1, 1], [], []>} : vector<16x16xf32>, vector<16x32xf32>, vector<16x32xf32> -> vector<16x32xf32>
    %958 = vector.extract_strided_slice %445 {offsets = [0, 0, 0], sizes = [1, 32, 6], strides = [1, 1, 1]} : vector<3x32x6xf32> to vector<1x32x6xf32>
    %959 = vector.shape_cast %958 : vector<1x32x6xf32> to vector<32x6xf32>
    %cst_291 = arith.constant dense<0.000000e+00> : vector<16x6xf32>
    %960 = tpu.matmul %957, %959, %cst_291 {dimension_numbers = #tpu.dot_dimension_numbers<[1], [0], [0], [1], [0, 0, 1, 1], [], []>} : vector<16x32xf32>, vector<32x6xf32>, vector<16x6xf32> -> vector<16x6xf32>
    %961 = vector.extract_strided_slice %445 {offsets = [1, 0, 0], sizes = [1, 32, 6], strides = [1, 1, 1]} : vector<3x32x6xf32> to vector<1x32x6xf32>
    %962 = vector.shape_cast %961 : vector<1x32x6xf32> to vector<32x6xf32>
    %cst_292 = arith.constant dense<0.000000e+00> : vector<16x6xf32>
    %963 = tpu.matmul %956, %962, %cst_292 {dimension_numbers = #tpu.dot_dimension_numbers<[1], [0], [0], [1], [0, 0, 1, 1], [], []>} : vector<16x32xf32>, vector<32x6xf32>, vector<16x6xf32> -> vector<16x6xf32>
    %964 = arith.addf %960, %963 : vector<16x6xf32>
    %cst_293 = arith.constant dense<0.000000e+00> : vector<16x32xf32>
    %965 = tpu.matmul %4, %956, %cst_293 {dimension_numbers = #tpu.dot_dimension_numbers<[1], [0], [0], [1], [0, 0, 1, 1], [], []>} : vector<16x16xf32>, vector<16x32xf32>, vector<16x32xf32> -> vector<16x32xf32>
    %966 = vector.extract_strided_slice %445 {offsets = [2, 0, 0], sizes = [1, 32, 6], strides = [1, 1, 1]} : vector<3x32x6xf32> to vector<1x32x6xf32>
    %967 = vector.shape_cast %966 : vector<1x32x6xf32> to vector<32x6xf32>
    %cst_294 = arith.constant dense<0.000000e+00> : vector<16x6xf32>
    %968 = tpu.matmul %965, %967, %cst_294 {dimension_numbers = #tpu.dot_dimension_numbers<[1], [0], [0], [1], [0, 0, 1, 1], [], []>} : vector<16x32xf32>, vector<32x6xf32>, vector<16x6xf32> -> vector<16x6xf32>
    %969 = arith.addf %964, %968 : vector<16x6xf32>
    %970 = arith.addf %93, %969 : vector<16x6xf32>
    %c0_295 = arith.constant 0 : index
    %c0_296 = arith.constant 0 : index
    %971 = vector.load %arg30[%c0_295, %c0_296] : memref<1x32xf32, #tpu.memory_space<vmem>>, vector<1x32xf32>
    %c0_297 = arith.constant 0 : index
    %c0_298 = arith.constant 0 : index
    %972 = vector.load %arg31[%c0_297, %c0_298] : memref<1x32xf32, #tpu.memory_space<vmem>>, vector<1x32xf32>
    %cst_299 = arith.constant dense<0.000000e+00> : vector<16xf32>
    %973 = vector.multi_reduction <add>, %954, %cst_299 [1] : vector<16x32xf32> to vector<16xf32>
    %974 = vector.shape_cast %973 : vector<16xf32> to vector<16x1xf32>
    %cst_300 = arith.constant 3.200000e+01 : f32
    %975 = vector.broadcast %cst_300 : f32 to vector<16x1xf32>
    %976 = arith.divf %974, %975 : vector<16x1xf32>
    %977 = vector.broadcast %976 : vector<16x1xf32> to vector<16x32xf32>
    %978 = arith.subf %954, %977 : vector<16x32xf32>
    %979 = arith.mulf %978, %978 : vector<16x32xf32>
    %cst_301 = arith.constant dense<0.000000e+00> : vector<16xf32>
    %980 = vector.multi_reduction <add>, %979, %cst_301 [1] : vector<16x32xf32> to vector<16xf32>
    %981 = vector.shape_cast %980 : vector<16xf32> to vector<16x1xf32>
    %cst_302 = arith.constant 3.200000e+01 : f32
    %982 = vector.broadcast %cst_302 : f32 to vector<16x1xf32>
    %983 = arith.divf %981, %982 : vector<16x1xf32>
    %cst_303 = arith.constant 9.99999974E-6 : f32
    %984 = vector.broadcast %cst_303 : f32 to vector<16x1xf32>
    %985 = arith.addf %983, %984 : vector<16x1xf32>
    %986 = math.rsqrt %985 : vector<16x1xf32>
    %987 = vector.broadcast %986 : vector<16x1xf32> to vector<16x32xf32>
    %988 = arith.mulf %978, %987 : vector<16x32xf32>
    %989 = vector.broadcast %971 : vector<1x32xf32> to vector<16x32xf32>
    %990 = arith.mulf %988, %989 : vector<16x32xf32>
    %991 = vector.broadcast %972 : vector<1x32xf32> to vector<16x32xf32>
    %992 = arith.addf %990, %991 : vector<16x32xf32>
    %cst_304 = arith.constant dense<0.000000e+00> : vector<32xf32>
    %993 = vector.multi_reduction <add>, %992, %cst_304 [0] : vector<16x32xf32> to vector<32xf32>
    %994 = vector.shape_cast %993 : vector<32xf32> to vector<1x32xf32>
    %cst_305 = arith.constant 1.600000e+01 : f32
    %995 = vector.broadcast %cst_305 : f32 to vector<1x32xf32>
    %996 = arith.divf %994, %995 : vector<1x32xf32>
    %997 = vector.broadcast %996 : vector<1x32xf32> to vector<16x32xf32>
    %998 = arith.subf %992, %997 : vector<16x32xf32>
    %c0_306 = arith.constant 0 : index
    %c0_307 = arith.constant 0 : index
    %999 = vector.load %arg32[%c0_306, %c0_307] : memref<32x6xf32, #tpu.memory_space<vmem>>, vector<32x6xf32>
    %cst_308 = arith.constant dense<0.000000e+00> : vector<16x6xf32>
    %1000 = tpu.matmul %998, %999, %cst_308 {dimension_numbers = #tpu.dot_dimension_numbers<[1], [0], [0], [1], [0, 0, 1, 1], [], []>} : vector<16x32xf32>, vector<32x6xf32>, vector<16x6xf32> -> vector<16x6xf32>
    %c0_309 = arith.constant 0 : index
    %c0_310 = arith.constant 0 : index
    %1001 = vector.load %arg33[%c0_309, %c0_310] : memref<1x6xf32, #tpu.memory_space<vmem>>, vector<1x6xf32>
    %1002 = vector.broadcast %1001 : vector<1x6xf32> to vector<16x6xf32>
    %1003 = arith.addf %1000, %1002 : vector<16x6xf32>
    %1004 = arith.addf %970, %1003 : vector<16x6xf32>
    %1005 = vector.extract_strided_slice %1004 {offsets = [0, 0], sizes = [16, 3], strides = [1, 1]} : vector<16x6xf32> to vector<16x3xf32>
    %1006 = vector.extract_strided_slice %1004 {offsets = [0, 3], sizes = [16, 3], strides = [1, 1]} : vector<16x6xf32> to vector<16x3xf32>
    %1007 = arith.addf %1005, %1006 : vector<16x3xf32>
    %1008 = vector.extract_strided_slice %1007 {offsets = [8, 0], sizes = [8, 3], strides = [1, 1]} : vector<16x3xf32> to vector<8x3xf32>
    %1009 = vector.shape_cast %1008 : vector<8x3xf32> to vector<1x8x3xf32>
    %c0_311 = arith.constant 0 : index
    %c0_312 = arith.constant 0 : index
    %c0_313 = arith.constant 0 : index
    %1010 = vector.load %arg34[%c0_311, %c0_312, %c0_313] : memref<1x8x3xf32, #tpu.memory_space<vmem>>, vector<1x8x3xf32>
    tpu.vector_store %arg34[%c0_311, %c0_312, %c0_313], %1009 {strides = array<i32>} : memref<1x8x3xf32, #tpu.memory_space<vmem>>, vector<1x8x3xf32>,
    return
  }
  func.func @transform_0(%arg0: i32) -> (i32, i32, i32) {
    %c0_i32 = arith.constant 0 : i32
    %c0_i32_0 = arith.constant 0 : i32
    %c0_i32_1 = arith.constant 0 : i32
    return %arg0, %c0_i32, %c0_i32_0 : i32, i32, i32
  }
  func.func @transform_1(%arg0: i32) -> (i32, i32) {
    %c0_i32 = arith.constant 0 : i32
    %c0_i32_0 = arith.constant 0 : i32
    %c0_i32_1 = arith.constant 0 : i32
    return %c0_i32, %c0_i32_0 : i32, i32
  }
  func.func @transform_2(%arg0: i32) -> (i32, i32) {
    %c0_i32 = arith.constant 0 : i32
    %c0_i32_0 = arith.constant 0 : i32
    %c0_i32_1 = arith.constant 0 : i32
    return %c0_i32, %c0_i32_0 : i32, i32
  }
  func.func @transform_3(%arg0: i32) -> (i32, i32) {
    %c0_i32 = arith.constant 0 : i32
    %c0_i32_0 = arith.constant 0 : i32
    %c0_i32_1 = arith.constant 0 : i32
    return %c0_i32, %c0_i32_0 : i32, i32
  }
  func.func @transform_4(%arg0: i32) -> (i32, i32) {
    %c0_i32 = arith.constant 0 : i32
    %c0_i32_0 = arith.constant 0 : i32
    %c0_i32_1 = arith.constant 0 : i32
    return %c0_i32, %c0_i32_0 : i32, i32
  }
  func.func @transform_5(%arg0: i32) -> (i32, i32, i32) {
    %c0_i32 = arith.constant 0 : i32
    %c0_i32_0 = arith.constant 0 : i32
    %c0_i32_1 = arith.constant 0 : i32
    %c0_i32_2 = arith.constant 0 : i32
    return %c0_i32, %c0_i32_0, %c0_i32_1 : i32, i32, i32
  }
  func.func @transform_6(%arg0: i32) -> (i32, i32, i32) {
    %c0_i32 = arith.constant 0 : i32
    %c0_i32_0 = arith.constant 0 : i32
    %c0_i32_1 = arith.constant 0 : i32
    %c0_i32_2 = arith.constant 0 : i32
    return %c0_i32, %c0_i32_0, %c0_i32_1 : i32, i32, i32
  }
  func.func @transform_7(%arg0: i32) -> (i32, i32, i32) {
    %c0_i32 = arith.constant 0 : i32
    %c0_i32_0 = arith.constant 0 : i32
    %c0_i32_1 = arith.constant 0 : i32
    %c0_i32_2 = arith.constant 0 : i32
    return %c0_i32, %c0_i32_0, %c0_i32_1 : i32, i32, i32
  }
  func.func @transform_8(%arg0: i32) -> (i32, i32) {
    %c0_i32 = arith.constant 0 : i32
    %c0_i32_0 = arith.constant 0 : i32
    %c0_i32_1 = arith.constant 0 : i32
    return %c0_i32, %c0_i32_0 : i32, i32
  }
  func.func @transform_9(%arg0: i32) -> (i32, i32) {
    %c0_i32 = arith.constant 0 : i32
    %c0_i32_0 = arith.constant 0 : i32
    %c0_i32_1 = arith.constant 0 : i32
    return %c0_i32, %c0_i32_0 : i32, i32
  }
  func.func @transform_10(%arg0: i32) -> (i32, i32) {
    %c0_i32 = arith.constant 0 : i32
    %c0_i32_0 = arith.constant 0 : i32
    %c0_i32_1 = arith.constant 0 : i32
    return %c0_i32, %c0_i32_0 : i32, i32
  }
  func.func @transform_11(%arg0: i32) -> (i32, i32) {
    %c0_i32 = arith.constant 0 : i32
    %c0_i32_0 = arith.constant 0 : i32
    %c0_i32_1 = arith.constant 0 : i32
    return %c0_i32, %c0_i32_0 : i32, i32
  }
  func.func @transform_12(%arg0: i32) -> (i32, i32) {
    %c0_i32 = arith.constant 0 : i32
    %c0_i32_0 = arith.constant 0 : i32
    %c0_i32_1 = arith.constant 0 : i32
    return %c0_i32, %c0_i32_0 : i32, i32
  }
  func.func @transform_13(%arg0: i32) -> (i32, i32) {
    %c0_i32 = arith.constant 0 : i32
    %c0_i32_0 = arith.constant 0 : i32
    %c0_i32_1 = arith.constant 0 : i32
    return %c0_i32, %c0_i32_0 : i32, i32
  }
  func.func @transform_14(%arg0: i32) -> (i32, i32) {
    %c0_i32 = arith.constant 0 : i32
    %c0_i32_0 = arith.constant 0 : i32
    %c0_i32_1 = arith.constant 0 : i32
    return %c0_i32, %c0_i32_0 : i32, i32
  }
  func.func @transform_15(%arg0: i32) -> (i32, i32) {
    %c0_i32 = arith.constant 0 : i32
    %c0_i32_0 = arith.constant 0 : i32
    %c0_i32_1 = arith.constant 0 : i32
    return %c0_i32, %c0_i32_0 : i32, i32
  }
  func.func @transform_16(%arg0: i32) -> (i32, i32) {
    %c0_i32 = arith.constant 0 : i32
    %c0_i32_0 = arith.constant 0 : i32
    %c0_i32_1 = arith.constant 0 : i32
    return %c0_i32, %c0_i32_0 : i32, i32
  }
  func.func @transform_17(%arg0: i32) -> (i32, i32) {
    %c0_i32 = arith.constant 0 : i32
    %c0_i32_0 = arith.constant 0 : i32
    %c0_i32_1 = arith.constant 0 : i32
    return %c0_i32, %c0_i32_0 : i32, i32
  }
  func.func @transform_18(%arg0: i32) -> (i32, i32) {
    %c0_i32 = arith.constant 0 : i32
    %c0_i32_0 = arith.constant 0 : i32
    %c0_i32_1 = arith.constant 0 : i32
    return %c0_i32, %c0_i32_0 : i32, i32
  }
  func.func @transform_19(%arg0: i32) -> (i32, i32) {
    %c0_i32 = arith.constant 0 : i32
    %c0_i32_0 = arith.constant 0 : i32
    %c0_i32_1 = arith.constant 0 : i32
    return %c0_i32, %c0_i32_0 : i32, i32
  }
  func.func @transform_20(%arg0: i32) -> (i32, i32) {
    %c0_i32 = arith.constant 0 : i32
    %c0_i32_0 = arith.constant 0 : i32
    %c0_i32_1 = arith.constant 0 : i32
    return %c0_i32, %c0_i32_0 : i32, i32
  }
  func.func @transform_21(%arg0: i32) -> (i32, i32) {
    %c0_i32 = arith.constant 0 : i32
    %c0_i32_0 = arith.constant 0 : i32
    %c0_i32_1 = arith.constant 0 : i32
    return %c0_i32, %c0_i32_0 : i32, i32
  }
  func.func @transform_22(%arg0: i32) -> (i32, i32) {
    %c0_i32 = arith.constant 0 : i32
    %c0_i32_0 = arith.constant 0 : i32
    %c0_i32_1 = arith.constant 0 : i32
    return %c0_i32, %c0_i32_0 : i32, i32
  }
  func.func @transform_23(%arg0: i32) -> (i32, i32) {
    %c0_i32 = arith.constant 0 : i32
    %c0_i32_0 = arith.constant 0 : i32
    %c0_i32_1 = arith.constant 0 : i32
    return %c0_i32, %c0_i32_0 : i32, i32
  }
  func.func @transform_24(%arg0: i32) -> (i32, i32) {
    %c0_i32 = arith.constant 0 : i32
    %c0_i32_0 = arith.constant 0 : i32
    %c0_i32_1 = arith.constant 0 : i32
    return %c0_i32, %c0_i32_0 : i32, i32
  }
  func.func @transform_25(%arg0: i32) -> (i32, i32) {
    %c0_i32 = arith.constant 0 : i32
    %c0_i32_0 = arith.constant 0 : i32
    %c0_i32_1 = arith.constant 0 : i32
    return %c0_i32, %c0_i32_0 : i32, i32
  }
  func.func @transform_26(%arg0: i32) -> (i32, i32) {
    %c0_i32 = arith.constant 0 : i32
    %c0_i32_0 = arith.constant 0 : i32
    %c0_i32_1 = arith.constant 0 : i32
    return %c0_i32, %c0_i32_0 : i32, i32
  }
  func.func @transform_27(%arg0: i32) -> (i32, i32) {
    %c0_i32 = arith.constant 0 : i32
    %c0_i32_0 = arith.constant 0 : i32
    %c0_i32_1 = arith.constant 0 : i32
    return %c0_i32, %c0_i32_0 : i32, i32
  }
  func.func @transform_28(%arg0: i32) -> (i32, i32, i32) {
    %c0_i32 = arith.constant 0 : i32
    %c0_i32_0 = arith.constant 0 : i32
    %c0_i32_1 = arith.constant 0 : i32
    %c0_i32_2 = arith.constant 0 : i32
    return %c0_i32, %c0_i32_0, %c0_i32_1 : i32, i32, i32
  }
  func.func @transform_29(%arg0: i32) -> (i32, i32) {
    %c0_i32 = arith.constant 0 : i32
    %c0_i32_0 = arith.constant 0 : i32
    %c0_i32_1 = arith.constant 0 : i32
    return %c0_i32, %c0_i32_0 : i32, i32
  }
  func.func @transform_30(%arg0: i32) -> (i32, i32) {
    %c0_i32 = arith.constant 0 : i32
    %c0_i32_0 = arith.constant 0 : i32
    %c0_i32_1 = arith.constant 0 : i32
    return %c0_i32, %c0_i32_0 : i32, i32
  }
  func.func @transform_31(%arg0: i32) -> (i32, i32) {
    %c0_i32 = arith.constant 0 : i32
    %c0_i32_0 = arith.constant 0 : i32
    %c0_i32_1 = arith.constant 0 : i32
    return %c0_i32, %c0_i32_0 : i32, i32
  }
  func.func @transform_32(%arg0: i32) -> (i32, i32) {
    %c0_i32 = arith.constant 0 : i32
    %c0_i32_0 = arith.constant 0 : i32
    %c0_i32_1 = arith.constant 0 : i32
    return %c0_i32, %c0_i32_0 : i32, i32
  }
  func.func @transform_33(%arg0: i32) -> (i32, i32, i32) {
    %c0_i32 = arith.constant 0 : i32
    %c0_i32_0 = arith.constant 0 : i32
    %c0_i32_1 = arith.constant 0 : i32
    return %arg0, %c0_i32, %c0_i32_0 : i32, i32, i32
  }
}

</mosaic_0001>

<bundles_post_ra>
// kernel: _lambda_.1
= control target key start
LH: loop header
LB: loop body
LE: loop exit
PB: predicated region body
PF: predicated region fallthrough
CT: control target
= control target key end

     0   :  { %s5503_s6 = smov 1   ;;  %s5504_s10 = smov 2   ;;  %s6892_s0 = inlined_call_operand.smem [shape: u32[34], index: -1, kind: input, shape index: {}] }
   0x1   :  { %s5570_s5 = sld [smem:[%s6892_s0]]   ;;  %s5505_s14 = smov 3  }
   0x2   :  { %s5575_s9 = sld [smem:[%s6892_s0 + %s5503_s6]]   ;;  %s5506_s18 = smov 4  }
   0x3   :  { %s5580_s13 = sld [smem:[%s6892_s0 + %s5504_s10]]   ;;  %s5507_s22 = smov 5  }
   0x4   :  { %s5585_s17 = sld [smem:[%s6892_s0 + %s5505_s14]]   ;;  %s5508_s26 = smov 6  }
   0x5   :  { %s5590_s21 = sld [smem:[%s6892_s0 + %s5506_s18]]   ;;  %s5509_s30 = smov 7  }
   0x6   :  { %s5595_s25 = sld [smem:[%s6892_s0 + %s5507_s22]]   ;;  %s5510_s4 = smov 8  }
   0x7   :  { %6933 = sst [smem:[#allocation40_spill]] %s5570_s5  ;;  %s5511_s10 = smov 9  }
   0x8   :  { %s5600_s29 = sld [smem:[%s6892_s0 + %s5508_s26]]   ;;  %s5512_s15 = smov 10  }
   0x9   :  { %6934 = sst [smem:[#allocation41_spill]] %s5580_s13  ;;  %s5513_s20 = smov 11  }
   0xa   :  { %s5605_s3 = sld [smem:[%s6892_s0 + %s5509_s30]]   ;;  %s5514_s26 = smov 12  }
   0xb   :  { %6935 = sst [smem:[#allocation42_spill]] %s5590_s21  ;;  %s5515_s1 = smov 13  }
   0xc   :  { %s5610_s8 = sld [smem:[%s6892_s0 + %s5510_s4]]   ;;  %s5516_s7 = smov 14  }
   0xd   :  { %s5615_s14 = sld [smem:[%s6892_s0 + %s5511_s10]]   ;;  %s5518_s22 = smov 16  }
   0xe   :  { %s5620_s19 = sld [smem:[%s6892_s0 + %s5512_s15]]   ;;  %s5517_s15 = smov 15  }
   0xf   :  { %s5625_s24 = sld [smem:[%s6892_s0 + %s5513_s20]]   ;;  %s5519_s28 = smov 17  }
  0x10   :  { %6936 = sst [smem:[#allocation43_spill]] %s5605_s3 }
  0x11   :  { %s5630_s30 = sld [smem:[%s6892_s0 + %s5514_s26]]  }
  0x12   :  { %6937 = sst [smem:[#allocation44_spill]] %s5610_s8 }
  0x13   :  { %6938 = sst [smem:[#allocation45_spill]] %s5615_s14 }
  0x14   :  { %s5635_s6 = sld [smem:[%s6892_s0 + %s5515_s1]]  }
  0x15   :  { %6939 = sst [smem:[#allocation46_spill]] %s5625_s24 }
  0x16   :  { %s5640_s12 = sld [smem:[%s6892_s0 + %s5516_s7]]   ;;  %s5520_s7 = smov 18  }
  0x17   :  { %s5645_s20 = sld [smem:[%s6892_s0 + %s5517_s15]]   ;;  %s5521_s15 = smov 19  }
  0x18   :  { %s5650_s27 = sld [smem:[%s6892_s0 + %s5518_s22]]   ;;  %s5522_s22 = smov 20  }
  0x19   :  { %s5655_s4 = sld [smem:[%s6892_s0 + %s5519_s28]]   ;;  %s5523_s28 = smov 21  }
  0x1a   :  { %6940 = sst [smem:[#allocation47_spill]] %s5635_s6 }
  0x1b   :  { %s5670_s24 = sld [smem:[%s6892_s0 + %s5522_s22]]   ;;  %s5526_s22 = smov 24  }
  0x1c   :  { %6941 = sst [smem:[#allocation48_spill]] %s5640_s12 }
  0x1d   :  { %6942 = sst [smem:[#allocation49_spill]] %s5645_s20 }
  0x1e   :  { %s5660_s12 = sld [smem:[%s6892_s0 + %s5520_s7]]   ;;  %s5524_s7 = smov 22  }
  0x1f   :  { %6943 = sst [smem:[#allocation50_spill]] %s5655_s4 }
  0x20   :  { %s5665_s20 = sld [smem:[%s6892_s0 + %s5521_s15]]   ;;  %s5525_s15 = smov 23  }
  0x21   :  { %s5675_s4 = sld [smem:[%s6892_s0 + %s5523_s28]]   ;;  %s5527_s28 = smov 25  }
  0x22   :  { %s5680_s14 = sld [smem:[%s6892_s0 + %s5524_s7]]   ;;  %s5528_s7 = smov 26  }
  0x23   :  { %s5690_s5 = sld [smem:[%s6892_s0 + %s5526_s22]]   ;;  %s5530_s22 = smov 28  }
  0x24   :  { %6944 = sst [smem:[#allocation51_spill]] %s5660_s12 }
  0x25   :  { %s5710_s12 = sld [smem:[%s6892_s0 + %s5530_s22]]   ;;  %s5534_s22 = smov 32  }
  0x26   :  { %6945 = sst [smem:[#allocation52_spill]] %s5665_s20 }
  0x27   :  { %6946 = sst [smem:[#allocation53_spill]] %s5675_s4 }
  0x28   :  { %6947 = sst [smem:[#allocation54_spill]] %s5680_s14 }
  0x29   :  { %s5685_s20 = sld [smem:[%s6892_s0 + %s5525_s15]]   ;;  %s5529_s15 = smov 27  }
  0x2a   :  { %6949 = sst [smem:[#allocation56_spill]] %s5690_s5 }
  0x2b   :  { %s5695_s4 = sld [smem:[%s6892_s0 + %s5527_s28]]   ;;  %s5531_s28 = smov 29  }
  0x2c   :  { %s5700_s14 = sld [smem:[%s6892_s0 + %s5528_s7]]   ;;  %s5532_s7 = smov 30  }
  0x2d   :  { %6953 = sst [smem:[#allocation60_spill]] %s5710_s12 }
  0x2e   :  { %s5730_s12 = sld [smem:[%s6892_s0 + %s5534_s22]]  }
  0x2f   :  { %6948 = sst [smem:[#allocation55_spill]] %s5685_s20 }
  0x30   :  { %s5705_s20 = sld [smem:[%s6892_s0 + %s5529_s15]]   ;;  %s5533_s15 = smov 31  }
  0x31   :  { %6950 = sst [smem:[#allocation57_spill]] %s5695_s4 }
  0x32   :  { %6951 = sst [smem:[#allocation58_spill]] %s5700_s14 }
  0x33   :  { %s5715_s4 = sld [smem:[%s6892_s0 + %s5531_s28]]   ;;  %s5535_s28 = smov 33  }
  0x34   :  { %s5720_s14 = sld [smem:[%s6892_s0 + %s5532_s7]]  }
  0x36   :  { %6952 = sst [smem:[#allocation59_spill]] %s5705_s20 }
  0x37   :  { %s5725_s20 = sld [smem:[%s6892_s0 + %s5533_s15]]  }
  0x39   :  { %6954 = sst [smem:[#allocation61_spill]] %s5715_s4 }
  0x3a   :  { %s5735_s4 = sld [smem:[%s6892_s0 + %s5535_s28]]  }
  0x3b   :  { %72 = vsyncpa [#allocation3], 0 }
  0x3c   :  { %73 = vsyncpa [#allocation5], 0 }
  0x3d   :  { %74 = vsyncpa [#allocation8], 0 }
  0x3e   :  { %75 = vsyncpa [#allocation11], 0 }
  0x3f   :  { %76 = vsyncpa [#allocation14], 0 }
  0x40   :  { %77 = vsyncpa [#allocation17], 0 }
  0x41   :  { %78 = vsyncpa [#allocation20], 0 }
  0x42   :  { %79 = vsyncpa [#allocation23], 0 }
  0x43   :  { %80 = vsyncpa [#allocation26], 0 }
  0x44   :  { %81 = vsyncpa [#allocation29], 0  ;;  %s5737_s7 = smov 0  }
  0x45 LB: > { %s6955_s8 = sld [smem:[#allocation44_spill]]  ;;  %s5743_s0 = sadd.s32 4294967295, %s5501_s7   ;;  %s5501_s7 = sphi %s5737_s7, %s87_s7  }
  0x46   : > { %s6956_s6 = sld [smem:[#allocation47_spill]]  ;;  %p4369_p0 = scmp.ge.s32.totalorder %s5501_s7, 1 }
  0x47   : > { %s6957_s5 = sld [smem:[#allocation56_spill]]  ;;  %p816_p1 = scmp.lt.s32.totalorder %s5501_s7, 3 }
  0x48   : > { %s6958_s3 = sld [smem:[#allocation43_spill]]  ;;  %p4678_p2 = scmp.eq.s32.totalorder %s5743_s0, 0 }
  0x49   : > { %s6959_s21 = sld [smem:[#allocation42_spill]]  ;;  %p5749_p3 = pnand %p4369_p0, %p816_p1 }
  0x4a   : > { %s6960_s13 = sld [smem:[#allocation41_spill]]  ;;  %s5536_s16 = smov [#allocation4]  }
  0x4b   : > { %6961 = sst [smem:[#allocation62_spill]] %s5501_s7  ;;  %p4623_p4 = pneg %p5749_p3 }
  0x4c   : > { %s843_s18 = sshll.u32 %s5536_s16, 4  ;;  %s5537_s23 = smov [#allocation7]   ;;  %s844_s18 = int_to_ptr.vmem [resolvable:$true] %s843_s18 }
  0x4d   : > { %p5762_p5 = pnand %p4678_p2, %p4623_p4  ;;  %s5766_s26 = sshll.u32 %s5537_s23, 4 }
  0x4e   : > { %6964 = sst [smem:[#allocation63_spill]] %s5766_s26 }
  0x4f   : > { %s869_s15 = sshll.u32 %s6959_s21, 4  ;;  %p5773_p7 = pneg %p5762_p5  ;;  %s5758_s15 = int_to_ptr.hbm [resolvable:$true] %s869_s15 }
  0x50   : > { %s841_s10 = sshll.u32 %s6960_s13, 4  ;;  %s4922_s7 = scalar_lea.hbm %s6960_s13, 16  ;;  %s5753_s10 = int_to_ptr.hbm [resolvable:$true] %s841_s10 }
  0x51   : > { %s4915_s1 = sshra.s32 %s5753_s10, 4  ;;  %s4916_s1 = int_to_ptr.hbm [resolvable:$true] %s4915_s1 }
  0x52   : > { %s4917_s2 = scalar_lea.hbm %s4916_s1, 16  ;;  %p4923_p10 = scmp.lt.s32.totalorder %s4916_s1, %s6960_s13 }
  0x53   : > { %p4918_p6 = scmp.ne.s32.totalorder %s4916_s1, %s4917_s2  ;;  %p4924_p11 = scmp.lt.s32.totalorder %s4922_s7, %s4917_s2 }
  0x55   : > { %p4920_p8 = pnand %p5773_p7, %p4918_p6  ;;  %p4925_p12 = por %p4924_p11, %p4923_p10 }
  0x57   : > { %p4921_p9 = pneg %p4920_p8 }
  0x59   : > { %p4926_p13 = pnand %p4925_p12, %p4921_p9 }
  0x5b   : > { %4929 = shalt.err (!%p4926_p13)
}
  0x5c   : > { %s5538_s23 = smov 128   ;;  %s5539_s28 = smov 8  }
  0x5d   : > { %4629 = dma.hbm_to_vmem [thread:$0]  (!%p5762_p5), %s5753_s10, 256, %s844_s18, [#allocation5], %s5538_s23, %s5538_s23, %s5539_s28  }
  0x5e   : > { %s4945_s26 = sshra.s32 %s5758_s15, 4  ;;  %s4952_s7 = scalar_lea.hbm %s6959_s21, 16  ;;  %s4946_s26 = int_to_ptr.hbm [resolvable:$true] %s4945_s26 }
  0x5f   : > { %s4947_s1 = scalar_lea.hbm %s4946_s26, 16  ;;  %p4953_p6 = scmp.lt.s32.totalorder %s4946_s26, %s6959_s21 }
  0x60   : > { %p4948_p0 = scmp.ne.s32.totalorder %s4946_s26, %s4947_s1  ;;  %p4954_p8 = scmp.lt.s32.totalorder %s4952_s7, %s4947_s1 }
  0x62   : > { %p4950_p1 = pnand %p4948_p0, %p5773_p7  ;;  %p4955_p9 = por %p4954_p8, %p4953_p6 }
  0x64   : > { %p4951_p4 = pneg %p4950_p1 }
  0x66   : > { %p4956_p10 = pnand %p4955_p9, %p4951_p4 }
  0x68   : > { %4959 = shalt.err (!%p4956_p10)
}
  0x69   : > { %s6966_s2 = sld [smem:[#allocation63_spill]]  ;;  %s6968_s18 = sshll.u32 %s5600_s29, 4  ;;  %s898_s18 = int_to_ptr.hbm [resolvable:$true] %s6968_s18 }
  0x6a   : > { %s5540_s26 = smov [#allocation10]   ;;  %s925_s7 = sshll.u32 %s6955_s8, 4  ;;  %s5803_s7 = int_to_ptr.hbm [resolvable:$true] %s925_s7 }
  0x6b   : > { %s899_s1 = sshll.u32 %s5540_s26, 4  ;;  %s4975_s13 = sshra.s32 %s898_s18, 4  ;;  %s900_s1 = int_to_ptr.vmem [resolvable:$true] %s899_s1  ;;  %s4976_s13 = int_to_ptr.hbm [resolvable:$true] %s4975_s13 }
  0x6c   : > { %s4977_s21 = scalar_lea.hbm %s4976_s13, 24  ;;  %p4983_p0 = scmp.lt.s32.totalorder %s4976_s13, %s5600_s29 }
  0x6d   : > { %p4978_p11 = scmp.ne.s32.totalorder %s4976_s13, %s4977_s21 }
  0x6f   : > { %s6967_s10 = int_to_ptr.vmem [resolvable:$true] %s6966_s2  ;;  %p4980_p12 = pnand %p4978_p11, %p5773_p7 }
  0x70   : > { %4635 = dma.hbm_to_vmem [thread:$0]  (!%p5762_p5), %s5758_s15, 256, %s6967_s10, [#allocation8], %s5538_s23, %s5538_s23, %s5539_s28  }
  0x71   : > { %p4981_p13 = pneg %p4980_p12  ;;  %s4982_s2 = scalar_lea.hbm %s5600_s29, 24 }
  0x72   : > { %p4984_p1 = scmp.lt.s32.totalorder %s4982_s2, %s4977_s21 }
  0x74   : > { %p4985_p4 = por %p4984_p1, %p4983_p0 }
  0x76   : > { %p4986_p6 = pnand %p4985_p4, %p4981_p13 }
  0x78   : > { %4989 = shalt.err (!%p4986_p6)
}
  0x79   : > { %4641 = dma.hbm_to_vmem [thread:$0]  (!%p5762_p5), %s898_s18, 384, %s900_s1, [#allocation11], %s5538_s23, %s5538_s23, %s5539_s28  }
  0x7a   : > { %s959_s15 = sshll.u32 %s5630_s30, 4  ;;  %s5541_s10 = smov [#allocation13]   ;;  %s5815_s15 = int_to_ptr.hbm [resolvable:$true] %s959_s15 }
  0x7b   : > { %s927_s26 = sshll.u32 %s5541_s10, 4  ;;  %s5005_s13 = sshra.s32 %s5803_s7, 4  ;;  %s928_s26 = int_to_ptr.vmem [resolvable:$true] %s927_s26  ;;  %s5006_s13 = int_to_ptr.hbm [resolvable:$true] %s5005_s13 }
  0x7c   : > { %s5007_s21 = scalar_lea.hbm %s5006_s13, 32  ;;  %s5012_s2 = scalar_lea.hbm %s6955_s8, 32 }
  0x7d   : > { %p5008_p8 = scmp.ne.s32.totalorder %s5006_s13, %s5007_s21  ;;  %p5013_p11 = scmp.lt.s32.totalorder %s5006_s13, %s6955_s8 }
  0x7e   : > { %p5014_p12 = scmp.lt.s32.totalorder %s5012_s2, %s5007_s21 }
  0x7f   : > { %p5010_p9 = pnand %p5008_p8, %p5773_p7 }
  0x80   : > { %p5015_p13 = por %p5014_p12, %p5013_p11 }
  0x81   : > { %p5011_p10 = pneg %p5010_p9 }
  0x83   : > { %p5016_p0 = pnand %p5015_p13, %p5011_p10 }
  0x85   : > { %5019 = shalt.err (!%p5016_p0)
}
  0x86   : > { %4647 = dma.hbm_to_vmem [thread:$0]  (!%p5762_p5), %s5803_s7, 512, %s928_s26, [#allocation14], %s5538_s23, %s5538_s23, %s5539_s28  }
  0x87   : > { %s5542_s18 = smov [#allocation16]   ;;  %s993_s10 = sshll.u32 %s5650_s27, 4  ;;  %s5829_s10 = int_to_ptr.hbm [resolvable:$true] %s993_s10 }
  0x88   : > { %s961_s1 = sshll.u32 %s5542_s18, 4  ;;  %s5035_s13 = sshra.s32 %s5815_s15, 4  ;;  %s962_s1 = int_to_ptr.vmem [resolvable:$true] %s961_s1  ;;  %s5036_s13 = int_to_ptr.hbm [resolvable:$true] %s5035_s13 }
  0x89   : > { %s5037_s21 = scalar_lea.hbm %s5036_s13, 32  ;;  %s5042_s2 = scalar_lea.hbm %s5630_s30, 32 }
  0x8a   : > { %p5038_p1 = scmp.ne.s32.totalorder %s5036_s13, %s5037_s21  ;;  %p5043_p8 = scmp.lt.s32.totalorder %s5036_s13, %s5630_s30 }
  0x8b   : > { %p5044_p9 = scmp.lt.s32.totalorder %s5042_s2, %s5037_s21 }
  0x8c   : > { %p5040_p4 = pnand %p5038_p1, %p5773_p7 }
  0x8d   : > { %p5045_p10 = por %p5044_p9, %p5043_p8 }
  0x8e   : > { %p5041_p6 = pneg %p5040_p4 }
  0x90   : > { %p5046_p11 = pnand %p5045_p10, %p5041_p6 }
  0x92   : > { %5049 = shalt.err (!%p5046_p11)
}
  0x93   : > { %4653 = dma.hbm_to_vmem [thread:$0]  (!%p5762_p5), %s5815_s15, 512, %s962_s1, [#allocation17], %s5538_s23, %s5538_s23, %s5539_s28  }
  0x94   : > { %s1027_s7 = sshll.u32 %s5670_s24, 4  ;;  %s5543_s26 = smov [#allocation19]   ;;  %s5843_s7 = int_to_ptr.hbm [resolvable:$true] %s1027_s7 }
  0x95   : > { %s995_s18 = sshll.u32 %s5543_s26, 4  ;;  %s5065_s13 = sshra.s32 %s5829_s10, 4  ;;  %s996_s18 = int_to_ptr.vmem [resolvable:$true] %s995_s18  ;;  %s5066_s13 = int_to_ptr.hbm [resolvable:$true] %s5065_s13 }
  0x96   : > { %s5067_s21 = scalar_lea.hbm %s5066_s13, 32  ;;  %s5072_s2 = scalar_lea.hbm %s5650_s27, 32 }
  0x97   : > { %p5068_p12 = scmp.ne.s32.totalorder %s5066_s13, %s5067_s21  ;;  %p5073_p1 = scmp.lt.s32.totalorder %s5066_s13, %s5650_s27 }
  0x98   : > { %p5074_p4 = scmp.lt.s32.totalorder %s5072_s2, %s5067_s21 }
  0x99   : > { %p5070_p13 = pnand %p5068_p12, %p5773_p7 }
  0x9a   : > { %p5075_p6 = por %p5074_p4, %p5073_p1 }
  0x9b   : > { %p5071_p0 = pneg %p5070_p13 }
  0x9d   : > { %p5076_p8 = pnand %p5075_p6, %p5071_p0 }
  0x9f   : > { %5079 = shalt.err (!%p5076_p8)
}
  0xa0   : > { %4659 = dma.hbm_to_vmem [thread:$0]  (!%p5762_p5), %s5829_s10, 512, %s996_s18, [#allocation20], %s5538_s23, %s5538_s23, %s5539_s28  }
  0xa1   : > { %s5544_s15 = smov [#allocation22]   ;;  %s1061_s26 = sshll.u32 %s6957_s5, 4  ;;  %s5857_s26 = int_to_ptr.hbm [resolvable:$true] %s1061_s26 }
  0xa2   : > { %s1029_s1 = sshll.u32 %s5544_s15, 4  ;;  %s5095_s13 = sshra.s32 %s5843_s7, 4  ;;  %s1030_s1 = int_to_ptr.vmem [resolvable:$true] %s1029_s1  ;;  %s5096_s13 = int_to_ptr.hbm [resolvable:$true] %s5095_s13 }
  0xa3   : > { %s5097_s21 = scalar_lea.hbm %s5096_s13, 32  ;;  %s5102_s2 = scalar_lea.hbm %s5670_s24, 32 }
  0xa4   : > { %p5098_p9 = scmp.ne.s32.totalorder %s5096_s13, %s5097_s21  ;;  %p5103_p12 = scmp.lt.s32.totalorder %s5096_s13, %s5670_s24 }
  0xa5   : > { %p5104_p13 = scmp.lt.s32.totalorder %s5102_s2, %s5097_s21 }
  0xa6   : > { %p5100_p10 = pnand %p5098_p9, %p5773_p7 }
  0xa7   : > { %p5105_p0 = por %p5104_p13, %p5103_p12 }
  0xa8   : > { %p5101_p11 = pneg %p5100_p10 }
  0xaa   : > { %p5106_p1 = pnand %p5105_p0, %p5101_p11 }
  0xac   : > { %5109 = shalt.err (!%p5106_p1)
}
  0xad   : > { %4665 = dma.hbm_to_vmem [thread:$0]  (!%p5762_p5), %s5843_s7, 512, %s1030_s1, [#allocation23], %s5538_s23, %s5538_s23, %s5539_s28  }
  0xae   : > { %s827_s10 = sshll.u32 %s5575_s9, 4  ;;  %s5545_s18 = smov [#allocation25]   ;;  %s5871_s10 = int_to_ptr.hbm [resolvable:$true] %s827_s10 }
  0xaf   : > { %s1063_s15 = sshll.u32 %s5545_s18, 4  ;;  %s5125_s13 = sshra.s32 %s5857_s26, 4  ;;  %s1064_s15 = int_to_ptr.vmem [resolvable:$true] %s1063_s15  ;;  %s5126_s13 = int_to_ptr.hbm [resolvable:$true] %s5125_s13 }
  0xb0   : > { %s5127_s21 = scalar_lea.hbm %s5126_s13, 32  ;;  %s5132_s2 = scalar_lea.hbm %s6957_s5, 32 }
  0xb1   : > { %p5128_p4 = scmp.ne.s32.totalorder %s5126_s13, %s5127_s21  ;;  %p5133_p9 = scmp.lt.s32.totalorder %s5126_s13, %s6957_s5 }
  0xb2   : > { %p5134_p10 = scmp.lt.s32.totalorder %s5132_s2, %s5127_s21 }
  0xb3   : > { %p5130_p6 = pnand %p5128_p4, %p5773_p7 }
  0xb4   : > { %p5135_p11 = por %p5134_p10, %p5133_p9 }
  0xb5   : > { %p5131_p8 = pneg %p5130_p6 }
  0xb7   : > { %p5136_p12 = pnand %p5135_p11, %p5131_p8 }
  0xb9   : > { %5139 = shalt.err (!%p5136_p12)
}
  0xba   : > { %4671 = dma.hbm_to_vmem [thread:$0]  (!%p5762_p5), %s5857_s26, 512, %s1064_s15, [#allocation26], %s5538_s23, %s5538_s23, %s5539_s28  }
  0xbb   : > { %s5546_s7 = smov [#allocation2]   ;;  %s855_s18 = sshll.u32 %s5585_s17, 4  ;;  %s5885_s18 = int_to_ptr.hbm [resolvable:$true] %s855_s18 }
  0xbc   : > { %s829_s1 = sshll.u32 %s5546_s7, 4  ;;  %s5155_s13 = sshra.s32 %s5871_s10, 4  ;;  %s830_s1 = int_to_ptr.vmem [resolvable:$true] %s829_s1  ;;  %s5156_s13 = int_to_ptr.hbm [resolvable:$true] %s5155_s13 }
  0xbd   : > { %s5157_s21 = scalar_lea.hbm %s5156_s13, 16  ;;  %s5162_s2 = scalar_lea.hbm %s5575_s9, 16 }
  0xbe   : > { %p5158_p13 = scmp.ne.s32.totalorder %s5156_s13, %s5157_s21  ;;  %p5163_p4 = scmp.lt.s32.totalorder %s5156_s13, %s5575_s9 }
  0xbf   : > { %p5164_p6 = scmp.lt.s32.totalorder %s5162_s2, %s5157_s21 }
  0xc0   : > { %p5160_p0 = pnand %p5158_p13, %p5773_p7 }
  0xc1   : > { %p5165_p8 = por %p5164_p6, %p5163_p4 }
  0xc2   : > { %p5161_p1 = pneg %p5160_p0 }
  0xc4   : > { %p5166_p9 = pnand %p5165_p8, %p5161_p1 }
  0xc6   : > { %5169 = shalt.err (!%p5166_p9)
}
  0xc7   : > { %4626 = dma.hbm_to_vmem [thread:$0]  (!%p5762_p5), %s5871_s10, 256, %s830_s1, [#allocation3], %s5538_s23, %s5538_s23, %s5539_s28  }
  0xc8   : > { %s883_s26 = sshll.u32 %s5595_s25, 4  ;;  %s5547_s15 = smov [#allocation6]   ;;  %s5899_s26 = int_to_ptr.hbm [resolvable:$true] %s883_s26 }
  0xc9   : > { %s857_s7 = sshll.u32 %s5547_s15, 4  ;;  %s5185_s13 = sshra.s32 %s5885_s18, 4  ;;  %s858_s7 = int_to_ptr.vmem [resolvable:$true] %s857_s7  ;;  %s5186_s13 = int_to_ptr.hbm [resolvable:$true] %s5185_s13 }
  0xca   : > { %s5187_s21 = scalar_lea.hbm %s5186_s13, 16  ;;  %s5192_s2 = scalar_lea.hbm %s5585_s17, 16 }
  0xcb   : > { %p5188_p10 = scmp.ne.s32.totalorder %s5186_s13, %s5187_s21  ;;  %p5193_p13 = scmp.lt.s32.totalorder %s5186_s13, %s5585_s17 }
  0xcc   : > { %p5194_p0 = scmp.lt.s32.totalorder %s5192_s2, %s5187_s21 }
  0xcd   : > { %p5190_p11 = pnand %p5188_p10, %p5773_p7 }
  0xce   : > { %p5195_p1 = por %p5194_p0, %p5193_p13 }
  0xcf   : > { %p5191_p12 = pneg %p5190_p11 }
  0xd1   : > { %p5196_p4 = pnand %p5195_p1, %p5191_p12 }
  0xd3   : > { %5199 = shalt.err (!%p5196_p4)
}
  0xd4   : > { %4632 = dma.hbm_to_vmem [thread:$0]  (!%p5762_p5), %s5885_s18, 256, %s858_s7, [#allocation5], %s5538_s23, %s5538_s23, %s5539_s28  }
  0xd5   : > { %s5548_s10 = smov [#allocation9]   ;;  %s911_s15 = sshll.u32 %s6958_s3, 4  ;;  %s5913_s15 = int_to_ptr.hbm [resolvable:$true] %s911_s15 }
  0xd6   : > { %s885_s1 = sshll.u32 %s5548_s10, 4  ;;  %s5215_s13 = sshra.s32 %s5899_s26, 4  ;;  %s886_s1 = int_to_ptr.vmem [resolvable:$true] %s885_s1  ;;  %s5216_s13 = int_to_ptr.hbm [resolvable:$true] %s5215_s13 }
  0xd7   : > { %s5217_s21 = scalar_lea.hbm %s5216_s13, 256  ;;  %s5222_s2 = scalar_lea.hbm %s5595_s25, 256 }
  0xd8   : > { %p5218_p6 = scmp.ne.s32.totalorder %s5216_s13, %s5217_s21  ;;  %p5223_p10 = scmp.lt.s32.totalorder %s5216_s13, %s5595_s25 }
  0xd9   : > { %p5224_p11 = scmp.lt.s32.totalorder %s5222_s2, %s5217_s21 }
  0xda   : > { %p5220_p8 = pnand %p5218_p6, %p5773_p7 }
  0xdb   : > { %p5225_p12 = por %p5224_p11, %p5223_p10 }
  0xdc   : > { %p5221_p9 = pneg %p5220_p8 }
  0xde   : > { %p5226_p13 = pnand %p5225_p12, %p5221_p9 }
  0xe0   : > { %5229 = shalt.err (!%p5226_p13)
}
  0xe1   : > { %4638 = dma.hbm_to_vmem [thread:$0]  (!%p5762_p5), %s5899_s26, 4096, %s886_s1, [#allocation8], %s5538_s23, %s5538_s23, %s5539_s28  }
  0xe2   : > { %s942_s18 = sshll.u32 %s5620_s19, 4  ;;  %s5549_s7 = smov [#allocation12]   ;;  %s5927_s18 = int_to_ptr.hbm [resolvable:$true] %s942_s18 }
  0xe3   : > { %s913_s10 = sshll.u32 %s5549_s7, 4  ;;  %s5245_s13 = sshra.s32 %s5913_s15, 4  ;;  %s914_s10 = int_to_ptr.vmem [resolvable:$true] %s913_s10  ;;  %s5246_s13 = int_to_ptr.hbm [resolvable:$true] %s5245_s13 }
  0xe4   : > { %s5247_s21 = scalar_lea.hbm %s5246_s13, 24  ;;  %s5252_s2 = scalar_lea.hbm %s6958_s3, 24 }
  0xe5   : > { %p5248_p0 = scmp.ne.s32.totalorder %s5246_s13, %s5247_s21  ;;  %p5253_p6 = scmp.lt.s32.totalorder %s5246_s13, %s6958_s3 }
  0xe6   : > { %p5254_p8 = scmp.lt.s32.totalorder %s5252_s2, %s5247_s21 }
  0xe7   : > { %p5250_p1 = pnand %p5248_p0, %p5773_p7 }
  0xe8   : > { %p5255_p9 = por %p5254_p8, %p5253_p6 }
  0xe9   : > { %p5251_p4 = pneg %p5250_p1 }
  0xeb   : > { %p5256_p10 = pnand %p5255_p9, %p5251_p4 }
  0xed   : > { %5259 = shalt.err (!%p5256_p10)
}
  0xee   : > { %4644 = dma.hbm_to_vmem [thread:$0]  (!%p5762_p5), %s5913_s15, 384, %s914_s10, [#allocation11], %s5538_s23, %s5538_s23, %s5539_s28  }
  0xef   : > { %s5550_s26 = smov [#allocation15]   ;;  %s973_s7 = sshll.u32 %s6956_s6, 4  ;;  %s5941_s7 = int_to_ptr.hbm [resolvable:$true] %s973_s7 }
  0xf0   : > { %s944_s1 = sshll.u32 %s5550_s26, 4  ;;  %s5275_s13 = sshra.s32 %s5927_s18, 4  ;;  %s945_s1 = int_to_ptr.vmem [resolvable:$true] %s944_s1  ;;  %s5276_s13 = int_to_ptr.hbm [resolvable:$true] %s5275_s13 }
  0xf1   : > { %s5277_s21 = scalar_lea.hbm %s5276_s13, 32  ;;  %s5282_s2 = scalar_lea.hbm %s5620_s19, 32 }
  0xf2   : > { %p5278_p11 = scmp.ne.s32.totalorder %s5276_s13, %s5277_s21  ;;  %p5283_p0 = scmp.lt.s32.totalorder %s5276_s13, %s5620_s19 }
  0xf3   : > { %p5284_p1 = scmp.lt.s32.totalorder %s5282_s2, %s5277_s21 }
  0xf4   : > { %p5280_p12 = pnand %p5278_p11, %p5773_p7 }
  0xf5   : > { %p5285_p4 = por %p5284_p1, %p5283_p0 }
  0xf6   : > { %p5281_p13 = pneg %p5280_p12 }
  0xf8   : > { %p5286_p6 = pnand %p5285_p4, %p5281_p13 }
  0xfa   : > { %5289 = shalt.err (!%p5286_p6)
}
  0xfb   : > { %s6969_s15 = sld [smem:[#allocation51_spill]]  ;;  %s5551_s26 = smov [#allocation18]  }
  0xfc   : > { %4650 = dma.hbm_to_vmem [thread:$0]  (!%p5762_p5), %s5927_s18, 512, %s945_s1, [#allocation14], %s5538_s23, %s5538_s23, %s5539_s28  }
  0xfd   : > { %s975_s3 = sshll.u32 %s5551_s26, 4  ;;  %s5305_s13 = sshra.s32 %s5941_s7, 4  ;;  %s976_s3 = int_to_ptr.vmem [resolvable:$true] %s975_s3  ;;  %s5306_s13 = int_to_ptr.hbm [resolvable:$true] %s5305_s13 }
  0xfe   : > { %s5307_s21 = scalar_lea.hbm %s5306_s13, 32  ;;  %s5312_s2 = scalar_lea.hbm %s6956_s6, 32 }
  0xff   : > { %p5308_p8 = scmp.ne.s32.totalorder %s5306_s13, %s5307_s21  ;;  %p5313_p11 = scmp.lt.s32.totalorder %s5306_s13, %s6956_s6 }
 0x100   : > { %p5314_p12 = scmp.lt.s32.totalorder %s5312_s2, %s5307_s21 }
 0x101   : > { %s1010_s10 = sshll.u32 %s6969_s15, 4  ;;  %p5310_p9 = pnand %p5308_p8, %p5773_p7  ;;  %s5955_s10 = int_to_ptr.hbm [resolvable:$true] %s1010_s10 }
 0x102   : > { %p5315_p13 = por %p5314_p12, %p5313_p11 }
 0x103   : > { %p5311_p10 = pneg %p5310_p9 }
 0x105   : > { %p5316_p0 = pnand %p5315_p13, %p5311_p10 }
 0x107   : > { %5319 = shalt.err (!%p5316_p0)
}
 0x108   : > { %s6970_s18 = sld [smem:[#allocation54_spill]]  ;;  %s5552_s1 = smov [#allocation21]  }
 0x109   : > { %4656 = dma.hbm_to_vmem [thread:$0]  (!%p5762_p5), %s5941_s7, 512, %s976_s3, [#allocation17], %s5538_s23, %s5538_s23, %s5539_s28  }
 0x10a   : > { %s1012_s26 = sshll.u32 %s5552_s1, 4  ;;  %s5335_s13 = sshra.s32 %s5955_s10, 4  ;;  %s1013_s26 = int_to_ptr.vmem [resolvable:$true] %s1012_s26  ;;  %s5336_s13 = int_to_ptr.hbm [resolvable:$true] %s5335_s13 }
 0x10b   : > { %s5337_s21 = scalar_lea.hbm %s5336_s13, 32  ;;  %s5342_s2 = scalar_lea.hbm %s6969_s15, 32 }
 0x10c   : > { %p5338_p1 = scmp.ne.s32.totalorder %s5336_s13, %s5337_s21  ;;  %p5343_p8 = scmp.lt.s32.totalorder %s5336_s13, %s6969_s15 }
 0x10d   : > { %p5344_p9 = scmp.lt.s32.totalorder %s5342_s2, %s5337_s21 }
 0x10e   : > { %s1044_s5 = sshll.u32 %s6970_s18, 4  ;;  %p5340_p4 = pnand %p5338_p1, %p5773_p7  ;;  %s5969_s5 = int_to_ptr.hbm [resolvable:$true] %s1044_s5 }
 0x10f   : > { %p5345_p10 = por %p5344_p9, %p5343_p8 }
 0x110   : > { %p5341_p6 = pneg %p5340_p4 }
 0x112   : > { %p5346_p11 = pnand %p5345_p10, %p5341_p6 }
 0x114   : > { %5349 = shalt.err (!%p5346_p11)
}
 0x115   : > { %s6971_s3 = sld [smem:[#allocation58_spill]]  ;;  %s5553_s1 = smov [#allocation24]  }
 0x116   : > { %4662 = dma.hbm_to_vmem [thread:$0]  (!%p5762_p5), %s5955_s10, 512, %s1013_s26, [#allocation20], %s5538_s23, %s5538_s23, %s5539_s28  }
 0x117   : > { %s1046_s6 = sshll.u32 %s5553_s1, 4  ;;  %s5365_s13 = sshra.s32 %s5969_s5, 4  ;;  %s1047_s6 = int_to_ptr.vmem [resolvable:$true] %s1046_s6  ;;  %s5366_s13 = int_to_ptr.hbm [resolvable:$true] %s5365_s13 }
 0x118   : > { %s5367_s21 = scalar_lea.hbm %s5366_s13, 32  ;;  %s5372_s2 = scalar_lea.hbm %s6970_s18, 32 }
 0x119   : > { %p5368_p12 = scmp.ne.s32.totalorder %s5366_s13, %s5367_s21  ;;  %p5373_p1 = scmp.lt.s32.totalorder %s5366_s13, %s6970_s18 }
 0x11a   : > { %p5374_p4 = scmp.lt.s32.totalorder %s5372_s2, %s5367_s21 }
 0x11b   : > { %s1078_s7 = sshll.u32 %s6971_s3, 4  ;;  %p5370_p13 = pnand %p5368_p12, %p5773_p7  ;;  %s5983_s7 = int_to_ptr.hbm [resolvable:$true] %s1078_s7 }
 0x11c   : > { %p5375_p6 = por %p5374_p4, %p5373_p1 }
 0x11d   : > { %p5371_p0 = pneg %p5370_p13 }
 0x11f   : > { %p5376_p8 = pnand %p5375_p6, %p5371_p0 }
 0x121   : > { %5379 = shalt.err (!%p5376_p8)
}
 0x122   : > { %s6972_s10 = sld [smem:[#allocation60_spill]]  ;;  %s5554_s26 = smov [#allocation27]  }
 0x123   : > { %4668 = dma.hbm_to_vmem [thread:$0]  (!%p5762_p5), %s5969_s5, 512, %s1047_s6, [#allocation23], %s5538_s23, %s5538_s23, %s5539_s28  }
 0x124   : > { %s1080_s1 = sshll.u32 %s5554_s26, 4  ;;  %s5395_s13 = sshra.s32 %s5983_s7, 4  ;;  %s1081_s1 = int_to_ptr.vmem [resolvable:$true] %s1080_s1  ;;  %s5396_s13 = int_to_ptr.hbm [resolvable:$true] %s5395_s13 }
 0x125   : > { %s5397_s21 = scalar_lea.hbm %s5396_s13, 32  ;;  %s5402_s2 = scalar_lea.hbm %s6971_s3, 32 }
 0x126   : > { %p5398_p9 = scmp.ne.s32.totalorder %s5396_s13, %s5397_s21  ;;  %p5403_p12 = scmp.lt.s32.totalorder %s5396_s13, %s6971_s3 }
 0x127   : > { %p5404_p13 = scmp.lt.s32.totalorder %s5402_s2, %s5397_s21 }
 0x128   : > { %s1095_s8 = sshll.u32 %s6972_s10, 4  ;;  %p5400_p10 = pnand %p5398_p9, %p5773_p7  ;;  %s1096_s8 = int_to_ptr.hbm [resolvable:$true] %s1095_s8 }
 0x129   : > { %p5405_p0 = por %p5404_p13, %p5403_p12 }
 0x12a   : > { %p5401_p11 = pneg %p5400_p10 }
 0x12c   : > { %p5406_p1 = pnand %p5405_p0, %p5401_p11 }
 0x12e   : > { %5409 = shalt.err (!%p5406_p1)
}
 0x12f   : > { %4674 = dma.hbm_to_vmem [thread:$0]  (!%p5762_p5), %s5983_s7, 512, %s1081_s1, [#allocation26], %s5538_s23, %s5538_s23, %s5539_s28  }
 0x130   : > { %s5555_s5 = smov [#allocation28]   ;;  %s5425_s26 = sshra.s32 %s1096_s8, 4  ;;  %s5426_s26 = int_to_ptr.hbm [resolvable:$true] %s5425_s26 }
 0x131   : > { %s1097_s6 = sshll.u32 %s5555_s5, 4  ;;  %s5427_s13 = scalar_lea.hbm %s5426_s26, 96  ;;  %s1098_s6 = int_to_ptr.vmem [resolvable:$true] %s1097_s6 }
 0x132   : > { %p5428_p4 = scmp.ne.s32.totalorder %s5426_s26, %s5427_s13  ;;  %s5432_s21 = scalar_lea.hbm %s6972_s10, 96 }
 0x133   : > { %p5433_p9 = scmp.lt.s32.totalorder %s5426_s26, %s6972_s10  ;;  %p5434_p10 = scmp.lt.s32.totalorder %s5432_s21, %s5427_s13 }
 0x134   : > { %p5430_p6 = pnand %p5428_p4, %p5773_p7 }
 0x135   : > { %p5435_p11 = por %p5434_p10, %p5433_p9 }
 0x136   : > { %p5431_p8 = pneg %p5430_p6 }
 0x138   : > { %p5436_p12 = pnand %p5435_p11, %p5431_p8 }
 0x13a   : > { %5439 = shalt.err (!%p5436_p12)
}
 0x13b   : > { %4677 = dma.hbm_to_vmem [thread:$0]  (!%p5762_p5), %s1096_s8, 1536, %s1098_s6, [#allocation29], %s5538_s23, %s5538_s23, %s5539_s28  }
 0x13c   : > { %1133 = sbr.rel (%p5749_p3) target bundleno = 6032 (0x1790), region = 152 }
 0x141   : > { %5460 = dma.done.wait (%p4678_p2), [#allocation3], 256  }
 0x142   : > { %5462 = vsyncadd (%p4678_p2), [#allocation3], 4294967040 }
 0x143   : > { %5464 = dma.done.wait (%p4678_p2), [#allocation5], 512  }
 0x144   : > { %5466 = vsyncadd (%p4678_p2), [#allocation5], 4294966784 }
 0x145   : > { %5468 = dma.done.wait (%p4678_p2), [#allocation8], 4352  }
 0x146   : > { %5470 = vsyncadd (%p4678_p2), [#allocation8], 4294962944 }
 0x147   : > { %5472 = dma.done.wait (%p4678_p2), [#allocation11], 768  }
 0x148   : > { %5474 = vsyncadd (%p4678_p2), [#allocation11], 4294966528 }
 0x149   : > { %5476 = dma.done.wait (%p4678_p2), [#allocation14], 1024  }
 0x14a   : > { %5478 = vsyncadd (%p4678_p2), [#allocation14], 4294966272 }
 0x14b   : > { %5480 = dma.done.wait (%p4678_p2), [#allocation17], 1024  }
 0x14c   : > { %5482 = vsyncadd (%p4678_p2), [#allocation17], 4294966272 }
 0x14d   : > { %5484 = dma.done.wait (%p4678_p2), [#allocation20], 1024  }
 0x14e   : > { %5486 = vsyncadd (%p4678_p2), [#allocation20], 4294966272 }
 0x14f   : > { %5488 = dma.done.wait (%p4678_p2), [#allocation23], 1024  }
 0x150   : > { %5490 = vsyncadd (%p4678_p2), [#allocation23], 4294966272 }
 0x151   : > { %5492 = dma.done.wait (%p4678_p2), [#allocation26], 1024  }
 0x152   : > { %5494 = vsyncadd (%p4678_p2), [#allocation26], 4294966272 }
 0x153   : > { %5496 = dma.done.wait (%p4678_p2), [#allocation29], 1536  }
 0x154   : > { %5498 = vsyncadd (%p4678_p2), [#allocation29], 4294965760  ;;  %s6973_s8 = sld [smem:[#allocation40_spill]]  ;;  %p1302_p3 = scmp.lt.s32.totalorder %s5743_s0, 1  ;;  %v1314_v2 = vld [vmem:[#allocation2 + $0x8] sm:$0xff]  ;;  %vm1409_vm0 = vcmask 130048  }
 0x155   : > { %v1313_v3 = vld [vmem:[#allocation2] sm:$0xff]  ;;  %v1315_v4 = vld [vmem:[#allocation4] sm:$0xff]  ;;  %v1316_v5 = vld [vmem:[#allocation4 + $0x8] sm:$0xff]  ;;  %vm1552_vm1 = vcmask 1045504   ;;  %vm1441_vm2 = vcmask 48128   ;;  %s6975_s28 = sld [smem:[#allocation45_spill]] }
 0x156   : > { %s7037_s0 = smov (!%p1302_p3, %s5743_s0), 1  ;;  %v1515_v6 = vld [vmem:[#allocation10 + $0x8] sm:$0x3f]  ;;  %v1514_v11 = vld [vmem:[#allocation10] sm:$0x3f]  ;;  %v1319_v12 = vld [vmem:[#allocation7] sm:$0xff] }
 0x157   : > { %s4548_s11 = sshll.u32 %s7037_s0, 4  ;;  %v1320_v13 = vld [vmem:[#allocation7 + $0x8] sm:$0xff]  ;;  %v1317_v15 = vld [vmem:[#allocation6] sm:$0xff]  ;;  %v1318_v17 = vld [vmem:[#allocation6 + $0x8] sm:$0xff]  ;;  %vm1842_vm3 = vcmask 261120   ;;  %s5556_s16 = smov 96  }
 0x158   : > { %v1675_v18 = vld [vmem:[#allocation12 + $0x8] sm:$0x3f]  ;;  %v1516_v19 = vld [vmem:[#allocation10 + $0x10] sm:$0x3f]  ;;  %v1674_v25 = vld [vmem:[#allocation12] sm:$0x3f] }
 0x159   : > { %v1824_v26 = vld [vmem:[#allocation13 + $0x18] sm:$0xff]  ;;  %v1823_v27 = vld [vmem:[#allocation13 + $0x10] sm:$0xff]  ;;  %v1822_v28 = vld [vmem:[#allocation13 + $0x8] sm:$0xff]  ;;  %s5558_s23 = smov 64   ;;  %s6976_s7 = sld [smem:[#allocation46_spill]] }
 0x15a   : > { %s6065_s22 = scalar_lea.vmem %s6973_s8, %s4548_s11  ;;  %v1821_v30 = vld [vmem:[#allocation13] sm:$0xff]  ;;  %v1676_v33 = vld [vmem:[#allocation12 + $0x10] sm:$0x3f]  ;;  %v1325_v57 = vld [vmem:[#allocation9 + $0x20] sm:$0xff]  ;;  %s6977_s1 = sld [smem:[#allocation50_spill]] }
 0x15b   : > { %v1312_v0 = vld [vmem:[%s6065_s22 + $0x8] sm:$0xff]  ;;  %v1311_v1 = vld [vmem:[%s6065_s22] sm:$0xff]  ;;  %v1323_v58 = vld [vmem:[#allocation9 + $0x10] sm:$0xff]  ;;  %s6995_s2 = sld [smem:[#allocation48_spill]] }
 0x15c   : > { %4549 = vmatpush.msra.mxu1 %v1312_v0  ;;  %1430 = vmatpush.msra.mxu0 %v1312_v0  ;;  %v4796_v49 = vld [vmem:[%s6975_s28] ss:$0 sm:$0xff]  ;;  %s6996_s5 = sld [smem:[#allocation49_spill]]  ;;  %s4410_s28 = sshll.u32 %s7037_s0, 3 }
 0x15d   : > { %1537 = vmatpush.msra.mxu3 %v1312_v0  ;;  %v1321_v59 = vld [vmem:[#allocation9] sm:$0xff]  ;;  %s6997_s6 = sld [smem:[#allocation52_spill]] }
 0x15e   : > { %4550 = vmatpush.msra.mxu1 %v1311_v1  ;;  %1431 = vmatpush.msra.mxu0 %v1311_v1  ;;  %s6999_s26 = sld [smem:[#allocation55_spill]] }
 0x15f   : > { %4428 = vmatmul.msk.f32.vlgmr.msra.gmra.mxu1 %vm1409_vm0, %v1314_v2  ;;  %4427 = vmatmul.msk.f32.vlgmr.msra.gmra.mxu0 %vm1409_vm0, %v1313_v3  ;;  %v1341_v3 = vld [vmem:[#allocation9 + $0xa0] sm:$0xff]  ;;  %s7002_s13 = sld [smem:[#allocation53_spill]] }
 0x160   : > { %1538 = vmatpush.msra.mxu3 %v1311_v1  ;;  %4436 = vmatpush.msk.msrb.mxu0 %vm1552_vm1, %v1515_v6  ;;  %s7023_s21 = sld [smem:[#allocation57_spill]] }
 0x161   : > { %4434 = vmatmul.msk.f32.vlgmr.msra.gmra.mxu3 %vm1409_vm0, %v1315_v4  ;;  %s7028_s8 = sld [smem:[#allocation59_spill]] }
 0x162   : > { %4444 = vmatpush.msk.msrb.mxu3 %vm1552_vm1, %v1516_v19  ;;  %s7032_s11 = sld [smem:[#allocation61_spill]] }
 0x167   : > { %4437 = vmatmul.msk.f32.vlgmr.msrb.gmra.mxu0 %vm1441_vm2, %v1311_v1 }
 0x169   : > { %4435 = vmatmul.msk.f32.gmra.mxu3 %vm1409_vm0, %v1316_v5 }
 0x16f   : > { %4438 = vmatmul.msk.f32.gmra.mxu0 %vm1441_vm2, %v1312_v0 }
 0x1dc   : > { %v1436_v7 = vpop.f32.mrf.mxu1  ;;  %v1433_v8 = vpop.f32.mrf.mxu0 }
 0x1dd   : > { %1483 = vmatpush.msrb.mxu1 %v1436_v7  ;;  %v1440_v9 = vsub.f32 %v1312_v0, %v1436_v7  ;;  %v1439_v10 = vsub.f32 %v1311_v1, %v1433_v8 }
 0x1df   : > { %1484 = vmatpush.msrb.mxu1 %v1433_v8  ;;  %1505 = vmatpush.msra.mxu2 %v1440_v9 }
 0x1e0   : > { %4430 = vmatmul.msk.f32.vlgmr.msrb.gmra.mxu1 %vm1409_vm0, %v1319_v12 }
 0x1e1   : > { %1506 = vmatpush.msra.mxu2 %v1439_v10  ;;  %4439 = vmatpush.msk.msra.mxu1 %vm1552_vm1, %v1514_v11 }
 0x1e2   : > { %4432 = vmatmul.msk.f32.vlgmr.msra.gmra.mxu2 %vm1409_vm0, %v1319_v12  ;;  %v1347_v12 = vld [vmem:[#allocation9 + $0xd0] sm:$0xff] }
 0x1e3   : > { %1631 = vmatpush.msrb.mxu2 %v1312_v0  ;;  %4449 = vmatpush.msk.msrb.mxu1 %vm1552_vm1, %v1675_v18 }
 0x1e4   : > { %v1540_v14 = vpop.f32.mrf.mxu3  ;;  %v1573_v29 = vpop.f32.mrf.mxu0 }
 0x1e5   : > { %1632 = vmatpush.msrb.mxu2 %v1311_v1 }
 0x1e7   : > { %4452 = vmatpush.msk.msra.mxu2 %vm1552_vm1, %v1674_v25 }
 0x1e8   : > { %4431 = vmatmul.msk.f32.gmra.mxu1 %vm1409_vm0, %v1320_v13 }
 0x1ea   : > { %4433 = vmatmul.msk.f32.gmra.mxu2 %vm1409_vm0, %v1320_v13  ;;  %v1329_v13 = vld [vmem:[#allocation9 + $0x40] sm:$0xff] }
 0x1ec   : > { %v1543_v16 = vpop.f32.mrf.mxu3  ;;  %v1576_v31 = vpop.f32.mrf.mxu0 }
 0x1f0   : > { %4440 = vmatmul.msk.f32.vlgmr.msra.gmra.mxu1 %vm1441_vm2, %v1540_v14  ;;  %v1345_v14 = vld [vmem:[#allocation9 + $0xc0] sm:$0xff] }
 0x1f1   : > { %1861 = vmatpush.msra.mxu1 %v1824_v26 }
 0x1f2   : > { %4442 = vmatmul.msk.f32.vlgmr.msrb.gmra.mxu2 %vm1409_vm0, %v1317_v15 }
 0x1f3   : > { %1862 = vmatpush.msra.mxu1 %v1823_v27 }
 0x1f5   : > { %1863 = vmatpush.msra.mxu1 %v1822_v28 }
 0x1f7   : > { %1864 = vmatpush.msra.mxu1 %v1821_v30 }
 0x1f8   : > { %4441 = vmatmul.msk.f32.gmra.mxu1 %vm1441_vm2, %v1543_v16 }
 0x1fa   : > { %4443 = vmatmul.msk.f32.gmra.mxu2 %vm1409_vm0, %v1318_v17 }
 0x25d   : > { %v1486_v20 = vpop.f32.mrf.mxu1 }
 0x265   : > { %v1508_v21 = vpop.f32.mrf.mxu2  ;;  %v6096_v32 = vpop.f32.mrf.mxu1 }
 0x266   : > { %4450 = vmatmul.msk.f32.vlgmr.msrb.gmra.mxu1 %vm1441_vm2, %v1508_v21  ;;  %6974 = vst [vmem:[#allocation64_spill] sm:$0xff] %v6096_v32 }
 0x26d   : > { %v1511_v22 = vpop.f32.mrf.mxu2  ;;  %v1605_v35 = vpop.f32.mrf.mxu1 }
 0x26e   : > { %1691 = vmatpush.msra.mxu0 %v1511_v22  ;;  %4451 = vmatmul.msk.f32.gmra.mxu1 %vm1441_vm2, %v1511_v22  ;;  %v1606_v36 = vadd.f32 %v1605_v35, %v1573_v29 }
 0x26f   : > { %1778 = vmatpush.msra.mxu3 %v1511_v22  ;;  %v1331_v22 = vld [vmem:[#allocation9 + $0x50] sm:$0xff] }
 0x270   : > { %1692 = vmatpush.msra.mxu0 %v1508_v21 }
 0x271   : > { %1779 = vmatpush.msra.mxu3 %v1508_v21  ;;  %4447 = vmatmul.msk.f32.vlgmr.msra.gmra.mxu0 %vm1409_vm0, %v1315_v4  ;;  %v1327_v4 = vld [vmem:[#allocation9 + $0x30] sm:$0xff] }
 0x272   : > { %4457 = vmatpush.msk.msrb.mxu0 %vm1552_vm1, %v1676_v33  ;;  %v1344_v33 = vld [vmem:[#allocation9 + $0xb8] sm:$0xff] }
 0x275   : > { %v1634_v23 = vpop.f32.mrf.mxu2  ;;  %v1608_v40 = vpop.f32.mrf.mxu1 }
 0x276   : > { %4445 = vmatmul.msk.f32.vlgmr.msrb.gmra.mxu3 %vm1441_vm2, %v1634_v23  ;;  %v1609_v41 = vadd.f32 %v1608_v40, %v1576_v31  ;;  %v1338_v23 = vld [vmem:[#allocation9 + $0x88] sm:$0xff]  ;;  %v1333_v31 = vld [vmem:[#allocation9 + $0x60] sm:$0xff] }
 0x279   : > { %4448 = vmatmul.msk.f32.gmra.mxu0 %vm1409_vm0, %v1316_v5  ;;  %v1339_v5 = vld [vmem:[#allocation9 + $0x90] sm:$0xff] }
 0x27d   : > { %v1637_v24 = vpop.f32.mrf.mxu2 }
 0x27e   : > { %4446 = vmatmul.msk.f32.gmra.mxu3 %vm1441_vm2, %v1637_v24  ;;  %v1322_v24 = vld [vmem:[#allocation9 + $0x8] sm:$0xff] }
 0x286   : > { %4455 = vmatmul.msk.f32.vlgmr.msra.gmra.mxu3 %vm1409_vm0, %v1317_v15 }
 0x28e   : > { %4456 = vmatmul.msk.f32.gmra.mxu3 %vm1409_vm0, %v1318_v17 }
 0x2e3   : > { %v6111_v46 = vpop.f32.mrf.mxu1 }
 0x2eb   : > { %v6113_v47 = vpop.f32.mrf.mxu1 }
 0x2ee   : > { %v1694_v34 = vpop.f32.mrf.mxu0 }
 0x2ef   : > { %4453 = vmatmul.msk.f32.vlgmr.msra.gmra.mxu2 %vm1441_vm2, %v1694_v34  ;;  %v1326_v34 = vld [vmem:[#allocation9 + $0x28] sm:$0xff] }
 0x2f6   : > { %v1697_v37 = vpop.f32.mrf.mxu0 }
 0x2f7   : > { %4454 = vmatmul.msk.f32.gmra.mxu2 %vm1441_vm2, %v1697_v37 }
 0x2f9   : > { %v1666_v38 = vpop.f32.mrf.mxu3 }
 0x2fa   : > { %v6101_v39 = vadd.f32 %v1666_v38, %v1606_v36 }
 0x2fc   : > { %4460 = vmatmul.msk.f32.vlgmr.msra.gmra.mxu1 %vm1842_vm3, %v6101_v39 }
 0x301   : > { %v1669_v42 = vpop.f32.mrf.mxu3 }
 0x302   : > { %v6105_v43 = vadd.f32 %v1669_v42, %v1609_v41  ;;  %v1335_v42 = vld [vmem:[#allocation9 + $0x70] sm:$0xff] }
 0x304   : > { %4461 = vmatmul.msk.f32.gmra.mxu1 %vm1842_vm3, %v6105_v43 }
 0x309   : > { %v1781_v44 = vpop.f32.mrf.mxu3 }
 0x30a   : > { %4458 = vmatmul.msk.f32.vlgmr.msrb.gmra.mxu0 %vm1441_vm2, %v1781_v44  ;;  %v1350_v44 = vld [vmem:[#allocation9 + $0xe8] sm:$0xff] }
 0x311   : > { %v1784_v45 = vpop.f32.mrf.mxu3 }
 0x312   : > { %4459 = vmatmul.msk.f32.gmra.mxu0 %vm1441_vm2, %v1784_v45  ;;  %v1328_v45 = vld [vmem:[#allocation9 + $0x38] sm:$0xff] }
 0x372   : > { %v6130_v55 = vpop.f32.mrf.mxu2 }
 0x379   : > { %v1866_v48 = vpop.f32.mrf.mxu1 }
 0x37a   : > { %v6120_v52 = vadd.f32 %v4796_v49, %v1866_v48  ;;  %v6132_v56 = vpop.f32.mrf.mxu2 }
 0x381   : > { %v1869_v50 = vpop.f32.mrf.mxu1 }
 0x382   : > { %v6116_v51 = vadd.f32 %v4796_v49, %v1869_v50 }
 0x384   : > { %1876 = vrot.lane.b32.xlu0 %v6116_v51, %s5556_s16 }
 0x38c   : > { %1874 = vrot.lane.b32.xlu0 %v6120_v52, %s5556_s16 }
 0x3f6   : > { %v1877_v53 = vpop.permute.xlu0 %1876 }
 0x3f7   : > { %4462 = vmatpush.xpose.msk.msrb.mxu2 %vm1842_vm3, %v1877_v53 }
 0x3fe   : > { %v1875_v54 = vpop.permute.xlu0 %1874 }
 0x3ff   : > { %4463 = vmatpush.xpose.msk.msrb.mxu2 %vm1842_vm3, %v1875_v54 }
 0x402   : > { %4464 = vmatmul.msk.f32.vlgmr.msrb.gmra.mxu2 %vm1842_vm3, %v6120_v52 }
 0x40a   : > { %4465 = vmatmul.msk.f32.gmra.mxu2 %vm1842_vm3, %v6116_v51 }
 0x485   : > { %v6134_v60 = vpop.f32.mrf.mxu2 }
 0x486   : > { %v1943_v61 = vmul.f32 %v6134_v60, %v1325_v57  ;;  %v1926_v62 = vmul.f32 %v6134_v60, %v1323_v58  ;;  %v1909_v63 = vmul.f32 %v6134_v60, %v1321_v59  ;;  %v2079_v6 = vmul.f32 %v6134_v60, %v1341_v3  ;;  %v1337_v58 = vld [vmem:[#allocation9 + $0x80] sm:$0xff]  ;;  %v1330_v59 = vld [vmem:[#allocation9 + $0x48] sm:$0xff] }
 0x487   : > { %v1960_v7 = vmul.f32 %v6134_v60, %v1327_v4  ;;  %v2062_v8 = vmul.f32 %v6134_v60, %v1339_v5  ;;  %v2130_v15 = vmul.f32 %v6134_v60, %v1347_v12  ;;  %v1977_v16 = vmul.f32 %v6134_v60, %v1329_v13  ;;  %v1349_v13 = vld [vmem:[#allocation9 + $0xe0] sm:$0xff] }
 0x488   : > { %v1945_v0 = vsel %vm1409_vm0, %v1943_v61, 0.0  ;;  %v1928_v1 = vsel %vm1409_vm0, %v1926_v62, 0.0  ;;  %v1911_v2 = vsel %vm1409_vm0, %v1909_v63, 0.0  ;;  %v2081_v9 = vsel %vm1409_vm0, %v2079_v6, 0.0 }
 0x489   : > { %1946 = vadd.xlane.f32.xlu0 %v1945_v0  ;;  %1929 = vadd.xlane.f32.xlu2 %v1928_v1  ;;  %v1962_v10 = vsel %vm1409_vm0, %v1960_v7, 0.0  ;;  %v2064_v11 = vsel %vm1409_vm0, %v2062_v8, 0.0  ;;  %v2113_v17 = vmul.f32 %v6134_v60, %v1345_v14  ;;  %v2132_v18 = vsel %vm1409_vm0, %v2130_v15, 0.0  ;;  %v1343_v1 = vld [vmem:[#allocation9 + $0xb0] sm:$0xff]  ;;  %v1324_v7 = vld [vmem:[#allocation9 + $0x18] sm:$0xff]  ;;  %v1334_v8 = vld [vmem:[#allocation9 + $0x68] sm:$0xff] }
 0x48a   : > { %1912 = vadd.xlane.f32.xlu1 %v1911_v2  ;;  %v1979_v19 = vsel %vm1409_vm0, %v1977_v16, 0.0  ;;  %v1994_v25 = vmul.f32 %v6134_v60, %v1331_v22  ;;  %v2011_v35 = vmul.f32 %v6134_v60, %v1333_v31  ;;  %v2028_v48 = vmul.f32 %v6134_v60, %v1335_v42  ;;  %v1332_v2 = vld [vmem:[#allocation9 + $0x58] sm:$0xff] }
 0x48b   : > { %v2115_v21 = vsel %vm1409_vm0, %v2113_v17, 0.0  ;;  %v2045_v61 = vmul.f32 %v6134_v60, %v1337_v58  ;;  %v2096_v3 = vmul.f32 %v6134_v60, %v1343_v1  ;;  %v1336_v14 = vld [vmem:[#allocation9 + $0x78] sm:$0xff]  ;;  %v2147_v15 = vmul.f32 %v6134_v60, %v1349_v13 }
 0x48c   : > { %v1996_v28 = vsel %vm1409_vm0, %v1994_v25, 0.0  ;;  %v2013_v38 = vsel %vm1409_vm0, %v2011_v35, 0.0  ;;  %v2030_v53 = vsel %vm1409_vm0, %v2028_v48, 0.0 }
 0x48d   : > { %v6153_v20 = vpop.f32.mrf.mxu2  ;;  %v2047_v63 = vsel %vm1409_vm0, %v2045_v61, 0.0  ;;  %v2098_v5 = vsel %vm1409_vm0, %v2096_v3, 0.0  ;;  %v2149_v17 = vsel %vm1409_vm0, %v2147_v15, 0.0 }
 0x48e   : > { %v2046_v26 = vmul.f32 %v6153_v20, %v1338_v23  ;;  %v1910_v27 = vmul.f32 %v6153_v20, %v1322_v24  ;;  %v2097_v36 = vmul.f32 %v6153_v20, %v1344_v33  ;;  %v1944_v37 = vmul.f32 %v6153_v20, %v1326_v34  ;;  %v1352_v33 = vld [vmem:[#allocation9 + $0xf8] sm:$0xff]  ;;  %v1351_v34 = vld [vmem:[#allocation9 + $0xf0] sm:$0xff] }
 0x48f   : > { %v2148_v49 = vmul.f32 %v6153_v20, %v1350_v44  ;;  %v1961_v50 = vmul.f32 %v6153_v20, %v1328_v45  ;;  %v1978_v62 = vmul.f32 %v6153_v20, %v1330_v59  ;;  %v1995_v4 = vmul.f32 %v6153_v20, %v1332_v2 }
 0x490   : > { %v2050_v29 = vsel %vm1409_vm0, %v2046_v26, 0.0  ;;  %v1914_v30 = vsel %vm1409_vm0, %v1910_v27, 0.0  ;;  %v2101_v40 = vsel %vm1409_vm0, %v2097_v36, 0.0  ;;  %v1948_v41 = vsel %vm1409_vm0, %v1944_v37, 0.0  ;;  %v1346_v26 = vld [vmem:[#allocation9 + $0xc8] sm:$0xff]  ;;  %v1348_v27 = vld [vmem:[#allocation9 + $0xd8] sm:$0xff] }
 0x491   : > { %2082 = vadd.xlane.f32.xlu0 %v2081_v9  ;;  %1963 = vadd.xlane.f32.xlu2 %v1962_v10  ;;  %v2152_v54 = vsel %vm1409_vm0, %v2148_v49, 0.0  ;;  %v1965_v57 = vsel %vm1409_vm0, %v1961_v50, 0.0  ;;  %v1982_v0 = vsel %vm1409_vm0, %v1978_v62, 0.0  ;;  %v1999_v6 = vsel %vm1409_vm0, %v1995_v4, 0.0 }
 0x492   : > { %2065 = vadd.xlane.f32.xlu1 %v2064_v11  ;;  %v1927_v9 = vmul.f32 %v6153_v20, %v1324_v7  ;;  %v2012_v10 = vmul.f32 %v6153_v20, %v1334_v8  ;;  %v2029_v16 = vmul.f32 %v6153_v20, %v1336_v14  ;;  %v2165_v35 = vmul.f32 %v6153_v20, %v1352_v33 }
 0x493   : > { %v2164_v36 = vmul.f32 %v6134_v60, %v1351_v34 }
 0x494   : > { %v1931_v11 = vsel %vm1409_vm0, %v1927_v9, 0.0  ;;  %v2016_v12 = vsel %vm1409_vm0, %v2012_v10, 0.0  ;;  %v2169_v37 = vsel %vm1409_vm0, %v2165_v35, 0.0 }
 0x499   : > { %2133 = vadd.xlane.f32.xlu0 %v2132_v18  ;;  %1980 = vadd.xlane.f32.xlu2 %v1979_v19  ;;  %v2033_v18 = vsel %vm1409_vm0, %v2029_v16, 0.0  ;;  %v1340_v19 = vld [vmem:[#allocation9 + $0x98] sm:$0xff] }
 0x49a   : > { %2116 = vadd.xlane.f32.xlu1 %v2115_v21  ;;  %v1342_v21 = vld [vmem:[#allocation9 + $0xa8] sm:$0xff]  ;;  %v2063_v22 = vmul.f32 %v6153_v20, %v1340_v19 }
 0x49b   : > { %v2080_v23 = vmul.f32 %v6153_v20, %v1342_v21 }
 0x49c   : > { %v2067_v24 = vsel %vm1409_vm0, %v2063_v22, 0.0 }
 0x49d   : > { %v2084_v25 = vsel %vm1409_vm0, %v2080_v23, 0.0 }
 0x4a1   : > { %1997 = vadd.xlane.f32.xlu2 %v1996_v28  ;;  %2051 = vadd.xlane.f32.xlu0 %v2050_v29  ;;  %v2114_v28 = vmul.f32 %v6153_v20, %v1346_v26  ;;  %v2131_v29 = vmul.f32 %v6153_v20, %v1348_v27 }
 0x4a2   : > { %1915 = vadd.xlane.f32.xlu1 %v1914_v30 }
 0x4a3   : > { %v2118_v30 = vsel %vm1409_vm0, %v2114_v28, 0.0  ;;  %v2135_v31 = vsel %vm1409_vm0, %v2131_v29, 0.0 }
 0x4a9   : > { %2014 = vadd.xlane.f32.xlu2 %v2013_v38  ;;  %2102 = vadd.xlane.f32.xlu0 %v2101_v40  ;;  %v2166_v38 = vsel %vm1409_vm0, %v2164_v36, 0.0 }
 0x4aa   : > { %1949 = vadd.xlane.f32.xlu1 %v1948_v41 }
 0x4b1   : > { %2031 = vadd.xlane.f32.xlu2 %v2030_v53  ;;  %2153 = vadd.xlane.f32.xlu0 %v2152_v54 }
 0x4b2   : > { %1966 = vadd.xlane.f32.xlu1 %v1965_v57 }
 0x4b9   : > { %2048 = vadd.xlane.f32.xlu2 %v2047_v63 }
 0x4ba   : > { %1983 = vadd.xlane.f32.xlu1 %v1982_v0 }
 0x4c1   : > { %2099 = vadd.xlane.f32.xlu2 %v2098_v5  ;;  %v1353_v5 = vlaneseq }
 0x4c2   : > { %2000 = vadd.xlane.f32.xlu1 %v1999_v6 }
 0x4c3   : > { %v1354_v10 = vand.u32 127, %v1353_v5 }
 0x4c9   : > { %1932 = vadd.xlane.f32.xlu2 %v1931_v11 }
 0x4ca   : > { %2017 = vadd.xlane.f32.xlu1 %v2016_v12 }
 0x4d1   : > { %2150 = vadd.xlane.f32.xlu2 %v2149_v17  ;;  %v6213_v17 = vcvt.s32.f32 %v1354_v10 }
 0x4d2   : > { %2034 = vadd.xlane.f32.xlu1 %v2033_v18 }
 0x4d3   : > { %vm1356_vm4 = vcmp.eq.f32.partialorder %v6213_v17, 0.0  ;;  %vm1362_vm5 = vcmp.eq.f32.partialorder %v6213_v17, 2.0  ;;  %vm1365_vm6 = vcmp.eq.f32.partialorder %v6213_v17, 3.0  ;;  %vm1380_vm7 = vcmp.eq.f32.partialorder %v6213_v17, 8.0 }
 0x4d4   : > { %vm1359_vm8 = vcmp.eq.f32.partialorder %v6213_v17, 1.0  ;;  %vm1368_vm9 = vcmp.eq.f32.partialorder %v6213_v17, 4.0  ;;  %vm1371_vm10 = vcmp.eq.f32.partialorder %v6213_v17, 5.0  ;;  %vm1374_vm11 = vcmp.eq.f32.partialorder %v6213_v17, 6.0 }
 0x4d5   : > { %vm1377_vm12 = vcmp.eq.f32.partialorder %v6213_v17, 7.0  ;;  %vm1383_vm13 = vcmp.eq.f32.partialorder %v6213_v17, 9.0  ;;  %vm1386_vm14 = vcmp.eq.f32.partialorder %v6213_v17, 10.0  ;;  %vm1389_vm15 = vcmp.eq.f32.partialorder %v6213_v17, 11.0 }
 0x4d6   : > { %vm1392_vm1 = vcmp.eq.f32.partialorder %v6213_v17, 12.0 }
 0x4d9   : > { %2068 = vadd.xlane.f32.xlu2 %v2067_v24 }
 0x4da   : > { %2085 = vadd.xlane.f32.xlu1 %v2084_v25 }
 0x4e1   : > { %2119 = vadd.xlane.f32.xlu2 %v2118_v30 }
 0x4e2   : > { %2136 = vadd.xlane.f32.xlu1 %v2135_v31 }
 0x4e9   : > { %2170 = vadd.xlane.f32.xlu2 %v2169_v37  ;;  %v6906_v37 = vmov 0.0  }
 0x4ea   : > { %2167 = vadd.xlane.f32.xlu1 %v2166_v38  ;;  %v6219_v38 = vsel %vm1356_vm4, 1.0, %v6906_v37  ;;  %vm1395_vm4 = vcmp.eq.f32.partialorder %v6213_v17, 13.0 }
 0x4fc   : > { %v1930_v40 = vpop.xlane.xlu2 %1929  ;;  %v1947_v53 = vpop.xlane.xlu0 %1946 }
 0x4fd   : > { %v1913_v41 = vpop.xlane.xlu1 %1912 }
 0x504   : > { %v1964_v42 = vpop.xlane.xlu2 %1963  ;;  %v6208_v57 = vpop.xlane.xlu0 %2082 }
 0x505   : > { %v6202_v44 = vpop.xlane.xlu1 %2065 }
 0x50c   : > { %v1981_v45 = vpop.xlane.xlu2 %1980  ;;  %v6210_v63 = vpop.xlane.xlu0 %2133 }
 0x50d   : > { %v6204_v48 = vpop.xlane.xlu1 %2116 }
 0x514   : > { %v1998_v49 = vpop.xlane.xlu2 %1997  ;;  %v2052_v13 = vpop.xlane.xlu0 %2051 }
 0x515   : > { %v1916_v50 = vpop.xlane.xlu1 %1915 }
 0x516   : > { %v1917_v62 = vadd.f32 %v1916_v50, %v1913_v41 }
 0x518   : > { %v1918_v1 = vrot.slane %v1917_v62, 4 }
 0x51a   : > { %v1919_v8 = vadd.f32 %v1918_v1, %v1917_v62 }
 0x51c   : > { %v2015_v20 = vpop.xlane.xlu2 %2014  ;;  %v1920_v15 = vrot.slane %v1919_v8, 2 }
 0x51d   : > { %v1950_v54 = vpop.xlane.xlu1 %1949 }
 0x51e   : > { %v1951_v0 = vadd.f32 %v1950_v54, %v1947_v53  ;;  %v1921_v26 = vadd.f32 %v1920_v15, %v1919_v8  ;;  %v6225_v54 = vsel %vm1365_vm6, 1.0, %v6906_v37  ;;  %vm1401_vm6 = vcmp.eq.f32.partialorder %v6213_v17, 15.0 }
 0x520   : > { %v1952_v3 = vrot.slane %v1951_v0, 4 }
 0x522   : > { %v1953_v11 = vadd.f32 %v1952_v3, %v1951_v0 }
 0x524   : > { %v6206_v60 = vpop.xlane.xlu2 %2031  ;;  %v1954_v18 = vrot.slane %v1953_v11, 2 }
 0x525   : > { %v1967_v58 = vpop.xlane.xlu1 %1966 }
 0x526   : > { %v1968_v2 = vadd.f32 %v1967_v58, %v1964_v42  ;;  %v1955_v29 = vadd.f32 %v1954_v18, %v1953_v11 }
 0x528   : > { %v1969_v9 = vrot.slane %v1968_v2, 4  ;;  %v1956_v50 = vrot.slane %v1955_v29, 1 }
 0x52a   : > { %v1970_v16 = vadd.f32 %v1969_v9, %v1968_v2  ;;  %v1957_v8 = vadd.f32 %v1956_v50, %v1955_v29 }
 0x52c   : > { %v2049_v59 = vpop.xlane.xlu2 %2048  ;;  %v1971_v27 = vrot.slane %v1970_v16, 2 }
 0x52d   : > { %v1984_v61 = vpop.xlane.xlu1 %1983  ;;  %v2053_v21 = vadd.f32 %v2052_v13, %v2049_v59 }
 0x52e   : > { %v1985_v6 = vadd.f32 %v1984_v61, %v1981_v45  ;;  %v1972_v41 = vadd.f32 %v1971_v27, %v1970_v16  ;;  %v2103_v45 = vpop.xlane.xlu0 %2102 }
 0x52f   : > { %v2054_v33 = vrot.slane %v2053_v21, 4 }
 0x530   : > { %v1986_v14 = vrot.slane %v1985_v6, 4 }
 0x531   : > { %v2055_v58 = vadd.f32 %v2054_v33, %v2053_v21  ;;  %v6244_v21 = vsel %vm1368_vm9, 1.0, %v6906_v37 }
 0x532   : > { %v1987_v23 = vadd.f32 %v1986_v14, %v1985_v6  ;;  %v1973_v6 = vrot.slane %v1972_v41, 1  ;;  %v6238_v14 = vsel %vm1380_vm7, 1.0, %v6906_v37 }
 0x533   : > { %v2056_v11 = vrot.slane %v2055_v58, 2 }
 0x534   : > { %v2100_v4 = vpop.xlane.xlu2 %2099  ;;  %v1988_v35 = vrot.slane %v1987_v23, 2 }
 0x535   : > { %v2001_v7 = vpop.xlane.xlu1 %2000  ;;  %v2104_v59 = vadd.f32 %v2103_v45, %v2100_v4  ;;  %v2057_v27 = vadd.f32 %v2056_v11, %v2055_v58 }
 0x536   : > { %v2002_v12 = vadd.f32 %v2001_v7, %v1998_v49  ;;  %v6222_v49 = vsel %vm1362_vm5, 1.0, %v6906_v37  ;;  %v1989_v62 = vadd.f32 %v1988_v35, %v1987_v23  ;;  %vm1398_vm5 = vcmp.eq.f32.partialorder %v6213_v17, 14.0 }
 0x537   : > { %v2105_v4 = vrot.slane %v2104_v59, 4  ;;  %v1958_v23 = vmul.f32 %v6222_v49, %v1957_v8 }
 0x538   : > { %v2003_v19 = vrot.slane %v2002_v12, 4  ;;  %v1990_v15 = vrot.slane %v1989_v62, 1 }
 0x53a   : > { %v2004_v30 = vadd.f32 %v2003_v19, %v2002_v12  ;;  %v6233_v12 = vsel %vm1359_vm8, 1.0, %v6906_v37  ;;  %v1974_v19 = vadd.f32 %v1973_v6, %v1972_v41  ;;  %v1991_v33 = vadd.f32 %v1990_v15, %v1989_v62 }
 0x53c   : > { %v1933_v22 = vpop.xlane.xlu2 %1932  ;;  %v2005_v53 = vrot.slane %v2004_v30, 2  ;;  %v1975_v41 = vmul.f32 %v6225_v54, %v1974_v19 }
 0x53d   : > { %v1934_v24 = vadd.f32 %v1933_v22, %v1930_v40  ;;  %v2018_v25 = vpop.xlane.xlu1 %2017  ;;  %v1922_v40 = vrot.slane %v1921_v26, 1 }
 0x53e   : > { %v2019_v28 = vadd.f32 %v2018_v25, %v2015_v20  ;;  %v2006_v9 = vadd.f32 %v2005_v53, %v2004_v30 }
 0x53f   : > { %v1935_v31 = vrot.slane %v1934_v24, 4  ;;  %v1923_v3 = vadd.f32 %v1922_v40, %v1921_v26 }
 0x540   : > { %v2020_v34 = vrot.slane %v2019_v28, 4  ;;  %v2007_v25 = vrot.slane %v2006_v9, 1 }
 0x541   : > { %v1936_v36 = vadd.f32 %v1935_v31, %v1934_v24  ;;  %v6250_v24 = vsel %vm1371_vm10, 1.0, %v6906_v37  ;;  %v2154_v31 = vpop.xlane.xlu0 %2153 }
 0x542   : > { %v2021_v42 = vadd.f32 %v2020_v34, %v2019_v28  ;;  %v2106_v28 = vadd.f32 %v2105_v4, %v2104_v59  ;;  %v2008_v53 = vadd.f32 %v2007_v25, %v2006_v9  ;;  %v2058_v59 = vrot.slane %v2057_v27, 1 }
 0x543   : > { %v1937_v20 = vrot.slane %v1936_v36, 2 }
 0x544   : > { %v2151_v61 = vpop.xlane.xlu2 %2150  ;;  %v2022_v1 = vrot.slane %v2021_v42, 2  ;;  %v2009_v9 = vmul.f32 %v6250_v24, %v2008_v53 }
 0x545   : > { %v1938_v0 = vadd.f32 %v1937_v20, %v1936_v36  ;;  %v2035_v2 = vpop.xlane.xlu1 %2034 }
 0x546   : > { %v2036_v7 = vadd.f32 %v2035_v2, %v6206_v60  ;;  %v2023_v18 = vadd.f32 %v2022_v1, %v2021_v42  ;;  %v1924_v60 = vmul.f32 %v6219_v38, %v1923_v3  ;;  %v2155_v42 = vadd.f32 %v2154_v31, %v2151_v61 }
 0x547   : > { %v1939_v10 = vrot.slane %v1938_v0, 1  ;;  %v1992_v2 = vmul.f32 %v6244_v21, %v1991_v33  ;;  %v6262_v61 = vsel %vm1374_vm11, 1.0, %v6906_v37 }
 0x548   : > { %v2037_v13 = vrot.slane %v2036_v7, 4  ;;  %v2024_v35 = vrot.slane %v2023_v18, 1 }
 0x549   : > { %v1940_v16 = vadd.f32 %v1939_v10, %v1938_v0  ;;  %v2107_v0 = vrot.slane %v2106_v28, 2 }
 0x54a   : > { %v2038_v22 = vadd.f32 %v2037_v13, %v2036_v7  ;;  %v6265_v7 = vsel %vm1377_vm12, 1.0, %v6906_v37  ;;  %v2059_v13 = vadd.f32 %v2058_v59, %v2057_v27 }
 0x54b   : > { %v1941_v26 = vmul.f32 %v6233_v12, %v1940_v16  ;;  %v2108_v15 = vadd.f32 %v2107_v0, %v2106_v28 }
 0x54c   : > { %v2039_v29 = vrot.slane %v2038_v22, 2  ;;  %v2069_v30 = vpop.xlane.xlu2 %2068 }
 0x54d   : > { %v1942_v34 = vadd.f32 %v1941_v26, %v1924_v60  ;;  %v2070_v36 = vadd.f32 %v2069_v30, %v6202_v44  ;;  %v2086_v40 = vpop.xlane.xlu1 %2085  ;;  %v2025_v44 = vadd.f32 %v2024_v35, %v2023_v18  ;;  %v6278_v35 = vsel %vm1383_vm13, 1.0, %v6906_v37 }
 0x54e   : > { %v2040_v45 = vadd.f32 %v2039_v29, %v2038_v22  ;;  %v2087_v50 = vadd.f32 %v2086_v40, %v6208_v57  ;;  %v2156_v57 = vrot.slane %v2155_v42, 4  ;;  %v2109_v40 = vrot.slane %v2108_v15, 1 }
 0x54f   : > { %v1959_v20 = vadd.f32 %v1958_v23, %v1942_v34  ;;  %v2071_v58 = vrot.slane %v2070_v36, 4  ;;  %v2026_v19 = vmul.f32 %v6262_v61, %v2025_v44  ;;  %v2060_v34 = vmul.f32 %v6238_v14, %v2059_v13 }
 0x550   : > { %v2041_v1 = vrot.slane %v2040_v45, 1  ;;  %v2088_v62 = vrot.slane %v2087_v50, 4  ;;  %v2157_v26 = vadd.f32 %v2156_v57, %v2155_v42 }
 0x551   : > { %v1976_v3 = vadd.f32 %v1975_v41, %v1959_v20  ;;  %v2072_v6 = vadd.f32 %v2071_v58, %v2070_v36 }
 0x552   : > { %v2089_v8 = vadd.f32 %v2088_v62, %v2087_v50  ;;  %v2042_v11 = vadd.f32 %v2041_v1, %v2040_v45  ;;  %v2158_v50 = vrot.slane %v2157_v26, 2 }
 0x553   : > { %v1993_v10 = vadd.f32 %v1992_v2, %v1976_v3  ;;  %v2073_v4 = vrot.slane %v2072_v6, 2  ;;  %v2110_v2 = vadd.f32 %v2109_v40, %v2108_v15 }
 0x554   : > { %v2090_v16 = vrot.slane %v2089_v8, 2  ;;  %v2120_v18 = vpop.xlane.xlu2 %2119  ;;  %v2043_v27 = vmul.f32 %v6265_v7, %v2042_v11 }
 0x555   : > { %v2010_v60 = vadd.f32 %v2009_v9, %v1993_v10  ;;  %v2074_v22 = vadd.f32 %v2073_v4, %v2072_v6  ;;  %v2121_v23 = vadd.f32 %v2120_v18, %v6204_v48  ;;  %v2137_v25 = vpop.xlane.xlu1 %2136  ;;  %v2159_v9 = vadd.f32 %v2158_v50, %v2157_v26 }
 0x556   : > { %v2091_v29 = vadd.f32 %v2090_v16, %v2089_v8  ;;  %v2138_v30 = vadd.f32 %v2137_v25, %v6210_v63  ;;  %v6283_v63 = vsel %vm1386_vm14, 1.0, %v6906_v37  ;;  %v6290_v8 = vsel %vm1389_vm15, 1.0, %v6906_v37 }
 0x557   : > { %v2027_v31 = vadd.f32 %v2026_v19, %v2010_v60  ;;  %v2075_v28 = vrot.slane %v2074_v22, 1  ;;  %v2122_v33 = vrot.slane %v2121_v23, 4  ;;  %v6293_v16 = vsel %vm1392_vm1, 1.0, %v6906_v37 }
 0x558   : > { %v2092_v48 = vrot.slane %v2091_v29, 1  ;;  %v2139_v36 = vrot.slane %v2138_v30, 4  ;;  %v2111_v60 = vmul.f32 %v6290_v8, %v2110_v2 }
 0x559   : > { %v2044_v41 = vadd.f32 %v2043_v27, %v2027_v31  ;;  %v2076_v42 = vadd.f32 %v2075_v28, %v2074_v22  ;;  %v2123_v45 = vadd.f32 %v2122_v33, %v2121_v23  ;;  %v2160_v22 = vrot.slane %v2159_v9, 1 }
 0x55a   : > { %v2093_v53 = vadd.f32 %v2092_v48, %v2091_v29  ;;  %v2140_v20 = vadd.f32 %v2139_v36, %v2138_v30  ;;  %v6299_v30 = vsel %vm1395_vm4, 1.0, %v6906_v37  ;;  %v6305_v48 = vsel %vm1398_vm5, 1.0, %v6906_v37 }
 0x55b   : > { %v2061_v58 = vadd.f32 %v2060_v34, %v2044_v41  ;;  %v2077_v59 = vmul.f32 %v6278_v35, %v2076_v42  ;;  %v2124_v0 = vrot.slane %v2123_v45, 2  ;;  %v2161_v28 = vadd.f32 %v2160_v22, %v2159_v9 }
 0x55c   : > { %v2141_v1 = vrot.slane %v2140_v20, 2  ;;  %v2171_v62 = vpop.xlane.xlu2 %2170  ;;  %v2094_v44 = vmul.f32 %v6283_v63, %v2093_v53  ;;  %v6308_v41 = vsel %vm1401_vm6, 1.0, %v6906_v37 }
 0x55d   : > { %v2078_v3 = vadd.f32 %v2077_v59, %v2061_v58  ;;  %v2125_v6 = vadd.f32 %v2124_v0, %v2123_v45  ;;  %v2168_v57 = vpop.xlane.xlu1 %2167  ;;  %v2162_v42 = vmul.f32 %v6305_v48, %v2161_v28 }
 0x55e   : > { %v2142_v10 = vadd.f32 %v2141_v1, %v2140_v20  ;;  %v2172_v11 = vadd.f32 %v2171_v62, %v2168_v57  ;;  %v4781_v62 = vpack.i.bf16 %v6120_v52, %v6116_v51 }
 0x55f   : > { %v2095_v4 = vadd.f32 %v2094_v44, %v2078_v3  ;;  %v2126_v13 = vrot.slane %v2125_v6, 1 }
 0x560   : > { %v2143_v18 = vrot.slane %v2142_v10, 1  ;;  %v2173_v15 = vrot.slane %v2172_v11, 4 }
 0x561   : > { %v2127_v19 = vadd.f32 %v2126_v13, %v2125_v6  ;;  %v2112_v29 = vadd.f32 %v2111_v60, %v2095_v4 }
 0x562   : > { %v2144_v23 = vadd.f32 %v2143_v18, %v2142_v10  ;;  %v2174_v25 = vadd.f32 %v2173_v15, %v2172_v11 }
 0x563   : > { %v2128_v26 = vmul.f32 %v6293_v16, %v2127_v19 }
 0x564   : > { %v2175_v31 = vrot.slane %v2174_v25, 2  ;;  %v2145_v33 = vmul.f32 %v6299_v30, %v2144_v23 }
 0x565   : > { %v2129_v27 = vadd.f32 %v2128_v26, %v2112_v29  ;;  %v1405_v29 = vshrl.u32 %v1353_v5, 7  ;;  %v1829_v26 = vld [vmem:[#allocation15 + $0x18] sm:$0xff] }
 0x566   : > { %v2176_v34 = vadd.f32 %v2175_v31, %v2174_v25  ;;  %v1828_v31 = vld [vmem:[#allocation15 + $0x10] sm:$0xff]  ;;  %2315 = vmatpush.msra.mxu0 %v1829_v26 }
 0x567   : > { %v2146_v40 = vadd.f32 %v2145_v33, %v2129_v27  ;;  %v6323_v27 = vcvt.s32.f32 %v1405_v29  ;;  %v1827_v33 = vld [vmem:[#allocation15 + $0x8] sm:$0xff] }
 0x568   : > { %v2177_v36 = vrot.slane %v2176_v34, 1  ;;  %2316 = vmatpush.msra.mxu0 %v1828_v31 }
 0x569   : > { %v2163_v50 = vadd.f32 %v2162_v42, %v2146_v40 }
 0x56a   : > { %v2178_v45 = vadd.f32 %v2177_v36, %v2176_v34  ;;  %2317 = vmatpush.msra.mxu0 %v1827_v33  ;;  %v1406_v36 = vadd.s32 8, %v1405_v29  ;;  %v1826_v29 = vld [vmem:[#allocation15] sm:$0xff] }
 0x56c   : > { %v2179_v53 = vmul.f32 %v6308_v41, %v2178_v45  ;;  %v6326_v5 = vcvt.s32.f32 %v1406_v36  ;;  %2318 = vmatpush.msra.mxu0 %v1826_v29  ;;  %v4797_v36 = vld [vmem:[%s6976_s7] ss:$0 sm:$0xff] }
 0x56e   : > { %v2180_v20 = vadd.f32 %v2179_v53, %v2163_v50 }
 0x570   : > { %v2181_v58 = vsel %vm1409_vm0, %v2180_v20, -inf }
 0x571   : > { %2182 = vmax.xlane.f32.xlu0 %v2181_v58 }
 0x5e4   : > { %v2183_v59 = vpop.xlane.xlu0 %2182 }
 0x5e5   : > { %vm2184_vm7 = vcmp.ge.f32.partialorder %v2180_v20, %v2183_v59  ;;  %v2199_v4 = vsub.f32 %v2183_v59, %v2183_v59 }
 0x5e6   : > { %v2185_v0 = vsel %vm2184_vm7, %v6213_v17, 16.0 }
 0x5e7   : > { %v2186_v1 = vsel %vm1409_vm0, %v2185_v0, inf  ;;  %v2200_v18 = vmul.f32 1.442695, %v2199_v4 }
 0x5e8   : > { %2187 = vmin.xlane.f32.xlu1 %v2186_v1 }
 0x601   : > { %4782 = vrot.lane.b32.xlu1 %v4781_v62, %s5558_s23 }
 0x65b   : > { %v2188_v2 = vpop.xlane.xlu1 %2187 }
 0x65c   : > { %vm2189_vm8 = vcmp.eq.f32.partialorder %v6213_v17, %v2188_v2  ;;  %v2221_v34 = vadd.f32 %v2188_v2, %v6323_v27  ;;  %v2222_v58 = vadd.f32 %v2188_v2, %v6326_v5 }
 0x65d   : > { %v2190_v3 = vsel %vm2189_vm8, -1e+30, %v2180_v20 }
 0x65e   : > { %v2191_v44 = vsel %vm1409_vm0, %v2190_v3, -inf  ;;  %v4466_v50 = vadd.f32 -16.0, %v2221_v34  ;;  %vm2223_vm13 = vcmp.ge.f32.partialorder %v2221_v34, 16.0  ;;  %vm2224_vm5 = vcmp.ge.f32.partialorder %v2222_v58, 16.0 }
 0x65f   : > { %2192 = vmax.xlane.f32.xlu2 %v2191_v44 }
 0x660   : > { %v2227_v0 = vsel %vm2223_vm13, %v4466_v50, %v2221_v34 }
 0x661   : > { %vm2230_vm4 = vcmp.eq.f32.partialorder %v6213_v17, %v2227_v0  ;;  %v6346_v0 = vld [vmem:[#allocation2] sm:$0xff] }
 0x673   : > { %v4783_v6 = vpop.permute.xlu1 %4782 }
 0x674   : > { %v4784_v57 = vunpack.i.l.bf16 %v4783_v6  ;;  %v4785_v9 = vunpack.i.h.bf16 %v4783_v6 }
 0x676   : > { %2285 = vmatpush.msrb.mxu3 %v4784_v57 }
 0x678   : > { %2286 = vmatpush.msrb.mxu3 %v4785_v9  ;;  %v4467_v9 = vadd.f32 -16.0, %v2222_v58 }
 0x6d2   : > { %v2193_v10 = vpop.xlane.xlu2 %2192 }
 0x6d3   : > { %vm2194_vm9 = vcmp.ge.f32.partialorder %v2190_v3, %v2193_v10  ;;  %v2202_v52 = vsub.f32 %v2193_v10, %v2183_v59 }
 0x6d4   : > { %v2195_v11 = vsel %vm2194_vm9, %v6213_v17, 16.0 }
 0x6d5   : > { %v2196_v51 = vsel %vm1409_vm0, %v2195_v11, inf  ;;  %v2203_v13 = vmul.f32 1.442695, %v2202_v52 }
 0x6d6   : > { %2197 = vmin.xlane.f32.xlu0 %v2196_v51  ;;  %v4468_v51 = vsel %vm2230_vm4, 1.0, %v6906_v37 }
 0x6d7   : > { %4808 = vpow2.f32 %v2203_v13 }
 0x6d8   : > { %4810 = vpow2.f32 %v2200_v18  ;;  %v2228_v18 = vsel %vm2224_vm5, %v4467_v9, %v2222_v58  ;;  %v1832_v9 = vld [vmem:[#allocation16 + $0x8] sm:$0xff] }
 0x6d9   : > { %vm2231_vm8 = vcmp.eq.f32.partialorder %v6213_v17, %v2228_v18 }
 0x6dd   : > { %v4809_v15 = vpop.eup %4808 }
 0x6de   : > { %v4811_v60 = vpop.eup %4810 }
 0x6df   : > { %v2205_v19 = vadd.f32 %v4811_v60, %v4809_v15 }
 0x6e1   : > { %4812 = vrcp.f32 %v2205_v19  ;;  %v2217_v42 = vand.u32 2147483648, %v2205_v19  ;;  %vm2211_vm11 = vweird.f32 %v2205_v19  ;;  %v2215_v45 = vand.u32 2147483647, %v2205_v19 }
 0x6e3   : > { %v2218_v20 = vor.u32 1.1754944e-38, %v2217_v42  ;;  %vm2216_vm14 = vcmp.eq.f32.partialorder %v2215_v45, 8.507059e+37  ;;  %v1834_v42 = vld [vmem:[#allocation16 + $0x18] sm:$0xff]  ;;  %v1833_v45 = vld [vmem:[#allocation16 + $0x10] sm:$0xff] }
 0x6e4   : > { %2371 = vmatpush.msra.mxu2 %v1834_v42 }
 0x6e6   : > { %2372 = vmatpush.msra.mxu2 %v1833_v45 }
 0x6e7   : > { %v4813_v22 = vpop.eup %4812 }
 0x6e8   : > { %v2207_v23 = vmul.f32 %v4813_v22, %v2205_v19  ;;  %vm2212_vm10 = vweird.f32 %v4813_v22  ;;  %2373 = vmatpush.msra.mxu2 %v1832_v9 }
 0x6e9   : > { %vm2213_vm12 = vmor %vm2211_vm11, %vm2212_vm10 }
 0x6ea   : > { %v2208_v25 = vsub.f32 1.0, %v2207_v23 }
 0x6ec   : > { %v2209_v28 = vmul.f32 %v4813_v22, %v2208_v25 }
 0x6ee   : > { %v2210_v40 = vadd.f32 %v4813_v22, %v2209_v28  ;;  %v1813_v28 = vpop.f32.mrf.mxu0 }
 0x6f0   : > { %v2214_v53 = vsel %vm2213_vm12, %v4813_v22, %v2210_v40 }
 0x6f1   : > { %v2219_v1 = vsel %vm2216_vm14, %v2218_v20, %v2214_v53 }
 0x6f2   : > { %v2229_v57 = vmul.f32 %v4811_v60, %v2219_v1  ;;  %v2248_v2 = vmul.f32 %v4809_v15, %v2219_v1  ;;  %v4469_v60 = vsel %vm2231_vm8, 1.0, %v6906_v37  ;;  %v2595_v1 = vld [vmem:[#allocation19 + $0x10] sm:$0xff] }
 0x6f4   : > { %v2236_v4 = vmul.f32 %v4468_v51, %v2229_v57  ;;  %v2237_v23 = vmul.f32 %v4469_v60, %v2229_v57 }
 0x6f6   : > { %v1816_v33 = vpop.f32.mrf.mxu0 }
 0x749   : > { %v2198_v59 = vpop.xlane.xlu0 %2197 }
 0x74a   : > { %v2240_v62 = vadd.f32 %v2198_v59, %v6323_v27  ;;  %v2241_v3 = vadd.f32 %v2198_v59, %v6326_v5  ;;  %v2596_v59 = vld [vmem:[#allocation19 + $0x18] sm:$0xff] }
 0x74c   : > { %vm2242_vm15 = vcmp.ge.f32.partialorder %v2240_v62, 16.0  ;;  %vm2243_vm1 = vcmp.ge.f32.partialorder %v2241_v3, 16.0  ;;  %v4470_v44 = vadd.f32 -16.0, %v2240_v62  ;;  %v4471_v6 = vadd.f32 -16.0, %v2241_v3 }
 0x74e   : > { %v2246_v10 = vsel %vm2242_vm15, %v4470_v44, %v2240_v62  ;;  %v2247_v11 = vsel %vm2243_vm1, %v4471_v6, %v2241_v3  ;;  %v2594_v62 = vld [vmem:[#allocation19 + $0x8] sm:$0xff]  ;;  %v2593_v3 = vld [vmem:[#allocation19] sm:$0xff]  ;;  %v6350_v44 = vld [vmem:[#allocation2 + $0x8] sm:$0xff]  ;;  %v1762_v6 = vadd.f32 %v6132_v56, %v6113_v47 }
 0x74f   : > { %vm2249_vm6 = vcmp.eq.f32.partialorder %v6213_v17, %v2246_v10  ;;  %vm2250_vm7 = vcmp.eq.f32.partialorder %v6213_v17, %v2247_v11  ;;  %v1831_v10 = vld [vmem:[#allocation16] sm:$0xff]  ;;  %v4798_v47 = vld [vmem:[%s6977_s1] ss:$0 sm:$0xff] }
 0x750   : > { %v4472_v52 = vsel %vm2249_vm6, 1.0, %v6906_v37  ;;  %v4473_v22 = vsel %vm2250_vm7, 1.0, %v6906_v37  ;;  %v6362_v57 = vadd.f32 %v1816_v33, %v1762_v6  ;;  %2374 = vmatpush.msra.mxu2 %v1831_v10 }
 0x751   : > { %v2255_v13 = vmul.f32 %v4472_v52, %v2248_v2  ;;  %v2256_v15 = vmul.f32 %v4473_v22, %v2248_v2 }
 0x753   : > { %v2257_v19 = vadd.f32 %v2255_v13, %v2236_v4  ;;  %v2258_v25 = vadd.f32 %v2256_v15, %v2237_v23 }
 0x755   : > { %4474 = vmatmul.msk.f32.vlgmr.msrb.gmra.mxu3 %vm1409_vm0, %v2257_v19 }
 0x75d   : > { %4475 = vmatmul.msk.f32.gmra.mxu3 %vm1409_vm0, %v2258_v25 }
 0x7d8   : > { %v2288_v26 = vpop.f32.mrf.mxu3 }
 0x7d9   : > { %4476 = vmatmul.msk.f32.vlgmr.msra.gmra.mxu0 %vm1842_vm3, %v2288_v26 }
 0x7e0   : > { %v2291_v31 = vpop.f32.mrf.mxu3 }
 0x7e1   : > { %4477 = vmatmul.msk.f32.gmra.mxu0 %vm1842_vm3, %v2291_v31 }
 0x856   : > { %v2320_v34 = vpop.f32.mrf.mxu0 }
 0x857   : > { %v2321_v50 = vadd.f32 %v4797_v36, %v2320_v34 }
 0x859   : > { %v2326_v58 = vadd.f32 %v2321_v50, %v6101_v39  ;;  %v1759_v39 = vadd.f32 %v6130_v55, %v6111_v46 }
 0x85e   : > { %v2323_v40 = vpop.f32.mrf.mxu0 }
 0x85f   : > { %v2324_v53 = vadd.f32 %v4797_v36, %v2323_v40  ;;  %v1838_v40 = vld [vmem:[#allocation18 + $0x18] sm:$0xff] }
 0x860   : > { %2480 = vmatpush.msra.mxu3 %v1838_v40 }
 0x861   : > { %v2327_v20 = vadd.f32 %v2324_v53, %v6105_v43  ;;  %v6356_v43 = vadd.f32 %v1813_v28, %v1759_v39  ;;  %v1837_v53 = vld [vmem:[#allocation18 + $0x10] sm:$0xff] }
 0x862   : > { %2481 = vmatpush.msra.mxu3 %v1837_v53 }
 0x863   : > { %2342 = vmatpush.msrb.mxu1 %v2327_v20 }
 0x865   : > { %2343 = vmatpush.msrb.mxu1 %v2326_v58 }
 0x866   : > { %4478 = vmatmul.msk.f32.vlgmr.msrb.gmra.mxu1 %vm1409_vm0, %v6346_v0 }
 0x867   : > { %2659 = vmatpush.msra.mxu1 %v2596_v59 }
 0x869   : > { %2660 = vmatpush.msra.mxu1 %v2595_v1 }
 0x86b   : > { %2661 = vmatpush.msra.mxu1 %v2594_v62 }
 0x86d   : > { %2662 = vmatpush.msra.mxu1 %v2593_v3  ;;  %v1835_v3 = vld [vmem:[#allocation18] sm:$0xff] }
 0x86e   : > { %4479 = vmatmul.msk.f32.gmra.mxu1 %vm1409_vm0, %v6350_v44 }
 0x876   : > { %4486 = vmatmul.msk.f32.vlgmr.msra.gmra.mxu1 %vm1842_vm3, %v6356_v43 }
 0x87e   : > { %4487 = vmatmul.msk.f32.gmra.mxu1 %vm1842_vm3, %v6362_v57 }
 0x8e3   : > { %v2345_v11 = vpop.f32.mrf.mxu1 }
 0x8e4   : > { %v6366_v46 = vsub.f32 %v2326_v58, %v2345_v11  ;;  %v1836_v58 = vld [vmem:[#allocation18 + $0x8] sm:$0xff] }
 0x8e5   : > { %2482 = vmatpush.msra.mxu3 %v1836_v58 }
 0x8e6   : > { %4480 = vmatmul.msk.f32.vlgmr.msra.gmra.mxu2 %vm1842_vm3, %v6366_v46 }
 0x8e7   : > { %2483 = vmatpush.msra.mxu3 %v1835_v3 }
 0x8eb   : > { %v2348_v55 = vpop.f32.mrf.mxu1 }
 0x8ec   : > { %v6370_v2 = vsub.f32 %v2327_v20, %v2348_v55 }
 0x8ee   : > { %4481 = vmatmul.msk.f32.gmra.mxu2 %vm1842_vm3, %v6370_v2 }
 0x8f3   : > { %v2664_v56 = vpop.f32.mrf.mxu1 }
 0x8f4   : > { %v6375_v51 = vadd.f32 %v4798_v47, %v2664_v56 }
 0x8f6   : > { %2672 = vrot.lane.b32.xlu0 %v6375_v51, %s5556_s16 }
 0x8fb   : > { %v2667_v52 = vpop.f32.mrf.mxu1 }
 0x8fc   : > { %v6379_v4 = vadd.f32 %v4798_v47, %v2667_v52 }
 0x8fe   : > { %2674 = vrot.lane.b32.xlu2 %v6379_v4, %s5556_s16 }
 0x958   : > { %v2675_v13 = vpop.permute.xlu2 %2674 }
 0x959   : > { %4488 = vmatpush.xpose.msk.msrb.mxu2 %vm1842_vm3, %v2675_v13 }
 0x968   : > { %v2673_v18 = vpop.permute.xlu0 %2672 }
 0x969   : > { %v6384_v19 = vpop.f32.mrf.mxu2  ;;  %4489 = vmatpush.xpose.msk.msrb.mxu2 %vm1842_vm3, %v2673_v18 }
 0x96a   : > { %v6388_v22 = vmul.f32 0.70710677, %v6384_v19 }
 0x96c   : > { %v2386_v15 = vand.u32 2147483647, %v6388_v22  ;;  %4490 = vmatmul.msk.f32.vlgmr.msrb.gmra.mxu2 %vm1842_vm3, %v6375_v51  ;;  %vm2452_vm4 = vcmp.ge.f32.partialorder %v6388_v22, 0.0 }
 0x96e   : > { %v2388_v60 = vmul.f32 0.3275911, %v2386_v15  ;;  %v2440_v6 = vsub.f32 0.0, %v2386_v15 }
 0x970   : > { %v2390_v23 = vadd.f32 1.0, %v2388_v60  ;;  %v2442_v56 = vmul.f32 %v2440_v6, %v2386_v15 }
 0x971   : > { %v6393_v25 = vpop.f32.mrf.mxu2 }
 0x972   : > { %4814 = vrcp.f32 %v2390_v23  ;;  %v6396_v29 = vmul.f32 0.70710677, %v6393_v25  ;;  %v2403_v42 = vand.u32 2147483648, %v2390_v23  ;;  %v2401_v50 = vand.u32 2147483647, %v2390_v23 }
 0x973   : > { %vm2397_vm10 = vweird.f32 %v2390_v23 }
 0x974   : > { %4491 = vmatmul.msk.f32.gmra.mxu2 %vm1842_vm3, %v6379_v4  ;;  %v2387_v26 = vand.u32 2147483647, %v6396_v29  ;;  %v2404_v59 = vor.u32 1.1754944e-38, %v2403_v42  ;;  %vm2402_vm12 = vcmp.eq.f32.partialorder %v2401_v50, 8.507059e+37  ;;  %vm2453_vm5 = vcmp.ge.f32.partialorder %v6396_v29, 0.0 }
 0x976   : > { %v2389_v31 = vmul.f32 0.3275911, %v2387_v26  ;;  %v2441_v42 = vsub.f32 0.0, %v2387_v26 }
 0x978   : > { %v4815_v28 = vpop.eup %4814  ;;  %v2391_v34 = vadd.f32 1.0, %v2389_v31 }
 0x979   : > { %v2393_v33 = vmul.f32 %v4815_v28, %v2390_v23  ;;  %vm2398_vm9 = vweird.f32 %v4815_v28 }
 0x97a   : > { %4816 = vrcp.f32 %v2391_v34  ;;  %vm2399_vm11 = vmor %vm2397_vm10, %vm2398_vm9  ;;  %v2418_v47 = vand.u32 2147483648, %v2391_v34  ;;  %v2416_v13 = vand.u32 2147483647, %v2391_v34  ;;  %vm2412_vm14 = vweird.f32 %v2391_v34 }
 0x97b   : > { %v2394_v36 = vsub.f32 1.0, %v2393_v33 }
 0x97c   : > { %v2419_v31 = vor.u32 1.1754944e-38, %v2418_v47  ;;  %vm2417_vm1 = vcmp.eq.f32.partialorder %v2416_v13, 8.507059e+37  ;;  %v2382_v13 = vmul.f32 0.5, %v6384_v19  ;;  %v4856_v19 = vld [vmem:[#allocation9 + $0x20] sm:$0xff] }
 0x97d   : > { %v2395_v45 = vmul.f32 %v4815_v28, %v2394_v36 }
 0x97f   : > { %v2396_v20 = vadd.f32 %v4815_v28, %v2395_v45 }
 0x980   : > { %v4817_v1 = vpop.eup %4816 }
 0x981   : > { %v2400_v62 = vsel %vm2399_vm11, %v4815_v28, %v2396_v20  ;;  %v2408_v9 = vmul.f32 %v4817_v1, %v2391_v34  ;;  %vm2413_vm13 = vweird.f32 %v4817_v1  ;;  %v2444_v28 = vmul.f32 1.442695, %v2442_v56 }
 0x982   : > { %v2405_v39 = vsel %vm2402_vm12, %v2404_v59, %v2400_v62  ;;  %vm2414_vm15 = vmor %vm2412_vm14, %vm2413_vm13  ;;  %v2443_v20 = vmul.f32 %v2441_v42, %v2387_v26 }
 0x983   : > { %v2422_v10 = vmul.f32 1.0614054, %v2405_v39  ;;  %v2409_v11 = vsub.f32 1.0, %v2408_v9  ;;  %4818 = vpow2.f32 %v2444_v28 }
 0x984   : > { %v2446_v34 = vmul.f32 1.442695, %v2443_v20 }
 0x985   : > { %v2424_v55 = vadd.f32 -1.4531521, %v2422_v10  ;;  %v2410_v52 = vmul.f32 %v4817_v1, %v2409_v11 }
 0x986   : > { %4820 = vpow2.f32 %v2446_v34 }
 0x987   : > { %v2426_v18 = vmul.f32 %v2424_v55, %v2405_v39  ;;  %v2411_v60 = vadd.f32 %v4817_v1, %v2410_v52 }
 0x989   : > { %v2428_v23 = vadd.f32 1.4214138, %v2426_v18  ;;  %v2415_v33 = vsel %vm2414_vm15, %v4817_v1, %v2411_v60  ;;  %v4819_v6 = vpop.eup %4818 }
 0x98a   : > { %v2420_v40 = vsel %vm2417_vm1, %v2419_v31, %v2415_v33 }
 0x98b   : > { %v2430_v36 = vmul.f32 %v2428_v23, %v2405_v39  ;;  %v2423_v45 = vmul.f32 1.0614054, %v2420_v40 }
 0x98c   : > { %v4821_v60 = vpop.eup %4820 }
 0x98d   : > { %v2432_v50 = vadd.f32 -0.28449672, %v2430_v36  ;;  %v2425_v53 = vadd.f32 -1.4531521, %v2423_v45  ;;  %v2383_v36 = vmul.f32 0.5, %v6393_v25 }
 0x98f   : > { %v2434_v15 = vmul.f32 %v2432_v50, %v2405_v39  ;;  %v2427_v58 = vmul.f32 %v2425_v53, %v2420_v40  ;;  %v4857_v50 = vld [vmem:[#allocation9 + $0x10] sm:$0xff] }
 0x991   : > { %v2436_v59 = vadd.f32 0.2548296, %v2434_v15  ;;  %v2429_v62 = vadd.f32 1.4214138, %v2427_v58  ;;  %v4858_v15 = vld [vmem:[#allocation9] sm:$0xff] }
 0x993   : > { %v2438_v3 = vmul.f32 %v2436_v59, %v2405_v39  ;;  %v2431_v9 = vmul.f32 %v2429_v62, %v2420_v40  ;;  %v4859_v59 = vld [vmem:[#allocation9 + $0x50] sm:$0xff] }
 0x995   : > { %v2448_v10 = vmul.f32 %v4819_v6, %v2438_v3  ;;  %v2433_v11 = vadd.f32 -0.28449672, %v2431_v9  ;;  %v4860_v3 = vld [vmem:[#allocation9 + $0x40] sm:$0xff]  ;;  %v6417_v6 = vld [vmem:[#allocation9 + $0x30] sm:$0xff] }
 0x996   : > { %6978 = vst [vmem:[#allocation65_spill] sm:$0xff] %v6417_v6 }
 0x997   : > { %v2450_v1 = vsub.f32 1.0, %v2448_v10  ;;  %v2435_v55 = vmul.f32 %v2433_v11, %v2420_v40 }
 0x999   : > { %v2454_v47 = vsub.f32 0.0, %v2450_v1  ;;  %v2437_v56 = vadd.f32 0.2548296, %v2435_v55  ;;  %v6424_v55 = vld [vmem:[#allocation9 + $0x80] sm:$0xff] }
 0x99a   : > { %6979 = vst [vmem:[#allocation66_spill] sm:$0xff] %v6424_v55 }
 0x99b   : > { %v2456_v52 = vsel %vm2452_vm4, %v2450_v1, %v2454_v47  ;;  %v2439_v18 = vmul.f32 %v2437_v56, %v2420_v40  ;;  %v6428_v56 = vld [vmem:[#allocation9 + $0x70] sm:$0xff] }
 0x99c   : > { %v2458_v26 = vadd.f32 1.0, %v2456_v52  ;;  %6980 = vst [vmem:[#allocation67_spill] sm:$0xff] %v6428_v56 }
 0x99d   : > { %v2449_v39 = vmul.f32 %v4821_v60, %v2439_v18 }
 0x99e   : > { %v2460_v23 = vmul.f32 %v2458_v26, %v2382_v13  ;;  %v4864_v13 = vld [vmem:[#allocation9 + $0x60] sm:$0xff] }
 0x99f   : > { %v2451_v31 = vsub.f32 1.0, %v2449_v39  ;;  %v6436_v39 = vld [vmem:[#allocation9 + $0xb0] sm:$0xff] }
 0x9a0   : > { %4482 = vmatmul.msk.f32.vlgmr.msra.gmra.mxu3 %vm1842_vm3, %v2460_v23  ;;  %6981 = vst [vmem:[#allocation68_spill] sm:$0xff] %v6436_v39 }
 0x9a1   : > { %v2455_v28 = vsub.f32 0.0, %v2451_v31 }
 0x9a3   : > { %v2457_v33 = vsel %vm2453_vm5, %v2451_v31, %v2455_v28  ;;  %v6440_v28 = vld [vmem:[#allocation9 + $0xa0] sm:$0xff] }
 0x9a4   : > { %v2459_v42 = vadd.f32 1.0, %v2457_v33  ;;  %6982 = vst [vmem:[#allocation69_spill] sm:$0xff] %v6440_v28 }
 0x9a6   : > { %v2461_v22 = vmul.f32 %v2459_v42, %v2383_v36  ;;  %v4867_v36 = vld [vmem:[#allocation9 + $0x90] sm:$0xff] }
 0x9a8   : > { %4483 = vmatmul.msk.f32.gmra.mxu3 %vm1842_vm3, %v2461_v22 }
 0x9ef   : > { %v6407_v45 = vpop.f32.mrf.mxu2 }
 0x9f0   : > { %v2741_v40 = vmul.f32 %v4856_v19, %v6407_v45  ;;  %v2724_v53 = vmul.f32 %v4857_v50, %v6407_v45  ;;  %v2707_v20 = vmul.f32 %v4858_v15, %v6407_v45  ;;  %v2792_v62 = vmul.f32 %v4859_v59, %v6407_v45  ;;  %v6448_v50 = vld [vmem:[#allocation9 + $0xe0] sm:$0xff]  ;;  %v6452_v15 = vld [vmem:[#allocation9 + $0xd0] sm:$0xff] }
 0x9f1   : > { %v2775_v34 = vmul.f32 %v4860_v3, %v6407_v45  ;;  %v2758_v9 = vmul.f32 %v6417_v6, %v6407_v45  ;;  %v2843_v47 = vmul.f32 %v6424_v55, %v6407_v45  ;;  %v2826_v52 = vmul.f32 %v6428_v56, %v6407_v45  ;;  %6983 = vst [vmem:[#allocation70_spill] sm:$0xff] %v6448_v50 }
 0x9f2   : > { %v2743_v29 = vsel %vm1409_vm0, %v2741_v40, 0.0  ;;  %v2726_v58 = vsel %vm1409_vm0, %v2724_v53, 0.0  ;;  %v2709_v25 = vsel %vm1409_vm0, %v2707_v20, 0.0  ;;  %v2794_v10 = vsel %vm1409_vm0, %v2792_v62, 0.0  ;;  %6984 = vst [vmem:[#allocation71_spill] sm:$0xff] %v6452_v15 }
 0x9f3   : > { %2744 = vadd.xlane.f32.xlu2 %v2743_v29  ;;  %2727 = vadd.xlane.f32.xlu1 %v2726_v58  ;;  %v2777_v11 = vsel %vm1409_vm0, %v2775_v34, 0.0  ;;  %v2760_v1 = vsel %vm1409_vm0, %v2758_v9, 0.0  ;;  %v2809_v26 = vmul.f32 %v4864_v13, %v6407_v45  ;;  %v2845_v18 = vsel %vm1409_vm0, %v2843_v47, 0.0  ;;  %v4870_v29 = vld [vmem:[#allocation9 + $0xc0] sm:$0xff]  ;;  %v4871_v34 = vld [vmem:[#allocation9 + $0x28] sm:$0xff] }
 0x9f4   : > { %2710 = vadd.xlane.f32.xlu0 %v2709_v25  ;;  %v2828_v60 = vsel %vm1409_vm0, %v2826_v52, 0.0  ;;  %v2894_v31 = vmul.f32 %v6436_v39, %v6407_v45  ;;  %v2877_v33 = vmul.f32 %v6440_v28, %v6407_v45  ;;  %v2860_v42 = vmul.f32 %v4867_v36, %v6407_v45 }
 0x9f5   : > { %v2811_v23 = vsel %vm1409_vm0, %v2809_v26, 0.0  ;;  %v2945_v53 = vmul.f32 %v6448_v50, %v6407_v45  ;;  %v2928_v20 = vmul.f32 %v6452_v15, %v6407_v45  ;;  %v2911_v58 = vmul.f32 %v4870_v29, %v6407_v45  ;;  %v6478_v29 = vld [vmem:[#allocation9 + $0x68] sm:$0xff] }
 0x9f6   : > { %v2896_v22 = vsel %vm1409_vm0, %v2894_v31, 0.0  ;;  %v2879_v19 = vsel %vm1409_vm0, %v2877_v33, 0.0  ;;  %v2862_v40 = vsel %vm1409_vm0, %v2860_v42, 0.0  ;;  %v4876_v33 = vld [vmem:[#allocation9 + $0x48] sm:$0xff]  ;;  %6986 = vst [vmem:[#allocation73_spill] sm:$0xff] %v6478_v29 }
 0x9f7   : > { %v2947_v25 = vsel %vm1409_vm0, %v2945_v53, 0.0  ;;  %v2930_v59 = vsel %vm1409_vm0, %v2928_v20, 0.0  ;;  %v6459_v62 = vpop.f32.mrf.mxu2  ;;  %v2913_v3 = vsel %vm1409_vm0, %v2911_v58, 0.0  ;;  %v4877_v53 = vld [vmem:[#allocation9 + $0x88] sm:$0xff] }
 0x9f8   : > { %v2742_v9 = vmul.f32 %v4871_v34, %v6459_v62  ;;  %v2776_v36 = vmul.f32 %v4876_v33, %v6459_v62  ;;  %v2844_v20 = vmul.f32 %v4877_v53, %v6459_v62  ;;  %v2810_v58 = vmul.f32 %v6478_v29, %v6459_v62  ;;  %v4883_v33 = vld [vmem:[#allocation9 + $0xe8] sm:$0xff] }
 0x9fa   : > { %v2746_v52 = vsel %vm1409_vm0, %v2742_v9, 0.0  ;;  %v2814_v34 = vsel %vm1409_vm0, %v2810_v58, 0.0  ;;  %v6522_v58 = vld [vmem:[#allocation9 + $0xf8] sm:$0xff] }
 0x9fb   : > { %2795 = vadd.xlane.f32.xlu2 %v2794_v10  ;;  %2778 = vadd.xlane.f32.xlu1 %v2777_v11  ;;  %v4872_v10 = vld [vmem:[#allocation9 + $0x8] sm:$0xff]  ;;  %6991 = vst [vmem:[#allocation78_spill] sm:$0xff] %v6522_v58 }
 0x9fc   : > { %2761 = vadd.xlane.f32.xlu0 %v2760_v1  ;;  %v2708_v11 = vmul.f32 %v4872_v10, %v6459_v62  ;;  %v6464_v1 = vld [vmem:[#allocation9 + $0x18] sm:$0xff] }
 0x9fd   : > { %6985 = vst [vmem:[#allocation72_spill] sm:$0xff] %v6464_v1  ;;  %v2725_v47 = vmul.f32 %v6464_v1, %v6459_v62 }
 0x9fe   : > { %v2712_v13 = vsel %vm1409_vm0, %v2708_v11, 0.0 }
 0x9ff   : > { %v2729_v26 = vsel %vm1409_vm0, %v2725_v47, 0.0  ;;  %v4880_v47 = vld [vmem:[#allocation9 + $0xb8] sm:$0xff] }
 0xa03   : > { %2846 = vadd.xlane.f32.xlu2 %v2845_v18  ;;  %2829 = vadd.xlane.f32.xlu1 %v2828_v60  ;;  %v4874_v18 = vld [vmem:[#allocation9 + $0x58] sm:$0xff] }
 0xa04   : > { %2812 = vadd.xlane.f32.xlu0 %v2811_v23  ;;  %v2793_v60 = vmul.f32 %v4874_v18, %v6459_v62  ;;  %v4875_v23 = vld [vmem:[#allocation9 + $0x38] sm:$0xff] }
 0xa05   : > { %v2759_v31 = vmul.f32 %v4875_v23, %v6459_v62 }
 0xa06   : > { %v2797_v42 = vsel %vm1409_vm0, %v2793_v60, 0.0  ;;  %v6498_v60 = vld [vmem:[#allocation9 + $0xa8] sm:$0xff] }
 0xa07   : > { %6988 = vst [vmem:[#allocation75_spill] sm:$0xff] %v6498_v60  ;;  %v2878_v23 = vmul.f32 %v6498_v60, %v6459_v62 }
 0xa0b   : > { %2897 = vadd.xlane.f32.xlu2 %v2896_v22  ;;  %2880 = vadd.xlane.f32.xlu1 %v2879_v19  ;;  %v2763_v22 = vsel %vm1409_vm0, %v2759_v31, 0.0 }
 0xa0c   : > { %2863 = vadd.xlane.f32.xlu0 %v2862_v40  ;;  %v2780_v40 = vsel %vm1409_vm0, %v2776_v36, 0.0  ;;  %v2946_v36 = vmul.f32 %v4883_v33, %v6459_v62 }
 0xa13   : > { %2948 = vadd.xlane.f32.xlu2 %v2947_v25  ;;  %2931 = vadd.xlane.f32.xlu1 %v2930_v59  ;;  %v4879_v25 = vld [vmem:[#allocation9 + $0x78] sm:$0xff] }
 0xa14   : > { %2914 = vadd.xlane.f32.xlu0 %v2913_v3  ;;  %v2827_v59 = vmul.f32 %v4879_v25, %v6459_v62  ;;  %v2848_v3 = vsel %vm1409_vm0, %v2844_v20, 0.0  ;;  %v2963_v25 = vmul.f32 %v6522_v58, %v6459_v62 }
 0xa16   : > { %v2831_v9 = vsel %vm1409_vm0, %v2827_v59, 0.0  ;;  %v6526_v59 = vld [vmem:[#allocation9 + $0xf0] sm:$0xff] }
 0xa17   : > { %6992 = vst [vmem:[#allocation79_spill] sm:$0xff] %v6526_v59 }
 0xa1b   : > { %2747 = vadd.xlane.f32.xlu1 %v2746_v52  ;;  %2713 = vadd.xlane.f32.xlu2 %v2712_v13  ;;  %v2895_v52 = vmul.f32 %v4880_v47, %v6459_v62  ;;  %v6490_v13 = vld [vmem:[#allocation9 + $0x98] sm:$0xff] }
 0xa1c   : > { %2730 = vadd.xlane.f32.xlu0 %v2729_v26  ;;  %6987 = vst [vmem:[#allocation74_spill] sm:$0xff] %v6490_v13  ;;  %v2861_v26 = vmul.f32 %v6490_v13, %v6459_v62 }
 0xa1e   : > { %v2865_v31 = vsel %vm1409_vm0, %v2861_v26, 0.0 }
 0xa23   : > { %v2485_v19 = vpop.f32.mrf.mxu3  ;;  %2798 = vadd.xlane.f32.xlu1 %v2797_v42  ;;  %2764 = vadd.xlane.f32.xlu2 %v2763_v22  ;;  %v6509_v42 = vld [vmem:[#allocation9 + $0xc8] sm:$0xff] }
 0xa24   : > { %2781 = vadd.xlane.f32.xlu0 %v2780_v40  ;;  %v6495_v18 = vadd.f32 %v2485_v19, %v6366_v46  ;;  %v2882_v46 = vsel %vm1409_vm0, %v2878_v23, 0.0  ;;  %6989 = vst [vmem:[#allocation76_spill] sm:$0xff] %v6509_v42  ;;  %v2912_v22 = vmul.f32 %v6509_v42, %v6459_v62  ;;  %v6513_v19 = vld [vmem:[#allocation9 + $0xd8] sm:$0xff]  ;;  %v2950_v40 = vsel %vm1409_vm0, %v2946_v36, 0.0 }
 0xa25   : > { %6990 = vst [vmem:[#allocation77_spill] sm:$0xff] %v6513_v19 }
 0xa26   : > { %v2916_v53 = vsel %vm1409_vm0, %v2912_v22, 0.0 }
 0xa2b   : > { %2849 = vadd.xlane.f32.xlu1 %v2848_v3  ;;  %2815 = vadd.xlane.f32.xlu2 %v2814_v34  ;;  %v2488_v10 = vpop.f32.mrf.mxu3  ;;  %v2962_v3 = vmul.f32 %v6526_v59, %v6407_v45 }
 0xa2c   : > { %2832 = vadd.xlane.f32.xlu0 %v2831_v9  ;;  %v6487_v11 = vadd.f32 %v2488_v10, %v6370_v2  ;;  %v2899_v2 = vsel %vm1409_vm0, %v2895_v52, 0.0 }
 0xa2d   : > { %v2964_v34 = vsel %vm1409_vm0, %v2962_v3, 0.0 }
 0xa2e   : > { %2507 = vmatpush.msrb.mxu0 %v6487_v11 }
 0xa30   : > { %2508 = vmatpush.msrb.mxu0 %v6495_v18 }
 0xa31   : > { %4484 = vmatmul.msk.f32.vlgmr.msrb.gmra.mxu0 %vm1409_vm0, %v6346_v0  ;;  %v2929_v0 = vmul.f32 %v6513_v19, %v6459_v62 }
 0xa33   : > { %2900 = vadd.xlane.f32.xlu1 %v2899_v2  ;;  %2866 = vadd.xlane.f32.xlu2 %v2865_v31  ;;  %v2933_v20 = vsel %vm1409_vm0, %v2929_v0, 0.0 }
 0xa34   : > { %2883 = vadd.xlane.f32.xlu0 %v2882_v46 }
 0xa39   : > { %4485 = vmatmul.msk.f32.gmra.mxu0 %vm1409_vm0, %v6350_v44  ;;  %v2967_v44 = vsel %vm1409_vm0, %v2963_v25, 0.0 }
 0xa3b   : > { %2951 = vadd.xlane.f32.xlu1 %v2950_v40  ;;  %2917 = vadd.xlane.f32.xlu2 %v2916_v53 }
 0xa3c   : > { %2934 = vadd.xlane.f32.xlu0 %v2933_v20 }
 0xa43   : > { %2968 = vadd.xlane.f32.xlu2 %v2967_v44 }
 0xa44   : > { %2965 = vadd.xlane.f32.xlu0 %v2964_v34 }
 0xa66   : > { %v2745_v9 = vpop.xlane.xlu2 %2744  ;;  %v2728_v10 = vpop.xlane.xlu1 %2727 }
 0xa67   : > { %v2711_v47 = vpop.xlane.xlu0 %2710 }
 0xa6e   : > { %v2796_v52 = vpop.xlane.xlu2 %2795  ;;  %v2779_v26 = vpop.xlane.xlu1 %2778 }
 0xa6f   : > { %v2762_v23 = vpop.xlane.xlu0 %2761 }
 0xa76   : > { %v2847_v2 = vpop.xlane.xlu2 %2846  ;;  %v2830_v31 = vpop.xlane.xlu1 %2829 }
 0xa77   : > { %v2813_v62 = vpop.xlane.xlu0 %2812 }
 0xa7e   : > { %v6532_v46 = vpop.xlane.xlu2 %2897  ;;  %v6534_v33 = vpop.xlane.xlu1 %2880 }
 0xa7f   : > { %v6536_v45 = vpop.xlane.xlu0 %2863 }
 0xa86   : > { %v6538_v36 = vpop.xlane.xlu2 %2948  ;;  %v6540_v22 = vpop.xlane.xlu1 %2931 }
 0xa87   : > { %v6542_v0 = vpop.xlane.xlu0 %2914 }
 0xa8e   : > { %v2748_v40 = vpop.xlane.xlu1 %2747  ;;  %v2714_v53 = vpop.xlane.xlu2 %2713 }
 0xa8f   : > { %v2749_v20 = vadd.f32 %v2748_v40, %v2745_v9  ;;  %v2731_v25 = vpop.xlane.xlu0 %2730  ;;  %v2715_v3 = vadd.f32 %v2714_v53, %v2711_v47 }
 0xa90   : > { %v2732_v44 = vadd.f32 %v2731_v25, %v2728_v10 }
 0xa91   : > { %v2750_v34 = vrot.slane %v2749_v20, 4  ;;  %v2716_v37 = vrot.slane %v2715_v3, 4 }
 0xa92   : > { %v2733_v32 = vrot.slane %v2732_v44, 4 }
 0xa93   : > { %v2751_v59 = vadd.f32 %v2750_v34, %v2749_v20  ;;  %v2717_v19 = vadd.f32 %v2716_v37, %v2715_v3 }
 0xa94   : > { %v2734_v60 = vadd.f32 %v2733_v32, %v2732_v44 }
 0xa95   : > { %v2752_v58 = vrot.slane %v2751_v59, 2  ;;  %v2718_v42 = vrot.slane %v2717_v19, 2 }
 0xa96   : > { %v2735_v13 = vrot.slane %v2734_v60, 2  ;;  %v2799_v1 = vpop.xlane.xlu1 %2798  ;;  %v2765_v29 = vpop.xlane.xlu2 %2764 }
 0xa97   : > { %v2753_v15 = vadd.f32 %v2752_v58, %v2751_v59  ;;  %v2719_v50 = vadd.f32 %v2718_v42, %v2717_v19  ;;  %v2800_v28 = vadd.f32 %v2799_v1, %v2796_v52  ;;  %v2782_v39 = vpop.xlane.xlu0 %2781  ;;  %v2766_v56 = vadd.f32 %v2765_v29, %v2762_v23 }
 0xa98   : > { %v2736_v9 = vadd.f32 %v2735_v13, %v2734_v60  ;;  %v2783_v40 = vadd.f32 %v2782_v39, %v2779_v26 }
 0xa99   : > { %v2720_v47 = vrot.slane %v2719_v50, 1  ;;  %v2801_v10 = vrot.slane %v2800_v28, 4  ;;  %v2767_v53 = vrot.slane %v2766_v56, 4  ;;  %v2754_v25 = vrot.slane %v2753_v15, 1 }
 0xa9a   : > { %v2737_v55 = vrot.slane %v2736_v9, 1  ;;  %v2784_v20 = vrot.slane %v2783_v40, 4 }
 0xa9b   : > { %v2721_v37 = vadd.f32 %v2720_v47, %v2719_v50  ;;  %v2802_v32 = vadd.f32 %v2801_v10, %v2800_v28  ;;  %v2768_v3 = vadd.f32 %v2767_v53, %v2766_v56  ;;  %v2755_v1 = vadd.f32 %v2754_v25, %v2753_v15 }
 0xa9c   : > { %v2738_v44 = vadd.f32 %v2737_v55, %v2736_v9  ;;  %v2785_v34 = vadd.f32 %v2784_v20, %v2783_v40 }
 0xa9d   : > { %v2722_v6 = vmul.f32 %v6219_v38, %v2721_v37  ;;  %v2803_v58 = vrot.slane %v2802_v32, 2  ;;  %v2769_v42 = vrot.slane %v2768_v3, 2  ;;  %v2756_v15 = vmul.f32 %v6222_v49, %v2755_v1 }
 0xa9e   : > { %v2739_v29 = vmul.f32 %v6233_v12, %v2738_v44  ;;  %v2786_v13 = vrot.slane %v2785_v34, 2  ;;  %v2850_v39 = vpop.xlane.xlu1 %2849  ;;  %v2816_v60 = vpop.xlane.xlu2 %2815 }
 0xa9f   : > { %v2804_v19 = vadd.f32 %v2803_v58, %v2802_v32  ;;  %v2770_v59 = vadd.f32 %v2769_v42, %v2768_v3  ;;  %v2851_v52 = vadd.f32 %v2850_v39, %v2847_v2  ;;  %v2833_v26 = vpop.xlane.xlu0 %2832  ;;  %v2817_v23 = vadd.f32 %v2816_v60, %v2813_v62 }
 0xaa0   : > { %v2787_v50 = vadd.f32 %v2786_v13, %v2785_v34  ;;  %v2834_v28 = vadd.f32 %v2833_v26, %v2830_v31  ;;  %v2740_v56 = vadd.f32 %v2739_v29, %v2722_v6 }
 0xaa1   : > { %v2771_v55 = vrot.slane %v2770_v59, 1  ;;  %v2852_v9 = vrot.slane %v2851_v52, 4  ;;  %v2818_v40 = vrot.slane %v2817_v23, 4  ;;  %v2805_v47 = vrot.slane %v2804_v19, 1 }
 0xaa2   : > { %v2788_v10 = vrot.slane %v2787_v50, 1  ;;  %v2835_v53 = vrot.slane %v2834_v28, 4  ;;  %v2757_v3 = vadd.f32 %v2756_v15, %v2740_v56 }
 0xaa3   : > { %v2772_v25 = vadd.f32 %v2771_v55, %v2770_v59  ;;  %v2853_v20 = vadd.f32 %v2852_v9, %v2851_v52  ;;  %v2819_v37 = vadd.f32 %v2818_v40, %v2817_v23  ;;  %v2806_v31 = vadd.f32 %v2805_v47, %v2804_v19 }
 0xaa4   : > { %v2789_v44 = vadd.f32 %v2788_v10, %v2787_v50  ;;  %v2836_v32 = vadd.f32 %v2835_v53, %v2834_v28 }
 0xaa5   : > { %v2773_v2 = vmul.f32 %v6225_v54, %v2772_v25  ;;  %v2854_v62 = vrot.slane %v2853_v20, 2  ;;  %v2820_v34 = vrot.slane %v2819_v37, 2  ;;  %v2807_v47 = vmul.f32 %v6250_v24, %v2806_v31 }
 0xaa6   : > { %v2790_v6 = vmul.f32 %v6244_v21, %v2789_v44  ;;  %v2837_v58 = vrot.slane %v2836_v32, 2  ;;  %v2901_v42 = vpop.xlane.xlu1 %2900  ;;  %v2867_v29 = vpop.xlane.xlu2 %2866 }
 0xaa7   : > { %v2774_v13 = vadd.f32 %v2773_v2, %v2757_v3  ;;  %v2855_v39 = vadd.f32 %v2854_v62, %v2853_v20  ;;  %v2821_v60 = vadd.f32 %v2820_v34, %v2819_v37  ;;  %v2902_v1 = vadd.f32 %v2901_v42, %v6532_v46  ;;  %v2884_v59 = vpop.xlane.xlu0 %2883 }
 0xaa8   : > { %v2838_v52 = vadd.f32 %v2837_v58, %v2836_v32  ;;  %v2885_v26 = vadd.f32 %v2884_v59, %v6534_v33  ;;  %v2868_v23 = vadd.f32 %v2867_v29, %v6536_v45 }
 0xaa9   : > { %v2791_v50 = vadd.f32 %v2790_v6, %v2774_v13  ;;  %v2822_v28 = vrot.slane %v2821_v60, 1  ;;  %v2903_v56 = vrot.slane %v2902_v1, 4  ;;  %v2856_v19 = vrot.slane %v2855_v39, 1 }
 0xaaa   : > { %v2839_v55 = vrot.slane %v2838_v52, 1  ;;  %v2886_v9 = vrot.slane %v2885_v26, 4  ;;  %v2869_v40 = vrot.slane %v2868_v23, 4 }
 0xaab   : > { %v2823_v10 = vadd.f32 %v2822_v28, %v2821_v60  ;;  %v2904_v53 = vadd.f32 %v2903_v56, %v2902_v1  ;;  %v2808_v20 = vadd.f32 %v2807_v47, %v2791_v50  ;;  %v2857_v44 = vadd.f32 %v2856_v19, %v2855_v39 }
 0xaac   : > { %v2840_v15 = vadd.f32 %v2839_v55, %v2838_v52  ;;  %v2887_v25 = vadd.f32 %v2886_v9, %v2885_v26  ;;  %v2870_v46 = vadd.f32 %v2869_v40, %v2868_v23 }
 0xaad   : > { %v2824_v37 = vmul.f32 %v6262_v61, %v2823_v10  ;;  %v2905_v33 = vrot.slane %v2904_v53, 2 }
 0xaae   : > { %v2888_v45 = vrot.slane %v2887_v25, 2  ;;  %v2871_v32 = vrot.slane %v2870_v46, 2  ;;  %v2952_v3 = vpop.xlane.xlu1 %2951  ;;  %v2918_v2 = vpop.xlane.xlu2 %2917  ;;  %v2841_v42 = vmul.f32 %v6265_v7, %v2840_v15 }
 0xaaf   : > { %v2825_v62 = vadd.f32 %v2824_v37, %v2808_v20  ;;  %v2906_v34 = vadd.f32 %v2905_v33, %v2904_v53  ;;  %v2953_v6 = vadd.f32 %v2952_v3, %v6538_v36  ;;  %v2935_v58 = vpop.xlane.xlu0 %2934  ;;  %v2919_v31 = vadd.f32 %v2918_v2, %v6542_v0 }
 0xab0   : > { %v2889_v29 = vadd.f32 %v2888_v45, %v2887_v25  ;;  %v2872_v13 = vadd.f32 %v2871_v32, %v2870_v46  ;;  %v2936_v60 = vadd.f32 %v2935_v58, %v6540_v22  ;;  %v2858_v36 = vmul.f32 %v6238_v14, %v2857_v44 }
 0xab1   : > { %v2954_v1 = vrot.slane %v2953_v6, 4  ;;  %v2920_v59 = vrot.slane %v2919_v31, 4  ;;  %v2842_v39 = vadd.f32 %v2841_v42, %v2825_v62  ;;  %v2907_v50 = vrot.slane %v2906_v34, 1 }
 0xab2   : > { %v2890_v52 = vrot.slane %v2889_v29, 1  ;;  %v2873_v26 = vrot.slane %v2872_v13, 1  ;;  %v2937_v23 = vrot.slane %v2936_v60, 4 }
 0xab3   : > { %v2955_v28 = vadd.f32 %v2954_v1, %v2953_v6  ;;  %v2921_v56 = vadd.f32 %v2920_v59, %v2919_v31  ;;  %v2859_v47 = vadd.f32 %v2858_v36, %v2842_v39  ;;  %v2908_v15 = vadd.f32 %v2907_v50, %v2906_v34 }
 0xab4   : > { %v2891_v19 = vadd.f32 %v2890_v52, %v2889_v29  ;;  %v2874_v55 = vadd.f32 %v2873_v26, %v2872_v13  ;;  %v2938_v0 = vadd.f32 %v2937_v23, %v2936_v60 }
 0xab5   : > { %v2956_v9 = vrot.slane %v2955_v28, 2  ;;  %v2922_v40 = vrot.slane %v2921_v56, 2  ;;  %v2909_v6 = vmul.f32 %v6290_v8, %v2908_v15  ;;  %v2510_v15 = vpop.f32.mrf.mxu0 }
 0xab6   : > { %v2875_v10 = vmul.f32 %v6278_v35, %v2874_v55  ;;  %v2939_v22 = vrot.slane %v2938_v0, 2  ;;  %v2969_v53 = vpop.xlane.xlu2 %2968  ;;  %v2892_v25 = vmul.f32 %v6283_v63, %v2891_v19 }
 0xab7   : > { %v2923_v46 = vadd.f32 %v2922_v40, %v2921_v56  ;;  %v2966_v20 = vpop.xlane.xlu0 %2965  ;;  %v2957_v33 = vadd.f32 %v2956_v9, %v2955_v28 }
 0xab8   : > { %v2876_v37 = vadd.f32 %v2875_v10, %v2859_v47  ;;  %v2940_v45 = vadd.f32 %v2939_v22, %v2938_v0  ;;  %v2970_v32 = vadd.f32 %v2969_v53, %v2966_v20  ;;  %v4786_v47 = vpack.i.bf16 %v6375_v51, %v6379_v4 }
 0xab9   : > { %v2924_v44 = vrot.slane %v2923_v46, 1  ;;  %v2958_v31 = vrot.slane %v2957_v33, 1  ;;  %v5559_v51 = vmov 32.0  }
 0xaba   : > { %v2893_v3 = vadd.f32 %v2892_v25, %v2876_v37  ;;  %v2941_v2 = vrot.slane %v2940_v45, 1  ;;  %v2971_v62 = vrot.slane %v2970_v32, 4  ;;  %v2516_v25 = vsub.f32 %v6495_v18, %v2510_v15 }
 0xabb   : > { %v2925_v58 = vadd.f32 %v2924_v44, %v2923_v46  ;;  %v2959_v59 = vadd.f32 %v2958_v31, %v2957_v33  ;;  %4822 = vrcp.f32 %v5559_v51 }
 0xabc   : > { %v2942_v42 = vadd.f32 %v2941_v2, %v2940_v45  ;;  %v2972_v29 = vadd.f32 %v2971_v62, %v2970_v32  ;;  %v2910_v13 = vadd.f32 %v2909_v6, %v2893_v3  ;;  %v2520_v46 = vsel %vm1842_vm3, %v2516_v25, 0.0 }
 0xabd   : > { %v2926_v34 = vmul.f32 %v6293_v16, %v2925_v58  ;;  %v2960_v50 = vmul.f32 %v6305_v48, %v2959_v59 }
 0xabe   : > { %v2973_v60 = vrot.slane %v2972_v29, 2  ;;  %v2943_v39 = vmul.f32 %v6299_v30, %v2942_v42 }
 0xabf   : > { %v2927_v1 = vadd.f32 %v2926_v34, %v2910_v13 }
 0xac0   : > { %v2974_v52 = vadd.f32 %v2973_v60, %v2972_v29  ;;  %v2513_v29 = vpop.f32.mrf.mxu0 }
 0xac1   : > { %v2944_v23 = vadd.f32 %v2943_v39, %v2927_v1  ;;  %v4823_v4 = vpop.eup %4822  ;;  %v2517_v34 = vsub.f32 %v6487_v11, %v2513_v29 }
 0xac2   : > { %v2975_v26 = vrot.slane %v2974_v52, 1  ;;  %v2527_v45 = vmul.f32 32.0, %v4823_v4  ;;  %vm2531_vm9 = vweird.f32 %v4823_v4 }
 0xac3   : > { %v2961_v56 = vadd.f32 %v2960_v50, %v2944_v23 }
 0xac4   : > { %v2976_v28 = vadd.f32 %v2975_v26, %v2974_v52  ;;  %v2528_v32 = vsub.f32 1.0, %v2527_v45  ;;  %v2523_v26 = vsel %vm1842_vm3, %v2517_v34, 0.0 }
 0xac6   : > { %v2977_v36 = vmul.f32 %v6308_v41, %v2976_v28  ;;  %v2529_v3 = vmul.f32 %v4823_v4, %v2528_v32 }
 0xac8   : > { %v2978_v19 = vadd.f32 %v2977_v36, %v2961_v56  ;;  %v2530_v58 = vadd.f32 %v4823_v4, %v2529_v3 }
 0xaca   : > { %v2979_v55 = vsel %vm1409_vm0, %v2978_v19, -inf  ;;  %v6578_v13 = vsel %vm2531_vm9, %v4823_v4, %v2530_v58 }
 0xacb   : > { %2980 = vmax.xlane.f32.xlu1 %v2979_v55  ;;  %6993 = vst [vmem:[#allocation80_spill] sm:$0xff] %v6578_v13 }
 0xb3e   : > { %v2981_v0 = vpop.xlane.xlu1 %2980 }
 0xb3f   : > { %vm2982_vm6 = vcmp.ge.f32.partialorder %v2978_v19, %v2981_v0  ;;  %v2997_v44 = vsub.f32 %v2981_v0, %v2981_v0 }
 0xb40   : > { %v2983_v9 = vsel %vm2982_vm6, %v6213_v17, 16.0 }
 0xb41   : > { %v2984_v40 = vsel %vm1409_vm0, %v2983_v9, inf  ;;  %v2998_v2 = vmul.f32 1.442695, %v2997_v44 }
 0xb42   : > { %2985 = vmin.xlane.f32.xlu0 %v2984_v40 }
 0xb43   : > { %4824 = vpow2.f32 %v2998_v2 }
 0xb49   : > { %v4825_v59 = vpop.eup %4824 }
 0xb56   : > { %4787 = vrot.lane.b32.xlu0 %v4786_v47, %s5558_s23 }
 0xbb5   : > { %v2986_v10 = vpop.xlane.xlu0 %2985 }
 0xbb6   : > { %vm2987_vm7 = vcmp.eq.f32.partialorder %v6213_v17, %v2986_v10  ;;  %v3019_v11 = vadd.f32 %v2986_v10, %v6323_v27  ;;  %v3020_v56 = vadd.f32 %v2986_v10, %v6326_v5 }
 0xbb7   : > { %v2988_v22 = vsel %vm2987_vm7, -1e+30, %v2978_v19 }
 0xbb8   : > { %v2989_v53 = vsel %vm1409_vm0, %v2988_v22, -inf  ;;  %v4492_v55 = vadd.f32 -16.0, %v3019_v11  ;;  %vm3021_vm10 = vcmp.ge.f32.partialorder %v3019_v11, 16.0  ;;  %vm3022_vm11 = vcmp.ge.f32.partialorder %v3020_v56, 16.0 }
 0xbb9   : > { %2990 = vmax.xlane.f32.xlu2 %v2989_v53 }
 0xbba   : > { %v3025_v53 = vsel %vm3021_vm10, %v4492_v55, %v3019_v11  ;;  %v2600_v55 = vld [vmem:[#allocation21 + $0x10] sm:$0xff] }
 0xbbb   : > { %vm3028_vm15 = vcmp.eq.f32.partialorder %v6213_v17, %v3025_v53 }
 0xbc1   : > { %2521 = vadd.xlane.f32.xlu2 %v2520_v46 }
 0xbc8   : > { %v4788_v20 = vpop.permute.xlu0 %4787 }
 0xbc9   : > { %v4789_v37 = vunpack.i.l.bf16 %v4788_v20  ;;  %v4790_v33 = vunpack.i.h.bf16 %v4788_v20 }
 0xbcb   : > { %3083 = vmatpush.msrb.mxu3 %v4789_v37 }
 0xbcd   : > { %3084 = vmatpush.msrb.mxu3 %v4790_v33  ;;  %v6994_v33 = vmov 0.0  }
 0xbce   : > { %v4494_v51 = vsel %vm3028_vm15, 1.0, %v6994_v33 }
 0xc2c   : > { %v2991_v62 = vpop.xlane.xlu2 %2990 }
 0xc2d   : > { %vm2992_vm8 = vcmp.ge.f32.partialorder %v2988_v22, %v2991_v62  ;;  %v3000_v6 = vsub.f32 %v2991_v62, %v2981_v0  ;;  %v4493_v0 = vadd.f32 -16.0, %v3020_v56 }
 0xc2e   : > { %v2993_v18 = vsel %vm2992_vm8, %v6213_v17, 16.0 }
 0xc2f   : > { %v3001_v31 = vmul.f32 1.442695, %v3000_v6  ;;  %v2994_v42 = vsel %vm1409_vm0, %v2993_v18, inf  ;;  %v3026_v15 = vsel %vm3022_vm11, %v4493_v0, %v3020_v56  ;;  %v2599_v0 = vld [vmem:[#allocation21 + $0x8] sm:$0xff] }
 0xc30   : > { %2995 = vmin.xlane.f32.xlu1 %v2994_v42  ;;  %vm3029_vm4 = vcmp.eq.f32.partialorder %v6213_v17, %v3026_v15 }
 0xc31   : > { %4826 = vpow2.f32 %v3001_v31  ;;  %v4495_v4 = vsel %vm3029_vm4, 1.0, %v6994_v33 }
 0xc34   : > { %v2522_v60 = vpop.xlane.xlu2 %2521 }
 0xc35   : > { %v2533_v1 = vmul.f32 %v6578_v13, %v2522_v60 }
 0xc37   : > { %v4827_v39 = vpop.eup %4826  ;;  %v6582_v52 = vsub.f32 %v2516_v25, %v2533_v1 }
 0xc38   : > { %v3003_v23 = vadd.f32 %v4827_v39, %v4825_v59  ;;  %2524 = vadd.xlane.f32.xlu1 %v2523_v26 }
 0xc39   : > { %v2537_v50 = vmul.f32 %v6582_v52, %v6582_v52 }
 0xc3a   : > { %4828 = vrcp.f32 %v3003_v23  ;;  %v3015_v40 = vand.u32 2147483648, %v3003_v23  ;;  %v3013_v22 = vand.u32 2147483647, %v3003_v23  ;;  %vm3009_vm13 = vweird.f32 %v3003_v23 }
 0xc3b   : > { %v2539_v28 = vsel %vm1842_vm3, %v2537_v50, 0.0 }
 0xc3c   : > { %2540 = vadd.xlane.f32.xlu2 %v2539_v28  ;;  %v3016_v46 = vor.u32 1.1754944e-38, %v3015_v40  ;;  %vm3014_vm1 = vcmp.eq.f32.partialorder %v3013_v22, 8.507059e+37  ;;  %v2598_v40 = vld [vmem:[#allocation21] sm:$0xff] }
 0xc40   : > { %v4829_v36 = vpop.eup %4828 }
 0xc41   : > { %v3005_v19 = vmul.f32 %v4829_v36, %v3003_v23  ;;  %vm3010_vm12 = vweird.f32 %v4829_v36 }
 0xc42   : > { %vm3011_vm14 = vmor %vm3009_vm13, %vm3010_vm12 }
 0xc43   : > { %v3006_v9 = vsub.f32 1.0, %v3005_v19 }
 0xc45   : > { %v3007_v47 = vmul.f32 %v4829_v36, %v3006_v9 }
 0xc47   : > { %v3008_v25 = vadd.f32 %v4829_v36, %v3007_v47 }
 0xc49   : > { %v3012_v10 = vsel %vm3011_vm14, %v4829_v36, %v3008_v25  ;;  %v2601_v36 = vld [vmem:[#allocation21 + $0x18] sm:$0xff] }
 0xc4a   : > { %v3017_v20 = vsel %vm3014_vm1, %v3016_v46, %v3012_v10  ;;  %3113 = vmatpush.msra.mxu0 %v2601_v36  ;;  %v2611_v46 = vld [vmem:[#allocation24 + $0x18] sm:$0xff]  ;;  %v2610_v10 = vld [vmem:[#allocation24 + $0x10] sm:$0xff] }
 0xc4b   : > { %v3027_v37 = vmul.f32 %v4825_v59, %v3017_v20  ;;  %v3046_v31 = vmul.f32 %v4827_v39, %v3017_v20  ;;  %3204 = vmatpush.msra.mxu3 %v2611_v46 }
 0xc4c   : > { %3114 = vmatpush.msra.mxu0 %v2600_v55 }
 0xc4d   : > { %v3034_v45 = vmul.f32 %v4494_v51, %v3027_v37  ;;  %v3035_v32 = vmul.f32 %v4495_v4, %v3027_v37  ;;  %v2609_v37 = vld [vmem:[#allocation24 + $0x8] sm:$0xff]  ;;  %3205 = vmatpush.msra.mxu3 %v2610_v10  ;;  %v2608_v4 = vld [vmem:[#allocation24] sm:$0xff] }
 0xc4e   : > { %3115 = vmatpush.msra.mxu0 %v2599_v0 }
 0xc4f   : > { %3206 = vmatpush.msra.mxu3 %v2609_v37 }
 0xc50   : > { %3116 = vmatpush.msra.mxu0 %v2598_v40 }
 0xc51   : > { %3207 = vmatpush.msra.mxu3 %v2608_v4 }
 0xca3   : > { %v2996_v44 = vpop.xlane.xlu1 %2995 }
 0xca4   : > { %v3038_v3 = vadd.f32 %v2996_v44, %v6323_v27  ;;  %v3039_v2 = vadd.f32 %v2996_v44, %v6326_v5 }
 0xca6   : > { %vm3040_vm5 = vcmp.ge.f32.partialorder %v3038_v3, 16.0  ;;  %vm3041_vm6 = vcmp.ge.f32.partialorder %v3039_v2, 16.0  ;;  %v4496_v62 = vadd.f32 -16.0, %v3038_v3  ;;  %v4497_v6 = vadd.f32 -16.0, %v3039_v2 }
 0xca8   : > { %v3044_v18 = vsel %vm3040_vm5, %v4496_v62, %v3038_v3  ;;  %v3045_v58 = vsel %vm3041_vm6, %v4497_v6, %v3039_v2 }
 0xca9   : > { %vm3047_vm7 = vcmp.eq.f32.partialorder %v6213_v17, %v3044_v18  ;;  %vm3048_vm8 = vcmp.eq.f32.partialorder %v6213_v17, %v3045_v58  ;;  %v4799_v18 = vld [vmem:[%s6995_s2] ss:$0 sm:$0xff] }
 0xcaa   : > { %v4498_v42 = vsel %vm3047_vm7, 1.0, %v6994_v33  ;;  %v4499_v29 = vsel %vm3048_vm8, 1.0, %v6994_v33 }
 0xcab   : > { %v3053_v60 = vmul.f32 %v4498_v42, %v3046_v31  ;;  %v2525_v1 = vpop.xlane.xlu1 %2524  ;;  %v3054_v59 = vmul.f32 %v4499_v29, %v3046_v31  ;;  %v5560_v31 = vmov 16.0  }
 0xcac   : > { %v2534_v26 = vmul.f32 %v6578_v13, %v2525_v1  ;;  %v4800_v1 = vld [vmem:[%s6996_s5] ss:$0 sm:$0xff] }
 0xcad   : > { %v3055_v23 = vadd.f32 %v3053_v60, %v3034_v45  ;;  %v3056_v50 = vadd.f32 %v3054_v59, %v3035_v32 }
 0xcae   : > { %v2536_v28 = vsub.f32 %v2517_v34, %v2534_v26 }
 0xcaf   : > { %4500 = vmatmul.msk.f32.vlgmr.msrb.gmra.mxu3 %vm1409_vm0, %v3055_v23  ;;  %v2541_v56 = vpop.xlane.xlu2 %2540 }
 0xcb0   : > { %v2538_v11 = vmul.f32 %v2536_v28, %v2536_v28  ;;  %v2545_v19 = vmul.f32 %v2541_v56, %v6578_v13 }
 0xcb2   : > { %v2542_v39 = vsel %vm1842_vm3, %v2538_v11, 0.0  ;;  %v2547_v9 = vadd.f32 1e-05, %v2545_v19 }
 0xcb3   : > { %2543 = vadd.xlane.f32.xlu1 %v2542_v39 }
 0xcb4   : > { %4830 = vrsqrt.f32 %v2547_v9  ;;  %vm2555_vm10 = vweird.f32 %v2547_v9 }
 0xcb7   : > { %4501 = vmatmul.msk.f32.gmra.mxu3 %vm1409_vm0, %v3056_v50 }
 0xcba   : > { %v4831_v34 = vpop.eup %4830 }
 0xcbb   : > { %v2550_v47 = vmul.f32 %v4831_v34, %v2547_v9  ;;  %vm2556_vm9 = vweird.f32 %v4831_v34 }
 0xcbc   : > { %vm2557_vm11 = vmor %vm2555_vm10, %vm2556_vm9 }
 0xcbd   : > { %v2551_v22 = vmul.f32 %v4831_v34, %v2550_v47 }
 0xcbf   : > { %v2552_v25 = vmul.f32 0.5, %v2551_v22 }
 0xcc1   : > { %v2553_v51 = vsub.f32 1.5, %v2552_v25 }
 0xcc3   : > { %v2554_v45 = vmul.f32 %v4831_v34, %v2553_v51  ;;  %v4801_v51 = vld [vmem:[%s6997_s6] ss:$0 sm:$0xff] }
 0xcc5   : > { %v2558_v2 = vsel %vm2557_vm11, %v4831_v34, %v2554_v45 }
 0xcc6   : > { %v2569_v58 = vmul.f32 %v2558_v2, %v6582_v52  ;;  %v6621_v2 = vld [vmem:[#allocation2] sm:$0xff] }
 0xcc7   : > { %7000 = vst [vmem:[#allocation82_spill] sm:$0xff] %v6621_v2 }
 0xcc8   : > { %v2574_v59 = vmul.f32 %v4799_v18, %v2569_v58 }
 0xcca   : > { %v2579_v11 = vadd.f32 %v4800_v1, %v2574_v59 }
 0xccc   : > { %v2581_v52 = vsel %vm1842_vm3, %v2579_v11, 0.0 }
 0xd26   : > { %v2544_v53 = vpop.xlane.xlu1 %2543 }
 0xd27   : > { %v2546_v15 = vmul.f32 %v2544_v53, %v6578_v13 }
 0xd29   : > { %v2548_v20 = vadd.f32 1e-05, %v2546_v15 }
 0xd2b   : > { %4832 = vrsqrt.f32 %v2548_v20  ;;  %vm2565_vm13 = vweird.f32 %v2548_v20 }
 0xd2c   : > { %4834 = vrcp.f32 %v5560_v31 }
 0xd31   : > { %v4833_v32 = vpop.eup %4832 }
 0xd32   : > { %v2560_v44 = vmul.f32 %v4833_v32, %v2548_v20  ;;  %v3086_v3 = vpop.f32.mrf.mxu3  ;;  %vm2566_vm12 = vweird.f32 %v4833_v32  ;;  %v4835_v50 = vpop.eup %4834 }
 0xd33   : > { %4502 = vmatmul.msk.f32.vlgmr.msra.gmra.mxu0 %vm1842_vm3, %v3086_v3  ;;  %vm2567_vm14 = vmor %vm2565_vm13, %vm2566_vm12  ;;  %v1452_v56 = vmul.f32 16.0, %v4835_v50  ;;  %vm1456_vm15 = vweird.f32 %v4835_v50 }
 0xd34   : > { %v2561_v62 = vmul.f32 %v4833_v32, %v2560_v44 }
 0xd35   : > { %v1453_v0 = vsub.f32 1.0, %v1452_v56 }
 0xd36   : > { %v2562_v6 = vmul.f32 0.5, %v2561_v62  ;;  %v6625_v62 = vld [vmem:[#allocation2 + $0x8] sm:$0xff] }
 0xd37   : > { %v1454_v34 = vmul.f32 %v4835_v50, %v1453_v0  ;;  %7001 = vst [vmem:[#allocation83_spill] sm:$0xff] %v6625_v62 }
 0xd38   : > { %v2563_v42 = vsub.f32 1.5, %v2562_v6  ;;  %v2606_v6 = vld [vmem:[#allocation22 + $0x18] sm:$0xff] }
 0xd39   : > { %v1455_v53 = vadd.f32 %v4835_v50, %v1454_v34  ;;  %3172 = vmatpush.msra.mxu2 %v2606_v6  ;;  %v4892_v34 = vld [vmem:[#allocation9] sm:$0xff]  ;;  %v7010_v6 = vld [vmem:[#allocation68_spill] sm:$0xff] }
 0xd3a   : > { %v2564_v29 = vmul.f32 %v4833_v32, %v2563_v42  ;;  %v3089_v60 = vpop.f32.mrf.mxu3 }
 0xd3b   : > { %4503 = vmatmul.msk.f32.gmra.mxu0 %vm1842_vm3, %v3089_v60  ;;  %v6613_v25 = vsel %vm1456_vm15, %v4835_v50, %v1455_v53  ;;  %v2604_v60 = vld [vmem:[#allocation22 + $0x8] sm:$0xff] }
 0xd3c   : > { %v2568_v26 = vsel %vm2567_vm14, %v4833_v32, %v2564_v29  ;;  %6998 = vst [vmem:[#allocation81_spill] sm:$0xff] %v6613_v25 }
 0xd3d   : > { %v2570_v23 = vmul.f32 %v2568_v26, %v2536_v28 }
 0xd3f   : > { %v2575_v39 = vmul.f32 %v4799_v18, %v2570_v23  ;;  %v2605_v18 = vld [vmem:[#allocation22 + $0x10] sm:$0xff] }
 0xd40   : > { %3173 = vmatpush.msra.mxu2 %v2605_v18 }
 0xd41   : > { %v2580_v36 = vadd.f32 %v4800_v1, %v2575_v39  ;;  %v2603_v1 = vld [vmem:[#allocation22] sm:$0xff] }
 0xd42   : > { %3174 = vmatpush.msra.mxu2 %v2604_v60 }
 0xd43   : > { %v2582_v19 = vsel %vm1842_vm3, %v2580_v36, 0.0 }
 0xd44   : > { %v2583_v55 = vadd.f32 %v2582_v19, %v2581_v52  ;;  %3175 = vmatpush.msra.mxu2 %v2603_v1 }
 0xd46   : > { %v2584_v9 = vrot.slane %v2583_v55, 4 }
 0xd48   : > { %v2585_v40 = vadd.f32 %v2584_v9, %v2583_v55  ;;  %v4890_v55 = vld [vmem:[#allocation9 + $0x20] sm:$0xff]  ;;  %v4891_v9 = vld [vmem:[#allocation9 + $0x10] sm:$0xff] }
 0xd4a   : > { %v2586_v47 = vrot.slane %v2585_v40, 2 }
 0xd4c   : > { %v2587_v22 = vadd.f32 %v2586_v47, %v2585_v40 }
 0xd4e   : > { %v2588_v28 = vrot.slane %v2587_v22, 1 }
 0xd50   : > { %v2589_v15 = vadd.f32 %v2588_v28, %v2587_v22 }
 0xd52   : > { %v2590_v46 = vmul.f32 %v2589_v15, %v6613_v25  ;;  %v7007_v15 = vld [vmem:[#allocation65_spill] sm:$0xff] }
 0xd54   : > { %v2591_v10 = vsub.f32 %v2579_v11, %v2590_v46  ;;  %v2592_v20 = vsub.f32 %v2580_v36, %v2590_v46  ;;  %v4803_v11 = vld [vmem:[%s7002_s13] ss:$0 sm:$0xff] }
 0xd56   : > { %4508 = vmatmul.msk.f32.vlgmr.msra.gmra.mxu3 %vm1842_vm3, %v2591_v10  ;;  %v7008_v10 = vld [vmem:[#allocation66_spill] sm:$0xff] }
 0xd5e   : > { %4509 = vmatmul.msk.f32.gmra.mxu3 %vm1842_vm3, %v2592_v20 }
 0xdb0   : > { %v3118_v37 = vpop.f32.mrf.mxu0 }
 0xdb1   : > { %v3119_v45 = vadd.f32 %v4801_v51, %v3118_v37  ;;  %v7009_v37 = vld [vmem:[#allocation67_spill] sm:$0xff] }
 0xdb3   : > { %v3124_v3 = vadd.f32 %v3119_v45, %v6356_v43 }
 0xdb8   : > { %v3121_v4 = vpop.f32.mrf.mxu0 }
 0xdb9   : > { %v3122_v32 = vadd.f32 %v4801_v51, %v3121_v4 }
 0xdbb   : > { %v3125_v44 = vadd.f32 %v3122_v32, %v6362_v57  ;;  %v4802_v57 = vld [vmem:[%s6999_s26] ss:$0 sm:$0xff] }
 0xdbd   : > { %3140 = vmatpush.msrb.mxu1 %v3125_v44 }
 0xdbf   : > { %3141 = vmatpush.msrb.mxu1 %v3124_v3 }
 0xdc0   : > { %4504 = vmatmul.msk.f32.vlgmr.msrb.gmra.mxu1 %vm1409_vm0, %v6621_v2 }
 0xdc8   : > { %4505 = vmatmul.msk.f32.gmra.mxu1 %vm1409_vm0, %v6625_v62 }
 0xdd9   : > { %v3209_v58 = vpop.f32.mrf.mxu3 }
 0xdda   : > { %v6630_v43 = vadd.f32 %v4802_v57, %v3209_v58  ;;  %v7011_v58 = vld [vmem:[#allocation69_spill] sm:$0xff] }
 0xde1   : > { %v3212_v31 = vpop.f32.mrf.mxu3 }
 0xde2   : > { %v6632_v42 = vadd.f32 %v4802_v57, %v3212_v31 }
 0xde4   : > { %4510 = vmatpush.xpose.msk.msrb.mxu0 %vm1842_vm3, %v6632_v42 }
 0xde8   : > { %4511 = vmatpush.xpose.msk.msrb.mxu0 %vm1842_vm3, %v6630_v43 }
 0xe3d   : > { %v6640_v59 = vpop.f32.mrf.mxu1 }
 0xe3e   : > { %7003 = vst [vmem:[#allocation84_spill] sm:$0xff] %v6640_v59  ;;  %v6643_v26 = vsub.f32 %v3124_v3, %v6640_v59 }
 0xe40   : > { %7004 = vst [vmem:[#allocation85_spill] sm:$0xff] %v6643_v26  ;;  %4506 = vmatmul.msk.f32.vlgmr.msra.gmra.mxu2 %vm1842_vm3, %v6643_v26 }
 0xe45   : > { %v6647_v23 = vpop.f32.mrf.mxu1 }
 0xe46   : > { %7005 = vst [vmem:[#allocation86_spill] sm:$0xff] %v6647_v23  ;;  %v6650_v50 = vsub.f32 %v3125_v44, %v6647_v23  ;;  %v4893_v44 = vld [vmem:[#allocation9 + $0x40] sm:$0xff] }
 0xe48   : > { %7006 = vst [vmem:[#allocation87_spill] sm:$0xff] %v6650_v50  ;;  %4507 = vmatmul.msk.f32.gmra.mxu2 %vm1842_vm3, %v6650_v50 }
 0xec3   : > { %v3177_v39 = vpop.f32.mrf.mxu2 }
 0xec4   : > { %v3178_v56 = vadd.f32 %v4803_v11, %v3177_v39 }
 0xec6   : > { %4512 = vmatmul.msk.f32.vlgmr.msrb.gmra.mxu0 %vm1842_vm3, %v3178_v56  ;;  %v7012_v56 = vld [vmem:[#allocation70_spill] sm:$0xff] }
 0xecb   : > { %v3180_v36 = vpop.f32.mrf.mxu2 }
 0xecc   : > { %v3181_v52 = vadd.f32 %v4803_v11, %v3180_v36  ;;  %v4894_v11 = vld [vmem:[#allocation9 + $0x50] sm:$0xff] }
 0xece   : > { %4513 = vmatmul.msk.f32.gmra.mxu0 %vm1842_vm3, %v3181_v52  ;;  %v7013_v52 = vld [vmem:[#allocation71_spill] sm:$0xff] }
 0xf43   : > { %v6657_v19 = vpop.f32.mrf.mxu0 }
 0xf44   : > { %v3284_v0 = vmul.f32 %v4890_v55, %v6657_v19  ;;  %v3267_v40 = vmul.f32 %v4891_v9, %v6657_v19  ;;  %v3250_v47 = vmul.f32 %v4892_v34, %v6657_v19  ;;  %v3301_v46 = vmul.f32 %v7007_v15, %v6657_v19  ;;  %v7015_v15 = vld [vmem:[#allocation72_spill] sm:$0xff] }
 0xf45   : > { %v3386_v20 = vmul.f32 %v7008_v10, %v6657_v19  ;;  %v3369_v51 = vmul.f32 %v7009_v37, %v6657_v19  ;;  %v3318_v3 = vmul.f32 %v4893_v44, %v6657_v19  ;;  %v3437_v18 = vmul.f32 %v7010_v6, %v6657_v19  ;;  %v4897_v44 = vld [vmem:[#allocation9 + $0x28] sm:$0xff] }
 0xf46   : > { %v3286_v22 = vsel %vm1409_vm0, %v3284_v0, 0.0  ;;  %v3269_v53 = vsel %vm1409_vm0, %v3267_v40, 0.0  ;;  %v3252_v28 = vsel %vm1409_vm0, %v3250_v47, 0.0  ;;  %v3303_v4 = vsel %vm1409_vm0, %v3301_v46, 0.0  ;;  %v4895_v47 = vld [vmem:[#allocation9 + $0x60] sm:$0xff] }
 0xf47   : > { %3287 = vadd.xlane.f32.xlu1 %v3286_v22  ;;  %3270 = vadd.xlane.f32.xlu0 %v3269_v53  ;;  %v3388_v45 = vsel %vm1409_vm0, %v3386_v20, 0.0  ;;  %v3371_v32 = vsel %vm1409_vm0, %v3369_v51, 0.0  ;;  %v3420_v57 = vmul.f32 %v7011_v58, %v6657_v19  ;;  %v3320_v31 = vsel %vm1409_vm0, %v3318_v3, 0.0  ;;  %v7014_v53 = vld [vmem:[#allocation73_spill] sm:$0xff]  ;;  %v4896_v51 = vld [vmem:[#allocation9 + $0x90] sm:$0xff] }
 0xf48   : > { %3253 = vadd.xlane.f32.xlu2 %v3252_v28  ;;  %v3439_v60 = vsel %vm1409_vm0, %v3437_v18, 0.0  ;;  %v3335_v39 = vmul.f32 %v4894_v11, %v6657_v19  ;;  %v3488_v36 = vmul.f32 %v7012_v56, %v6657_v19  ;;  %v3471_v55 = vmul.f32 %v7013_v52, %v6657_v19  ;;  %v4899_v11 = vld [vmem:[#allocation9 + $0x38] sm:$0xff] }
 0xf49   : > { %v3422_v1 = vsel %vm1409_vm0, %v3420_v57, 0.0  ;;  %v3352_v22 = vmul.f32 %v4895_v47, %v6657_v19  ;;  %v4898_v57 = vld [vmem:[#allocation9 + $0xc0] sm:$0xff]  ;;  %v4901_v47 = vld [vmem:[#allocation9 + $0x48] sm:$0xff] }
 0xf4a   : > { %v3337_v0 = vsel %vm1409_vm0, %v3335_v39, 0.0  ;;  %v3490_v9 = vsel %vm1409_vm0, %v3488_v36, 0.0  ;;  %v3473_v34 = vsel %vm1409_vm0, %v3471_v55, 0.0  ;;  %v7018_v55 = vld [vmem:[#allocation78_spill] sm:$0xff] }
 0xf4b   : > { %v6689_v40 = vpop.f32.mrf.mxu0  ;;  %v3354_v10 = vsel %vm1409_vm0, %v3352_v22, 0.0 }
 0xf4c   : > { %v3353_v28 = vmul.f32 %v7014_v53, %v6689_v40  ;;  %v3268_v46 = vmul.f32 %v7015_v15, %v6689_v40  ;;  %v3285_v3 = vmul.f32 %v4897_v44, %v6689_v40  ;;  %v3302_v39 = vmul.f32 %v4899_v11, %v6689_v40  ;;  %v4904_v44 = vld [vmem:[#allocation9 + $0x88] sm:$0xff] }
 0xf4d   : > { %v3319_v22 = vmul.f32 %v4901_v47, %v6689_v40 }
 0xf4e   : > { %v3357_v20 = vsel %vm1409_vm0, %v3353_v28, 0.0  ;;  %v3272_v37 = vsel %vm1409_vm0, %v3268_v46, 0.0  ;;  %v3289_v58 = vsel %vm1409_vm0, %v3285_v3, 0.0  ;;  %v3306_v52 = vsel %vm1409_vm0, %v3302_v39, 0.0  ;;  %v4902_v46 = vld [vmem:[#allocation9 + $0x78] sm:$0xff]  ;;  %v7021_v39 = vld [vmem:[#allocation79_spill] sm:$0xff] }
 0xf4f   : > { %3304 = vadd.xlane.f32.xlu1 %v3303_v4  ;;  %3389 = vadd.xlane.f32.xlu0 %v3388_v45  ;;  %v3403_v4 = vmul.f32 %v4896_v51, %v6657_v19  ;;  %v7016_v45 = vld [vmem:[#allocation74_spill] sm:$0xff]  ;;  %v3323_v15 = vsel %vm1409_vm0, %v3319_v22, 0.0  ;;  %v3387_v3 = vmul.f32 %v4904_v44, %v6689_v40 }
 0xf50   : > { %3372 = vadd.xlane.f32.xlu2 %v3371_v32  ;;  %v3404_v32 = vmul.f32 %v7016_v45, %v6689_v40  ;;  %v7019_v45 = vld [vmem:[#allocation75_spill] sm:$0xff] }
 0xf51   : > { %v3405_v6 = vsel %vm1409_vm0, %v3403_v4, 0.0 }
 0xf52   : > { %v3408_v18 = vsel %vm1409_vm0, %v3404_v32, 0.0  ;;  %v3421_v32 = vmul.f32 %v7019_v45, %v6689_v40 }
 0xf57   : > { %3321 = vadd.xlane.f32.xlu1 %v3320_v31  ;;  %3440 = vadd.xlane.f32.xlu0 %v3439_v60  ;;  %v3454_v31 = vmul.f32 %v4898_v57, %v6657_v19  ;;  %v7017_v60 = vld [vmem:[#allocation76_spill] sm:$0xff] }
 0xf58   : > { %3423 = vadd.xlane.f32.xlu2 %v3422_v1  ;;  %v3455_v1 = vmul.f32 %v7017_v60, %v6689_v40 }
 0xf59   : > { %v3456_v56 = vsel %vm1409_vm0, %v3454_v31, 0.0  ;;  %v4905_v31 = vld [vmem:[#allocation9 + $0xb8] sm:$0xff] }
 0xf5a   : > { %v3459_v36 = vsel %vm1409_vm0, %v3455_v1, 0.0  ;;  %v3438_v60 = vmul.f32 %v4905_v31, %v6689_v40 }
 0xf5c   : > { %v3442_v11 = vsel %vm1409_vm0, %v3438_v60, 0.0 }
 0xf5f   : > { %3338 = vadd.xlane.f32.xlu1 %v3337_v0  ;;  %3491 = vadd.xlane.f32.xlu0 %v3490_v9  ;;  %v3506_v0 = vmul.f32 %v7018_v55, %v6689_v40  ;;  %v4900_v9 = vld [vmem:[#allocation9 + $0x8] sm:$0xff] }
 0xf60   : > { %3474 = vadd.xlane.f32.xlu2 %v3473_v34  ;;  %v3251_v34 = vmul.f32 %v4900_v9, %v6689_v40 }
 0xf61   : > { %v3510_v53 = vsel %vm1409_vm0, %v3506_v0, 0.0 }
 0xf62   : > { %v3255_v28 = vsel %vm1409_vm0, %v3251_v34, 0.0 }
 0xf67   : > { %3355 = vadd.xlane.f32.xlu1 %v3354_v10  ;;  %3358 = vadd.xlane.f32.xlu0 %v3357_v20  ;;  %v3370_v10 = vmul.f32 %v4902_v46, %v6689_v40  ;;  %v4903_v20 = vld [vmem:[#allocation9 + $0x58] sm:$0xff] }
 0xf68   : > { %3273 = vadd.xlane.f32.xlu2 %v3272_v37  ;;  %v3336_v37 = vmul.f32 %v4903_v20, %v6689_v40 }
 0xf69   : > { %v3374_v51 = vsel %vm1409_vm0, %v3370_v10, 0.0 }
 0xf6a   : > { %v3340_v4 = vsel %vm1409_vm0, %v3336_v37, 0.0 }
 0xf6f   : > { %3406 = vadd.xlane.f32.xlu1 %v3405_v6  ;;  %3409 = vadd.xlane.f32.xlu0 %v3408_v18  ;;  %v3425_v6 = vsel %vm1409_vm0, %v3421_v32, 0.0  ;;  %v3391_v18 = vsel %vm1409_vm0, %v3387_v3, 0.0 }
 0xf70   : > { %3290 = vadd.xlane.f32.xlu2 %v3289_v58  ;;  %v7020_v58 = vld [vmem:[#allocation77_spill] sm:$0xff] }
 0xf71   : > { %v3472_v57 = vmul.f32 %v7020_v58, %v6689_v40 }
 0xf73   : > { %v3476_v1 = vsel %vm1409_vm0, %v3472_v57, 0.0 }
 0xf77   : > { %3457 = vadd.xlane.f32.xlu1 %v3456_v56  ;;  %3460 = vadd.xlane.f32.xlu0 %v3459_v36  ;;  %v3505_v56 = vmul.f32 %v7021_v39, %v6657_v19  ;;  %v4906_v36 = vld [vmem:[#allocation9 + $0xe8] sm:$0xff] }
 0xf78   : > { %3307 = vadd.xlane.f32.xlu2 %v3306_v52  ;;  %v3489_v52 = vmul.f32 %v4906_v36, %v6689_v40 }
 0xf79   : > { %v3507_v55 = vsel %vm1409_vm0, %v3505_v56, 0.0 }
 0xf7a   : > { %v3493_v0 = vsel %vm1409_vm0, %v3489_v52, 0.0 }
 0xf7f   : > { %3511 = vadd.xlane.f32.xlu0 %v3510_v53  ;;  %3256 = vadd.xlane.f32.xlu1 %v3255_v28 }
 0xf80   : > { %3324 = vadd.xlane.f32.xlu2 %v3323_v15 }
 0xf87   : > { %3375 = vadd.xlane.f32.xlu1 %v3374_v51 }
 0xf88   : > { %3341 = vadd.xlane.f32.xlu2 %v3340_v4 }
 0xf8f   : > { %3426 = vadd.xlane.f32.xlu1 %v3425_v6 }
 0xf90   : > { %3392 = vadd.xlane.f32.xlu2 %v3391_v18 }
 0xf97   : > { %3477 = vadd.xlane.f32.xlu1 %v3476_v1 }
 0xf98   : > { %3443 = vadd.xlane.f32.xlu2 %v3442_v11 }
 0xf9f   : > { %3508 = vadd.xlane.f32.xlu1 %v3507_v55 }
 0xfa0   : > { %3494 = vadd.xlane.f32.xlu2 %v3493_v0 }
 0xfba   : > { %v3288_v9 = vpop.xlane.xlu1 %3287  ;;  %v3271_v47 = vpop.xlane.xlu0 %3270 }
 0xfbb   : > { %v3254_v34 = vpop.xlane.xlu2 %3253 }
 0xfc2   : > { %v3305_v22 = vpop.xlane.xlu1 %3304  ;;  %v6740_v28 = vpop.xlane.xlu0 %3389 }
 0xfc3   : > { %v3373_v53 = vpop.xlane.xlu2 %3372 }
 0xfca   : > { %v3322_v15 = vpop.xlane.xlu1 %3321  ;;  %v6744_v10 = vpop.xlane.xlu0 %3440 }
 0xfcb   : > { %v6742_v46 = vpop.xlane.xlu2 %3423 }
 0xfd2   : > { %v3339_v19 = vpop.xlane.xlu1 %3338  ;;  %v6748_v51 = vpop.xlane.xlu0 %3491 }
 0xfd3   : > { %v6746_v40 = vpop.xlane.xlu2 %3474 }
 0xfda   : > { %v3356_v20 = vpop.xlane.xlu1 %3355  ;;  %v3359_v44 = vpop.xlane.xlu0 %3358 }
 0xfdb   : > { %v3274_v37 = vpop.xlane.xlu2 %3273  ;;  %v3360_v1 = vadd.f32 %v3359_v44, %v3356_v20 }
 0xfdc   : > { %v3275_v32 = vadd.f32 %v3274_v37, %v3271_v47 }
 0xfdd   : > { %v3361_v55 = vrot.slane %v3360_v1, 4 }
 0xfde   : > { %v3276_v6 = vrot.slane %v3275_v32, 4 }
 0xfdf   : > { %v3362_v23 = vadd.f32 %v3361_v55, %v3360_v1 }
 0xfe0   : > { %v3277_v60 = vadd.f32 %v3276_v6, %v3275_v32 }
 0xfe2   : > { %v3407_v4 = vpop.xlane.xlu1 %3406  ;;  %v3278_v56 = vrot.slane %v3277_v60, 2  ;;  %v3410_v36 = vpop.xlane.xlu0 %3409 }
 0xfe3   : > { %v3291_v45 = vpop.xlane.xlu2 %3290  ;;  %v3411_v59 = vadd.f32 %v3410_v36, %v3407_v4 }
 0xfe4   : > { %v3292_v3 = vadd.f32 %v3291_v45, %v3288_v9  ;;  %v3279_v37 = vadd.f32 %v3278_v56, %v3277_v60 }
 0xfe6   : > { %v3293_v58 = vrot.slane %v3292_v3, 4  ;;  %v3280_v44 = vrot.slane %v3279_v37, 1 }
 0xfe8   : > { %v3294_v39 = vadd.f32 %v3293_v58, %v3292_v3  ;;  %v3363_v58 = vrot.slane %v3362_v23, 2  ;;  %v3281_v1 = vadd.f32 %v3280_v44, %v3279_v37 }
 0xfea   : > { %v3458_v18 = vpop.xlane.xlu1 %3457  ;;  %v3295_v29 = vrot.slane %v3294_v39, 2  ;;  %v3461_v26 = vpop.xlane.xlu0 %3460  ;;  %v3282_v50 = vmul.f32 %v6233_v12, %v3281_v1 }
 0xfeb   : > { %v3308_v57 = vpop.xlane.xlu2 %3307 }
 0xfec   : > { %v3309_v31 = vadd.f32 %v3308_v57, %v3305_v22  ;;  %v3296_v22 = vadd.f32 %v3295_v29, %v3294_v39  ;;  %v3412_v57 = vrot.slane %v3411_v59, 4  ;;  %v3462_v39 = vadd.f32 %v3461_v26, %v3458_v18 }
 0xfee   : > { %v3310_v11 = vrot.slane %v3309_v31, 4  ;;  %v3297_v2 = vrot.slane %v3296_v22, 1  ;;  %v3463_v44 = vrot.slane %v3462_v39, 4 }
 0xff0   : > { %v3311_v52 = vadd.f32 %v3310_v11, %v3309_v31  ;;  %v3298_v55 = vadd.f32 %v3297_v2, %v3296_v22 }
 0xff2   : > { %v3257_v0 = vpop.xlane.xlu1 %3256  ;;  %v3312_v9 = vrot.slane %v3311_v52, 2 }
 0xff3   : > { %v3325_v25 = vpop.xlane.xlu2 %3324  ;;  %v3258_v13 = vadd.f32 %v3257_v0, %v3254_v34 }
 0xff4   : > { %v3326_v47 = vadd.f32 %v3325_v25, %v3322_v15  ;;  %v3313_v3 = vadd.f32 %v3312_v9, %v3311_v52 }
 0xff5   : > { %v3259_v45 = vrot.slane %v3258_v13, 4 }
 0xff6   : > { %v3327_v62 = vrot.slane %v3326_v47, 4  ;;  %v3314_v4 = vrot.slane %v3313_v3, 1 }
 0xff7   : > { %v3260_v32 = vadd.f32 %v3259_v45, %v3258_v13  ;;  %v3364_v13 = vadd.f32 %v3363_v58, %v3362_v23 }
 0xff8   : > { %v3328_v20 = vadd.f32 %v3327_v62, %v3326_v47  ;;  %v3413_v62 = vadd.f32 %v3412_v57, %v3411_v59  ;;  %v3299_v59 = vmul.f32 %v6222_v49, %v3298_v55 }
 0xff9   : > { %v3261_v6 = vrot.slane %v3260_v32, 2 }
 0xffa   : > { %v3329_v31 = vrot.slane %v3328_v20, 2  ;;  %v3376_v11 = vpop.xlane.xlu1 %3375  ;;  %v3414_v37 = vrot.slane %v3413_v62, 2 }
 0xffb   : > { %v3262_v34 = vadd.f32 %v3261_v6, %v3260_v32  ;;  %v3342_v25 = vpop.xlane.xlu2 %3341  ;;  %v3377_v15 = vadd.f32 %v3376_v11, %v3373_v53  ;;  %v3315_v32 = vadd.f32 %v3314_v4, %v3313_v3 }
 0xffc   : > { %v3330_v60 = vadd.f32 %v3329_v31, %v3328_v20  ;;  %v3343_v56 = vadd.f32 %v3342_v25, %v3339_v19  ;;  %v3365_v19 = vrot.slane %v3364_v13, 1 }
 0xffd   : > { %v3263_v36 = vrot.slane %v3262_v34, 1  ;;  %v3378_v29 = vrot.slane %v3377_v15, 4  ;;  %v3316_v3 = vmul.f32 %v6225_v54, %v3315_v32 }
 0xffe   : > { %v3344_v52 = vrot.slane %v3343_v56, 4  ;;  %v3331_v0 = vrot.slane %v3330_v60, 1  ;;  %v3366_v11 = vadd.f32 %v3365_v19, %v3364_v13 }
 0xfff   : > { %v3264_v47 = vadd.f32 %v3263_v36, %v3262_v34  ;;  %v3379_v9 = vadd.f32 %v3378_v29, %v3377_v15  ;;  %v3415_v34 = vadd.f32 %v3414_v37, %v3413_v62 }
0x1000   : > { %v3345_v45 = vadd.f32 %v3344_v52, %v3343_v56  ;;  %v3332_v26 = vadd.f32 %v3331_v0, %v3330_v60  ;;  %v3464_v56 = vadd.f32 %v3463_v44, %v3462_v39 }
0x1001   : > { %v3265_v53 = vmul.f32 %v6219_v38, %v3264_v47  ;;  %v3380_v20 = vrot.slane %v3379_v9, 2  ;;  %v3416_v13 = vrot.slane %v3415_v34, 1 }
0x1002   : > { %v3346_v6 = vrot.slane %v3345_v45, 2  ;;  %v3427_v31 = vpop.xlane.xlu1 %3426  ;;  %v3333_v49 = vmul.f32 %v6244_v21, %v3332_v26  ;;  %v3465_v62 = vrot.slane %v3464_v56, 2 }
0x1003   : > { %v3283_v23 = vadd.f32 %v3282_v50, %v3265_v53  ;;  %v3393_v2 = vpop.xlane.xlu2 %3392  ;;  %v3428_v18 = vadd.f32 %v3427_v31, %v6742_v46  ;;  %v3381_v58 = vadd.f32 %v3380_v20, %v3379_v9  ;;  %v3417_v44 = vadd.f32 %v3416_v13, %v3415_v34 }
0x1004   : > { %v3347_v22 = vadd.f32 %v3346_v6, %v3345_v45  ;;  %v3394_v12 = vadd.f32 %v3393_v2, %v6740_v28  ;;  %v3367_v28 = vmul.f32 %v6262_v61, %v3366_v11  ;;  %v3512_v2 = vpop.xlane.xlu0 %3511 }
0x1005   : > { %v3300_v38 = vadd.f32 %v3299_v59, %v3283_v23  ;;  %v3429_v57 = vrot.slane %v3428_v18, 4  ;;  %v3382_v4 = vrot.slane %v3381_v58, 1 }
0x1006   : > { %v3348_v25 = vrot.slane %v3347_v22, 1  ;;  %v3395_v15 = vrot.slane %v3394_v12, 4 }
0x1007   : > { %v3317_v60 = vadd.f32 %v3316_v3, %v3300_v38  ;;  %v3430_v50 = vadd.f32 %v3429_v57, %v3428_v18  ;;  %v3383_v9 = vadd.f32 %v3382_v4, %v3381_v58 }
0x1008   : > { %v3349_v1 = vadd.f32 %v3348_v25, %v3347_v22  ;;  %v3396_v46 = vadd.f32 %v3395_v15, %v3394_v12  ;;  %v3418_v12 = vmul.f32 %v6278_v35, %v3417_v44 }
0x1009   : > { %v3334_v36 = vadd.f32 %v3333_v49, %v3317_v60  ;;  %v3431_v29 = vrot.slane %v3430_v50, 2  ;;  %v3384_v31 = vmul.f32 %v6265_v7, %v3383_v9 }
0x100a   : > { %v3350_v54 = vmul.f32 %v6250_v24, %v3349_v1  ;;  %v3397_v52 = vrot.slane %v3396_v46, 2  ;;  %v3478_v55 = vpop.xlane.xlu1 %3477  ;;  %v3466_v24 = vadd.f32 %v3465_v62, %v3464_v56 }
0x100b   : > { %v3432_v0 = vadd.f32 %v3431_v29, %v3430_v50  ;;  %v3444_v47 = vpop.xlane.xlu2 %3443  ;;  %v3479_v39 = vadd.f32 %v3478_v55, %v6746_v40 }
0x100c   : > { %v3351_v21 = vadd.f32 %v3350_v54, %v3334_v36  ;;  %v3398_v45 = vadd.f32 %v3397_v52, %v3396_v46  ;;  %v3445_v32 = vadd.f32 %v3444_v47, %v6744_v10  ;;  %v3467_v3 = vrot.slane %v3466_v24, 1 }
0x100d   : > { %v3480_v53 = vrot.slane %v3479_v39, 4  ;;  %v3433_v37 = vrot.slane %v3432_v0, 1 }
0x100e   : > { %v3368_v20 = vadd.f32 %v3367_v28, %v3351_v21  ;;  %v3399_v19 = vrot.slane %v3398_v45, 1  ;;  %v3446_v61 = vrot.slane %v3445_v32, 4 }
0x100f   : > { %v3481_v6 = vadd.f32 %v3480_v53, %v3479_v39  ;;  %v3434_v22 = vadd.f32 %v3433_v37, %v3432_v0 }
0x1010   : > { %v3400_v59 = vadd.f32 %v3399_v19, %v3398_v45  ;;  %v3447_v26 = vadd.f32 %v3446_v61, %v3445_v32  ;;  %v3385_v40 = vadd.f32 %v3384_v31, %v3368_v20 }
0x1011   : > { %v3482_v23 = vrot.slane %v3481_v6, 2  ;;  %v3435_v49 = vmul.f32 %v6283_v63, %v3434_v22 }
0x1012   : > { %v3401_v18 = vmul.f32 %v6238_v14, %v3400_v59  ;;  %v3448_v58 = vrot.slane %v3447_v26, 2  ;;  %v3509_v10 = vpop.xlane.xlu1 %3508  ;;  %v3468_v14 = vadd.f32 %v3467_v3, %v3466_v24 }
0x1013   : > { %v3495_v38 = vpop.xlane.xlu2 %3494  ;;  %v3513_v57 = vadd.f32 %v3512_v2, %v3509_v10  ;;  %v3483_v25 = vadd.f32 %v3482_v23, %v3481_v6 }
0x1014   : > { %v3402_v11 = vadd.f32 %v3401_v18, %v3385_v40  ;;  %v3449_v34 = vadd.f32 %v3448_v58, %v3447_v26  ;;  %v3496_v7 = vadd.f32 %v3495_v38, %v6748_v51  ;;  %v3469_v55 = vmul.f32 %v6293_v16, %v3468_v14  ;;  %v2616_v38 = vld [vmem:[#allocation25 + $0x18] sm:$0xff] }
0x1015   : > { %v3514_v15 = vrot.slane %v3513_v57, 4  ;;  %v3484_v36 = vrot.slane %v3483_v25, 1  ;;  %3656 = vmatpush.msrb.mxu2 %v2616_v38 }
0x1016   : > { %v3419_v56 = vadd.f32 %v3418_v12, %v3402_v11  ;;  %v3450_v60 = vrot.slane %v3449_v34, 1  ;;  %v3497_v50 = vrot.slane %v3496_v7, 4 }
0x1017   : > { %v3515_v1 = vadd.f32 %v3514_v15, %v3513_v57  ;;  %v3485_v13 = vadd.f32 %v3484_v36, %v3483_v25  ;;  %v2615_v57 = vld [vmem:[#allocation25 + $0x10] sm:$0xff] }
0x1018   : > { %v3436_v4 = vadd.f32 %v3435_v49, %v3419_v56  ;;  %v3451_v46 = vadd.f32 %v3450_v60, %v3449_v34  ;;  %v3498_v35 = vadd.f32 %v3497_v50, %v3496_v7  ;;  %v2614_v34 = vld [vmem:[#allocation25 + $0x8] sm:$0xff]  ;;  %3657 = vmatpush.msrb.mxu2 %v2615_v57 }
0x1019   : > { %v3516_v29 = vrot.slane %v3515_v1, 2  ;;  %v3486_v39 = vmul.f32 %v6299_v30, %v3485_v13  ;;  %v7022_v30 = vpack.i.bf16 %v6630_v43, %v6632_v42 }
0x101a   : > { %v3452_v28 = vmul.f32 %v6290_v8, %v3451_v46  ;;  %v3499_v54 = vrot.slane %v3498_v35, 2  ;;  %3658 = vmatpush.msrb.mxu2 %v2614_v34 }
0x101b   : > { %v3517_v52 = vadd.f32 %v3516_v29, %v3515_v1 }
0x101c   : > { %v3453_v51 = vadd.f32 %v3452_v28, %v3436_v4  ;;  %v3500_v62 = vadd.f32 %v3499_v54, %v3498_v35 }
0x101d   : > { %v3518_v0 = vrot.slane %v3517_v52, 1 }
0x101e   : > { %v3501_v63 = vrot.slane %v3500_v62, 1  ;;  %v3470_v47 = vadd.f32 %v3469_v55, %v3453_v51 }
0x101f   : > { %v3519_v9 = vadd.f32 %v3518_v0, %v3517_v52 }
0x1020   : > { %v3502_v21 = vadd.f32 %v3501_v63, %v3500_v62  ;;  %v3487_v32 = vadd.f32 %v3486_v39, %v3470_v47 }
0x1021   : > { %v3520_v8 = vmul.f32 %v6308_v41, %v3519_v9 }
0x1022   : > { %v3503_v45 = vmul.f32 %v6305_v48, %v3502_v21 }
0x1024   : > { %v3504_v53 = vadd.f32 %v3503_v45, %v3487_v32 }
0x1026   : > { %v3521_v20 = vadd.f32 %v3520_v8, %v3504_v53  ;;  %v2613_v8 = vld [vmem:[#allocation25] sm:$0xff] }
0x1027   : > { %3659 = vmatpush.msrb.mxu2 %v2613_v8 }
0x1028   : > { %v3522_v19 = vsel %vm1409_vm0, %v3521_v20, -inf }
0x1029   : > { %3523 = vmax.xlane.f32.xlu2 %v3522_v19 }
0x109c   : > { %v3524_v16 = vpop.xlane.xlu2 %3523 }
0x109d   : > { %vm3525_vm1 = vcmp.ge.f32.partialorder %v3521_v20, %v3524_v16  ;;  %v3540_v42 = vsub.f32 %v3524_v16, %v3524_v16 }
0x109e   : > { %v3526_v37 = vsel %vm3525_vm1, %v6213_v17, 16.0 }
0x109f   : > { %v3527_v61 = vsel %vm1409_vm0, %v3526_v37, inf  ;;  %v3541_v40 = vmul.f32 1.442695, %v3540_v42  ;;  %v2620_v37 = vld [vmem:[#allocation27 + $0x10] sm:$0xff] }
0x10a0   : > { %3528 = vmin.xlane.f32.xlu1 %v3527_v61  ;;  %v4804_v61 = vld [vmem:[%s7023_s21] ss:$0 sm:$0xff] }
0x10b9   : > { %4792 = vrot.lane.b32.xlu1 %v7022_v30, %s5556_s16  ;;  %s1310_s16 = scalar_lea.vmem %s5735_s4, %s4410_s28 }
0x1113   : > { %v3529_v48 = vpop.xlane.xlu1 %3528 }
0x1114   : > { %vm3530_vm4 = vcmp.eq.f32.partialorder %v6213_v17, %v3529_v48  ;;  %v3562_v25 = vadd.f32 %v3529_v48, %v6323_v27  ;;  %v3563_v14 = vadd.f32 %v3529_v48, %v6326_v5 }
0x1115   : > { %v3531_v41 = vsel %vm3530_vm4, -1e+30, %v3521_v20 }
0x1116   : > { %v3532_v44 = vsel %vm1409_vm0, %v3531_v41, -inf  ;;  %v4514_v49 = vadd.f32 -16.0, %v3562_v25  ;;  %vm3564_vm9 = vcmp.ge.f32.partialorder %v3562_v25, 16.0  ;;  %v4515_v52 = vadd.f32 -16.0, %v3563_v14 }
0x1117   : > { %3533 = vmax.xlane.f32.xlu0 %v3532_v44  ;;  %vm3565_vm14 = vcmp.ge.f32.partialorder %v3563_v14, 16.0  ;;  %v7024_v44 = vld [vmem:[#allocation87_spill] sm:$0xff] }
0x1118   : > { %v3568_v4 = vsel %vm3564_vm9, %v4514_v49, %v3562_v25  ;;  %v3569_v47 = vsel %vm3565_vm14, %v4515_v52, %v3563_v14  ;;  %v2625_v49 = vld [vmem:[%s7028_s8 + $0x18] sm:$0xff] }
0x1119   : > { %vm3571_vm13 = vcmp.eq.f32.partialorder %v6213_v17, %v3568_v4  ;;  %vm3572_vm4 = vcmp.eq.f32.partialorder %v6213_v17, %v3569_v47 }
0x111a   : > { %v4516_v62 = vsel %vm3571_vm13, 1.0, %v6994_v33  ;;  %v4517_v45 = vsel %vm3572_vm4, 1.0, %v6994_v33 }
0x112b   : > { %v4793_v24 = vpop.permute.xlu1 %4792 }
0x112c   : > { %v4794_v6 = vunpack.i.l.bf16 %v4793_v24  ;;  %v4795_v31 = vunpack.i.h.bf16 %v4793_v24 }
0x112e   : > { %3626 = vmatpush.msra.mxu1 %v4794_v6  ;;  %v7025_v6 = vld [vmem:[#allocation85_spill] sm:$0xff] }
0x1130   : > { %3627 = vmatpush.msra.mxu1 %v4795_v31 }
0x1132   : > { %3821 = vmatpush.msrb.mxu1 %v2625_v49 }
0x118a   : > { %v3534_v59 = vpop.xlane.xlu0 %3533 }
0x118b   : > { %vm3535_vm5 = vcmp.ge.f32.partialorder %v3531_v41, %v3534_v59  ;;  %v3543_v43 = vsub.f32 %v3534_v59, %v3524_v16  ;;  %v2621_v16 = vld [vmem:[#allocation27 + $0x18] sm:$0xff]  ;;  %v7026_v59 = vld [vmem:[#allocation82_spill] sm:$0xff] }
0x118c   : > { %v3536_v26 = vsel %vm3535_vm5, %v6213_v17, 16.0  ;;  %3712 = vmatpush.msra.mxu0 %v2621_v16 }
0x118d   : > { %v3537_v23 = vsel %vm1409_vm0, %v3536_v26, inf  ;;  %v3544_v2 = vmul.f32 1.442695, %v3543_v43  ;;  %v7027_v26 = vld [vmem:[#allocation83_spill] sm:$0xff]  ;;  %v2618_v43 = vld [vmem:[#allocation27] sm:$0xff] }
0x118e   : > { %3538 = vmin.xlane.f32.xlu2 %v3537_v23  ;;  %3713 = vmatpush.msra.mxu0 %v2620_v37  ;;  %v2619_v23 = vld [vmem:[#allocation27 + $0x8] sm:$0xff] }
0x118f   : > { %4836 = vpow2.f32 %v3544_v2 }
0x1190   : > { %4838 = vpow2.f32 %v3541_v40  ;;  %3714 = vmatpush.msra.mxu0 %v2619_v23 }
0x1192   : > { %3715 = vmatpush.msra.mxu0 %v2618_v43 }
0x1195   : > { %v4837_v18 = vpop.eup %4836 }
0x1196   : > { %v4839_v22 = vpop.eup %4838 }
0x1197   : > { %v3546_v58 = vadd.f32 %v4839_v22, %v4837_v18 }
0x1199   : > { %4840 = vrcp.f32 %v3546_v58  ;;  %v3558_v15 = vand.u32 2147483648, %v3546_v58  ;;  %vm3552_vm7 = vweird.f32 %v3546_v58  ;;  %v3556_v56 = vand.u32 2147483647, %v3546_v58 }
0x119b   : > { %v3559_v50 = vor.u32 1.1754944e-38, %v3558_v15  ;;  %vm3557_vm10 = vcmp.eq.f32.partialorder %v3556_v56, 8.507059e+37 }
0x119f   : > { %v4841_v10 = vpop.eup %4840 }
0x11a0   : > { %v3548_v12 = vmul.f32 %v4841_v10, %v3546_v58  ;;  %vm3553_vm6 = vweird.f32 %v4841_v10 }
0x11a1   : > { %vm3554_vm8 = vmor %vm3552_vm7, %vm3553_vm6 }
0x11a2   : > { %v3549_v3 = vsub.f32 1.0, %v3548_v12 }
0x11a4   : > { %v3550_v11 = vmul.f32 %v4841_v10, %v3549_v3 }
0x11a6   : > { %v3551_v7 = vadd.f32 %v4841_v10, %v3550_v11 }
0x11a8   : > { %v3555_v60 = vsel %vm3554_vm8, %v4841_v10, %v3551_v7 }
0x11a9   : > { %v3560_v46 = vsel %vm3557_vm10, %v3559_v50, %v3555_v60 }
0x11aa   : > { %v3570_v54 = vmul.f32 %v4839_v22, %v3560_v46  ;;  %v3589_v13 = vmul.f32 %v4837_v18, %v3560_v46  ;;  %v2623_v46 = vld [vmem:[%s7028_s8 + $0x8] sm:$0xff] }
0x11ac   : > { %v3577_v0 = vmul.f32 %v4516_v62, %v3570_v54  ;;  %v3578_v32 = vmul.f32 %v4517_v45, %v3570_v54 }
0x1201   : > { %v3539_v1 = vpop.xlane.xlu2 %3538 }
0x1202   : > { %v3581_v36 = vadd.f32 %v3539_v1, %v6323_v27  ;;  %v3582_v35 = vadd.f32 %v3539_v1, %v6326_v5  ;;  %v2624_v1 = vld [vmem:[%s7028_s8 + $0x10] sm:$0xff] }
0x1203   : > { %3822 = vmatpush.msrb.mxu1 %v2624_v1 }
0x1204   : > { %vm3583_vm11 = vcmp.ge.f32.partialorder %v3581_v36, 16.0  ;;  %vm3584_vm12 = vcmp.ge.f32.partialorder %v3582_v35, 16.0  ;;  %v4518_v29 = vadd.f32 -16.0, %v3581_v36  ;;  %v4519_v28 = vadd.f32 -16.0, %v3582_v35 }
0x1205   : > { %3823 = vmatpush.msrb.mxu1 %v2623_v46  ;;  %v2633_v46 = vld [vmem:[#allocation28 + $0x38] sm:$0xff] }
0x1206   : > { %v3587_v55 = vsel %vm3583_vm11, %v4518_v29, %v3581_v36  ;;  %v3588_v51 = vsel %vm3584_vm12, %v4519_v28, %v3582_v35  ;;  %v2622_v28 = vld [vmem:[%s7028_s8] sm:$0xff]  ;;  %3904 = vmatpush.msrb.mxu0 %v2633_v46  ;;  %v4064_v46 = vld [vmem:[%s5725_s20 + $0x8] sm:$0xff] }
0x1207   : > { %vm3590_vm15 = vcmp.eq.f32.partialorder %v6213_v17, %v3587_v55  ;;  %vm3591_vm1 = vcmp.eq.f32.partialorder %v6213_v17, %v3588_v51  ;;  %3824 = vmatpush.msrb.mxu1 %v2622_v28 }
0x1208   : > { %v4520_v27 = vsel %vm3590_vm15, 1.0, %v6994_v33  ;;  %v4521_v21 = vsel %vm3591_vm1, 1.0, %v6994_v33 }
0x1209   : > { %v3596_v63 = vmul.f32 %v4520_v27, %v3589_v13  ;;  %v3597_v9 = vmul.f32 %v4521_v21, %v3589_v13 }
0x120b   : > { %v3598_v39 = vadd.f32 %v3596_v63, %v3577_v0  ;;  %v3599_v53 = vadd.f32 %v3597_v9, %v3578_v32 }
0x120d   : > { %4522 = vmatmul.msk.f32.vlgmr.msra.gmra.mxu1 %vm1409_vm0, %v3598_v39 }
0x1215   : > { %4523 = vmatmul.msk.f32.gmra.mxu1 %vm1409_vm0, %v3599_v53 }
0x128a   : > { %v3629_v20 = vpop.f32.mrf.mxu1 }
0x128b   : > { %4524 = vmatmul.msk.f32.vlgmr.msrb.gmra.mxu2 %vm1842_vm3, %v3629_v20 }
0x1292   : > { %v3632_v19 = vpop.f32.mrf.mxu1 }
0x1293   : > { %4525 = vmatmul.msk.f32.gmra.mxu2 %vm1842_vm3, %v3632_v19 }
0x130e   : > { %v3661_v17 = vpop.f32.mrf.mxu2 }
0x130f   : > { %v3662_v48 = vadd.f32 %v4804_v61, %v3661_v17 }
0x1311   : > { %v3667_v31 = vadd.f32 %v3662_v48, %v7025_v6 }
0x1316   : > { %v3664_v30 = vpop.f32.mrf.mxu2 }
0x1317   : > { %v3665_v41 = vadd.f32 %v4804_v61, %v3664_v30 }
0x1319   : > { %v3668_v24 = vadd.f32 %v3665_v41, %v7024_v44 }
0x131b   : > { %3683 = vmatpush.msrb.mxu3 %v3668_v24 }
0x131d   : > { %3684 = vmatpush.msrb.mxu3 %v3667_v31 }
0x131e   : > { %4526 = vmatmul.msk.f32.vlgmr.msrb.gmra.mxu3 %vm1409_vm0, %v7026_v59 }
0x1326   : > { %4527 = vmatmul.msk.f32.gmra.mxu3 %vm1409_vm0, %v7027_v26 }
0x13a1   : > { %v6805_v42 = vpop.f32.mrf.mxu3 }
0x13a2   : > { %v6808_v2 = vsub.f32 %v3667_v31, %v6805_v42 }
0x13a4   : > { %4528 = vmatmul.msk.f32.vlgmr.msra.gmra.mxu0 %vm1842_vm3, %v6808_v2 }
0x13a9   : > { %v6812_v40 = vpop.f32.mrf.mxu3 }
0x13aa   : > { %v6815_v18 = vsub.f32 %v3668_v24, %v6812_v40 }
0x13ac   : > { %4529 = vmatmul.msk.f32.gmra.mxu0 %vm1842_vm3, %v6815_v18 }
0x1421   : > { %v6819_v22 = vpop.f32.mrf.mxu0 }
0x1422   : > { %v6822_v58 = vmul.f32 0.70710677, %v6819_v22 }
0x1424   : > { %v3727_v10 = vand.u32 2147483647, %v6822_v58  ;;  %vm3793_vm13 = vcmp.ge.f32.partialorder %v6822_v58, 0.0 }
0x1426   : > { %v3729_v12 = vmul.f32 0.3275911, %v3727_v10  ;;  %v3781_v52 = vsub.f32 0.0, %v3727_v10 }
0x1428   : > { %v3731_v3 = vadd.f32 1.0, %v3729_v12  ;;  %v3783_v0 = vmul.f32 %v3781_v52, %v3727_v10  ;;  %v2630_v52 = vld [vmem:[#allocation28 + $0x20] sm:$0xff] }
0x1429   : > { %v6825_v38 = vpop.f32.mrf.mxu0 }
0x142a   : > { %4842 = vrcp.f32 %v3731_v3  ;;  %v6828_v57 = vmul.f32 0.70710677, %v6825_v38  ;;  %v3744_v60 = vand.u32 2147483648, %v3731_v3  ;;  %v3742_v14 = vand.u32 2147483647, %v3731_v3 }
0x142b   : > { %vm3738_vm6 = vweird.f32 %v3731_v3  ;;  %v3785_v32 = vmul.f32 1.442695, %v3783_v0  ;;  %v3724_v1 = vmul.f32 0.5, %v6825_v38  ;;  %v4908_v38 = vld [vmem:[#allocation2 + $0x8] sm:$0xff] }
0x142c   : > { %v3728_v11 = vand.u32 2147483647, %v6828_v57  ;;  %v3745_v36 = vor.u32 1.1754944e-38, %v3744_v60  ;;  %vm3743_vm8 = vcmp.eq.f32.partialorder %v3742_v14, 8.507059e+37  ;;  %vm3794_vm14 = vcmp.ge.f32.partialorder %v6828_v57, 0.0  ;;  %v4907_v57 = vld [vmem:[#allocation2] sm:$0xff] }
0x142e   : > { %v3730_v34 = vmul.f32 0.3275911, %v3728_v11  ;;  %v3782_v19 = vsub.f32 0.0, %v3728_v11 }
0x1430   : > { %v4843_v25 = vpop.eup %4842  ;;  %v3732_v15 = vadd.f32 1.0, %v3730_v34  ;;  %v3784_v30 = vmul.f32 %v3782_v19, %v3728_v11  ;;  %v2627_v19 = vld [vmem:[#allocation28 + $0x8] sm:$0xff] }
0x1431   : > { %v3734_v7 = vmul.f32 %v4843_v25, %v3731_v3  ;;  %vm3739_vm5 = vweird.f32 %v4843_v25 }
0x1432   : > { %4844 = vrcp.f32 %v3732_v15  ;;  %vm3740_vm7 = vmor %vm3738_vm6, %vm3739_vm5  ;;  %v3759_v27 = vand.u32 2147483648, %v3732_v15  ;;  %v3757_v47 = vand.u32 2147483647, %v3732_v15  ;;  %vm3753_vm10 = vweird.f32 %v3732_v15 }
0x1433   : > { %v3735_v56 = vsub.f32 1.0, %v3734_v7  ;;  %4846 = vpow2.f32 %v3785_v32  ;;  %v3787_v6 = vmul.f32 1.442695, %v3784_v30  ;;  %v2629_v32 = vld [vmem:[#allocation28 + $0x18] sm:$0xff]  ;;  %v7031_v30 = vld [vmem:[#allocation80_spill] sm:$0xff] }
0x1434   : > { %v3760_v45 = vor.u32 1.1754944e-38, %v3759_v27  ;;  %vm3758_vm12 = vcmp.eq.f32.partialorder %v3757_v47, 8.507059e+37  ;;  %v7030_v27 = vld [vmem:[#allocation86_spill] sm:$0xff]  ;;  %3932 = vmatpush.msra.mxu1 %v2629_v32 }
0x1435   : > { %v3736_v50 = vmul.f32 %v4843_v25, %v3735_v56  ;;  %4848 = vpow2.f32 %v3787_v6  ;;  %v3860_v0 = vadd.f32 %v6812_v40, %v7030_v27  ;;  %v4912_v40 = vld [vmem:[#allocation6 + $0x8] sm:$0xff] }
0x1437   : > { %v3737_v4 = vadd.f32 %v4843_v25, %v3736_v50 }
0x1438   : > { %v4845_v35 = vpop.eup %4844 }
0x1439   : > { %v3741_v29 = vsel %vm3740_vm7, %v4843_v25, %v3737_v4  ;;  %v3749_v55 = vmul.f32 %v4845_v35, %v3732_v15  ;;  %vm3754_vm9 = vweird.f32 %v4845_v35  ;;  %v4847_v31 = vpop.eup %4846  ;;  %v3723_v25 = vmul.f32 0.5, %v6819_v22  ;;  %v2632_v22 = vld [vmem:[#allocation28 + $0x30] sm:$0xff] }
0x143a   : > { %v3746_v54 = vsel %vm3743_vm8, %v3745_v36, %v3741_v29  ;;  %vm3755_vm11 = vmor %vm3753_vm10, %vm3754_vm9  ;;  %3905 = vmatpush.msrb.mxu0 %v2632_v22  ;;  %vm1459_vm7 = vcmp.ge.f32.partialorder %v6326_v5, 8.0 }
0x143b   : > { %v3763_v51 = vmul.f32 1.0614054, %v3746_v54  ;;  %v3750_v13 = vsub.f32 1.0, %v3749_v55  ;;  %v4849_v15 = vpop.eup %4848  ;;  %v7029_v55 = vld [vmem:[#allocation84_spill] sm:$0xff] }
0x143d   : > { %v3765_v62 = vadd.f32 -1.4531521, %v3763_v51  ;;  %v3751_v63 = vmul.f32 %v4845_v35, %v3750_v13  ;;  %v3859_v51 = vadd.f32 %v6805_v42, %v7029_v55  ;;  %v4909_v42 = vld [vmem:[#allocation4] sm:$0xff] }
0x143f   : > { %v3767_v39 = vmul.f32 %v3765_v62, %v3746_v54  ;;  %v3752_v21 = vadd.f32 %v4845_v35, %v3751_v63 }
0x1441   : > { %v3769_v9 = vadd.f32 1.4214138, %v3767_v39  ;;  %v3756_v53 = vsel %vm3755_vm11, %v4845_v35, %v3752_v21 }
0x1442   : > { %v3761_v20 = vsel %vm3758_vm12, %v3760_v45, %v3756_v53  ;;  %v4911_v45 = vld [vmem:[#allocation4 + $0x8] sm:$0xff]  ;;  %v2637_v53 = vld [vmem:[#allocation28 + $0x58] sm:$0xff] }
0x1443   : > { %v3771_v8 = vmul.f32 %v3769_v9, %v3746_v54  ;;  %v3764_v16 = vmul.f32 1.0614054, %v3761_v20  ;;  %v4910_v9 = vld [vmem:[#allocation6] sm:$0xff] }
0x1445   : > { %v3773_v37 = vadd.f32 -0.28449672, %v3771_v8  ;;  %v3766_v17 = vadd.f32 -1.4531521, %v3764_v16  ;;  %v2628_v8 = vld [vmem:[#allocation28 + $0x10] sm:$0xff]  ;;  %v2635_v16 = vld [vmem:[#allocation28 + $0x48] sm:$0xff] }
0x1446   : > { %3933 = vmatpush.msra.mxu1 %v2628_v8 }
0x1447   : > { %v3775_v61 = vmul.f32 %v3773_v37, %v3746_v54  ;;  %v3768_v48 = vmul.f32 %v3766_v17, %v3761_v20  ;;  %v2626_v37 = vld [vmem:[#allocation28] sm:$0xff] }
0x1448   : > { %3934 = vmatpush.msra.mxu1 %v2627_v19  ;;  %v2634_v17 = vld [vmem:[#allocation28 + $0x40] sm:$0xff] }
0x1449   : > { %v3777_v41 = vadd.f32 0.2548296, %v3775_v61  ;;  %v3770_v44 = vadd.f32 1.4214138, %v3768_v48 }
0x144a   : > { %3935 = vmatpush.msra.mxu1 %v2626_v37 }
0x144b   : > { %v3779_v24 = vmul.f32 %v3777_v41, %v3746_v54  ;;  %v3772_v59 = vmul.f32 %v3770_v44, %v3761_v20  ;;  %v2631_v54 = vld [vmem:[#allocation28 + $0x28] sm:$0xff] }
0x144c   : > { %3906 = vmatpush.msrb.mxu0 %v2631_v54 }
0x144d   : > { %v3789_v26 = vmul.f32 %v4847_v31, %v3779_v24  ;;  %v3774_v23 = vadd.f32 -0.28449672, %v3772_v59 }
0x144e   : > { %3907 = vmatpush.msrb.mxu0 %v2630_v52  ;;  %v4805_v52 = vld [vmem:[%s7032_s11] ss:$0 sm:$0xff] }
0x144f   : > { %v3791_v43 = vsub.f32 1.0, %v3789_v26  ;;  %v3776_v10 = vmul.f32 %v3774_v23, %v3761_v20 }
0x1451   : > { %v3795_v12 = vsub.f32 0.0, %v3791_v43  ;;  %v3778_v3 = vadd.f32 0.2548296, %v3776_v10 }
0x1453   : > { %v3797_v34 = vsel %vm3793_vm13, %v3791_v43, %v3795_v12  ;;  %v3780_v7 = vmul.f32 %v3778_v3, %v3761_v20  ;;  %v2636_v20 = vld [vmem:[#allocation28 + $0x50] sm:$0xff] }
0x1454   : > { %v3799_v11 = vadd.f32 1.0, %v3797_v34 }
0x1455   : > { %v3790_v49 = vmul.f32 %v4849_v15, %v3780_v7 }
0x1456   : > { %v3801_v56 = vmul.f32 %v3799_v11, %v3723_v25 }
0x1457   : > { %v3792_v60 = vsub.f32 1.0, %v3790_v49 }
0x1458   : > { %4530 = vmatmul.msk.f32.vlgmr.msrb.gmra.mxu1 %vm1842_vm3, %v3801_v56 }
0x1459   : > { %v3796_v50 = vsub.f32 0.0, %v3792_v60 }
0x145b   : > { %v3798_v14 = vsel %vm3794_vm14, %v3792_v60, %v3796_v50 }
0x145c   : > { %v3800_v4 = vadd.f32 1.0, %v3798_v14 }
0x145e   : > { %v3802_v58 = vmul.f32 %v3800_v4, %v3724_v1  ;;  %v4066_v1 = vld [vmem:[%s5725_s20 + $0x18] sm:$0xff]  ;;  %v4065_v4 = vld [vmem:[%s5725_s20 + $0x10] sm:$0xff] }
0x145f   : > { %4089 = vmatpush.msra.mxu0 %v4066_v1 }
0x1460   : > { %4531 = vmatmul.msk.f32.gmra.mxu1 %vm1842_vm3, %v3802_v58 }
0x1461   : > { %4090 = vmatpush.msra.mxu0 %v4065_v4 }
0x1463   : > { %4091 = vmatpush.msra.mxu0 %v4064_v46 }
0x14d5   : > { %v3826_v36 = vpop.f32.mrf.mxu1 }
0x14d6   : > { %v3832_v28 = vadd.f32 %v3826_v36, %v6808_v2 }
0x14dd   : > { %v3829_v35 = vpop.f32.mrf.mxu1 }
0x14de   : > { %v3833_v29 = vadd.f32 %v3829_v35, %v6815_v18  ;;  %v4063_v35 = vld [vmem:[%s5725_s20] sm:$0xff] }
0x14df   : > { %4092 = vmatpush.msra.mxu0 %v4063_v35 }
0x14e0   : > { %3848 = vmatpush.msra.mxu2 %v3833_v29 }
0x14e2   : > { %3849 = vmatpush.msra.mxu2 %v3832_v28 }
0x14e3   : > { %4532 = vmatmul.msk.f32.vlgmr.msra.gmra.mxu2 %vm1409_vm0, %v4907_v57 }
0x14eb   : > { %4533 = vmatmul.msk.f32.gmra.mxu2 %vm1409_vm0, %v4908_v38 }
0x1566   : > { %v3851_v13 = vpop.f32.mrf.mxu2 }
0x1567   : > { %v3857_v62 = vsub.f32 %v3832_v28, %v3851_v13  ;;  %v3861_v18 = vadd.f32 %v3859_v51, %v3851_v13 }
0x1569   : > { %4536 = vmatmul.msk.f32.vlgmr.msrb.gmra.mxu0 %vm1842_vm3, %v3861_v18  ;;  %v3997_v2 = vsel %vm1842_vm3, %v3857_v62, 0.0 }
0x156a   : > { %3998 = vadd.xlane.f32.xlu0 %v3997_v2 }
0x156e   : > { %v3854_v63 = vpop.f32.mrf.mxu2 }
0x156f   : > { %v3858_v47 = vsub.f32 %v3833_v29, %v3854_v63  ;;  %v3862_v39 = vadd.f32 %v3860_v0, %v3854_v63 }
0x1571   : > { %3877 = vmatpush.msra.mxu3 %v3862_v39  ;;  %4537 = vmatmul.msk.f32.gmra.mxu0 %vm1842_vm3, %v3862_v39  ;;  %v4000_v21 = vsel %vm1842_vm3, %v3858_v47, 0.0 }
0x1572   : > { %3956 = vmatpush.msrb.mxu2 %v3862_v39  ;;  %4001 = vadd.xlane.f32.xlu2 %v4000_v21 }
0x1573   : > { %3878 = vmatpush.msra.mxu3 %v3861_v18 }
0x1574   : > { %3957 = vmatpush.msrb.mxu2 %v3861_v18  ;;  %4534 = vmatmul.msk.f32.vlgmr.msra.gmra.mxu3 %vm1409_vm0, %v4909_v42 }
0x1575   : > { %4540 = vmatmul.msk.f32.vlgmr.msrb.gmra.mxu2 %vm1409_vm0, %v4910_v9  ;;  %3983 = vmatpush.msrb.mxu3 %v2637_v53 }
0x1577   : > { %3984 = vmatpush.msrb.mxu3 %v2636_v20 }
0x1579   : > { %3985 = vmatpush.msrb.mxu3 %v2635_v16  ;;  %v7033_v16 = vld [vmem:[#allocation81_spill] sm:$0xff] }
0x157b   : > { %3986 = vmatpush.msrb.mxu3 %v2634_v17 }
0x157c   : > { %4535 = vmatmul.msk.f32.gmra.mxu3 %vm1409_vm0, %v4911_v45 }
0x157d   : > { %4541 = vmatmul.msk.f32.gmra.mxu2 %vm1409_vm0, %v4912_v40 }
0x15dd   : > { %v3999_v61 = vpop.xlane.xlu0 %3998 }
0x15de   : > { %v4003_v48 = vmul.f32 %v3999_v61, %v7031_v30 }
0x15e0   : > { %v4005_v41 = vsub.f32 %v3857_v62, %v4003_v48  ;;  %v4806_v62 = vld [vmem:[%s5720_s14] ss:$0 sm:$0xff] }
0x15e2   : > { %v4007_v44 = vmul.f32 %v4005_v41, %v4005_v41 }
0x15e4   : > { %v4009_v24 = vsel %vm1842_vm3, %v4007_v44, 0.0 }
0x15e5   : > { %4010 = vadd.xlane.f32.xlu0 %v4009_v24  ;;  %v4002_v6 = vpop.xlane.xlu2 %4001 }
0x15e6   : > { %v4004_v31 = vmul.f32 %v4002_v6, %v7031_v30  ;;  %v3909_v59 = vpop.f32.mrf.mxu0 }
0x15e8   : > { %v4006_v26 = vsub.f32 %v3858_v47, %v4004_v31 }
0x15ea   : > { %v4008_v23 = vmul.f32 %v4006_v26, %v4006_v26 }
0x15ec   : > { %v4012_v43 = vsel %vm1842_vm3, %v4008_v23, 0.0 }
0x15ed   : > { %4013 = vadd.xlane.f32.xlu2 %v4012_v43 }
0x15ee   : > { %v3911_v43 = vpop.f32.mrf.mxu0 }
0x15f7   : > { %v3880_v10 = vpop.f32.mrf.mxu3 }
0x15f8   : > { %v3959_v12 = vpop.f32.mrf.mxu2  ;;  %4538 = vmatmul.msk.f32.vlgmr.msra.gmra.mxu1 %vm1842_vm3, %v3880_v10 }
0x15f9   : > { %4542 = vmatmul.msk.f32.vlgmr.msrb.gmra.mxu3 %vm1842_vm3, %v3959_v12 }
0x15ff   : > { %v3883_v3 = vpop.f32.mrf.mxu3 }
0x1600   : > { %v3962_v34 = vpop.f32.mrf.mxu2  ;;  %4539 = vmatmul.msk.f32.gmra.mxu1 %vm1842_vm3, %v3883_v3  ;;  %v4429_v3 = vsel %vm1459_vm7, 1.0, %v6994_v33 }
0x1601   : > { %4543 = vmatmul.msk.f32.gmra.mxu3 %vm1842_vm3, %v3962_v34 }
0x1658   : > { %v4011_v25 = vpop.xlane.xlu0 %4010 }
0x1659   : > { %v4015_v11 = vmul.f32 %v4011_v25, %v7031_v30 }
0x165b   : > { %v4017_v7 = vadd.f32 1e-05, %v4015_v11 }
0x165d   : > { %4850 = vrsqrt.f32 %v4017_v7  ;;  %vm4025_vm15 = vweird.f32 %v4017_v7 }
0x1660   : > { %v4014_v15 = vpop.xlane.xlu2 %4013 }
0x1661   : > { %v4016_v56 = vmul.f32 %v4014_v15, %v7031_v30  ;;  %v4913_v30 = vld [vmem:[%s6065_s22] sm:$0xff] }
0x1662   : > { %v1442_v48 = vsel %vm1441_vm2, %v4913_v30, 0.0 }
0x1663   : > { %v4851_v49 = vpop.eup %4850  ;;  %v4018_v60 = vadd.f32 1e-05, %v4016_v56 }
0x1664   : > { %v4020_v50 = vmul.f32 %v4851_v49, %v4017_v7  ;;  %vm4026_vm0 = vweird.f32 %v4851_v49 }
0x1665   : > { %4852 = vrsqrt.f32 %v4018_v60  ;;  %vm4027_vm1 = vmor %vm4025_vm15, %vm4026_vm0  ;;  %vm4035_vm5 = vweird.f32 %v4018_v60 }
0x1666   : > { %v4021_v14 = vmul.f32 %v4851_v49, %v4020_v50 }
0x1668   : > { %v4022_v58 = vmul.f32 0.5, %v4021_v14 }
0x166a   : > { %v4023_v22 = vsub.f32 1.5, %v4022_v58 }
0x166b   : > { %v4853_v36 = vpop.eup %4852 }
0x166c   : > { %v4024_v29 = vmul.f32 %v4851_v49, %v4023_v22  ;;  %v4030_v28 = vmul.f32 %v4853_v36, %v4018_v60  ;;  %vm4036_vm4 = vweird.f32 %v4853_v36  ;;  %v7034_v60 = vld [vmem:[#allocation64_spill] sm:$0xff] }
0x166d   : > { %vm4037_vm6 = vmor %vm4035_vm5, %vm4036_vm4 }
0x166e   : > { %v4028_v57 = vsel %vm4027_vm1, %v4851_v49, %v4024_v29  ;;  %v4031_v38 = vmul.f32 %v4853_v36, %v4030_v28  ;;  %v4807_v49 = vld [vmem:[%s5730_s12] ss:$0 sm:$0xff] }
0x166f   : > { %v4039_v55 = vmul.f32 %v4028_v57, %v4005_v41  ;;  %v4914_v41 = vld [vmem:[%s6065_s22 + $0x8] sm:$0xff]  ;;  %s5561_s22 = smov 125  }
0x1670   : > { %v4032_v54 = vmul.f32 0.5, %v4031_v38  ;;  %v1443_v44 = vsel %vm1441_vm2, %v4914_v41, 0.0  ;;  %vm4105_vm2 = vcmask 23552  }
0x1671   : > { %v4044_v18 = vmul.f32 %v4805_v52, %v4039_v55  ;;  %v1444_v24 = vadd.f32 %v1443_v44, %v1442_v48 }
0x1672   : > { %v4033_v51 = vsub.f32 1.5, %v4032_v54 }
0x1673   : > { %v4049_v63 = vadd.f32 %v4806_v62, %v4044_v18  ;;  %v1445_v6 = vrot.slane %v1444_v24, 4 }
0x1674   : > { %v4034_v13 = vmul.f32 %v4853_v36, %v4033_v51 }
0x1675   : > { %v3937_v2 = vpop.f32.mrf.mxu1  ;;  %v4051_v42 = vsel %vm1842_vm3, %v4049_v63, 0.0  ;;  %v1446_v31 = vadd.f32 %v1445_v6, %v1444_v24 }
0x1676   : > { %v4038_v27 = vsel %vm4037_vm6, %v4853_v36, %v4034_v13 }
0x1677   : > { %v4040_v0 = vmul.f32 %v4038_v27, %v4006_v26  ;;  %v1447_v59 = vrot.slane %v1446_v31, 2 }
0x1679   : > { %v4045_v47 = vmul.f32 %v4805_v52, %v4040_v0  ;;  %v1448_v26 = vadd.f32 %v1447_v59, %v1446_v31 }
0x167b   : > { %v4050_v39 = vadd.f32 %v4806_v62, %v4045_v47  ;;  %v1449_v23 = vrot.slane %v1448_v26, 1 }
0x167c   : > { %v3988_v21 = vpop.f32.mrf.mxu3 }
0x167d   : > { %v4052_v9 = vsel %vm1842_vm3, %v4050_v39, 0.0  ;;  %v1450_v10 = vadd.f32 %v1449_v23, %v1448_v26  ;;  %v3939_v34 = vpop.f32.mrf.mxu1 }
0x167e   : > { %v4053_v45 = vadd.f32 %v4052_v9, %v4051_v42  ;;  %v3940_v15 = vadd.f32 %v3939_v34, %v3911_v43 }
0x167f   : > { %v1458_v12 = vmul.f32 %v7033_v16, %v1450_v10 }
0x1680   : > { %v4054_v40 = vrot.slane %v4053_v45, 4 }
0x1681   : > { %v1462_v7 = vmul.f32 %v4429_v3, %v1458_v12 }
0x1682   : > { %v4055_v32 = vadd.f32 %v4054_v40, %v4053_v45 }
0x1683   : > { %v1489_v50 = vadd.f32 %v7034_v60, %v1462_v7 }
0x1684   : > { %v4056_v53 = vrot.slane %v4055_v32, 2  ;;  %v3990_v11 = vpop.f32.mrf.mxu3 }
0x1685   : > { %v3993_v56 = vadd.f32 %v3990_v11, %v3940_v15 }
0x1686   : > { %v4057_v8 = vadd.f32 %v4056_v53, %v4055_v32 }
0x1687   : > { %v3994_v1 = vadd.f32 %v3993_v56, %v1489_v50 }
0x1688   : > { %v4058_v20 = vrot.slane %v4057_v8, 1 }
0x168a   : > { %v4059_v19 = vadd.f32 %v4058_v20, %v4057_v8 }
0x168c   : > { %v4060_v37 = vmul.f32 %v4059_v19, %v7033_v16 }
0x168e   : > { %v4061_v17 = vsub.f32 %v4049_v63, %v4060_v37  ;;  %v4062_v61 = vsub.f32 %v4050_v39, %v4060_v37 }
0x1690   : > { %4544 = vmatmul.msk.f32.vlgmr.msra.gmra.mxu0 %vm1842_vm3, %v4061_v17 }
0x1698   : > { %4545 = vmatmul.msk.f32.gmra.mxu0 %vm1842_vm3, %v4062_v61 }
0x170d   : > { %v4094_v25 = vpop.f32.mrf.mxu0 }
0x1715   : > { %v4096_v14 = vpop.f32.mrf.mxu0 }
0x1716   : > { %v4097_v4 = vadd.f32 %v4807_v49, %v4096_v14 }
0x1718   : > { %v4099_v58 = vadd.f32 %v4097_v4, %v3994_v1 }
0x171a   : > { %4101 = vrot.lane.b32.xlu0 %v4099_v58, %s5561_s22 }
0x178c   : > { %v4102_v5 = vpop.permute.xlu0 %4101 }
0x178d   : > { %v4104_v33 = vadd.f32 %v4102_v5, %v4099_v58 }
0x178f   : > { %4106 = vst.msk [vmem:[%s1310_s16] sm:$0xff] %vm4105_vm2, %v4104_v33 }
0x1790 PF: > { %s7035_s23 = sld [smem:[#allocation62_spill]] }
0x1796   : > { %s87_s7 = sadd.s32 1, %s7035_s23  }
0x1797   : > { %p84_p2 = scmp.ge.s32.totalorder %s87_s7, 4  }
0x1799   :  { %86 = sbr.rel (!%p84_p2) target bundleno = 69 (0x45), region = 288 }
0x179e   :  { %4126 = vsyncpa [#allocation3], 1 }
0x179f   :  { %4128 = vsyncpa [#allocation3 + $0x1], 1 }
0x17a0   :  { %4129 = vsyncpa [#allocation5], 1 }
0x17a1   :  { %4130 = vsyncpa [#allocation8], 1 }
0x17a2   :  { %4131 = vsyncpa [#allocation11], 1 }
0x17a3   :  { %4132 = vsyncpa [#allocation14], 1 }
0x17a4   :  { %4133 = vsyncpa [#allocation17], 1 }
0x17a5   :  { %4134 = vsyncpa [#allocation20], 1 }
0x17a6   :  { %4135 = vsyncpa [#allocation23], 1 }
0x17a7   :  { %4136 = vsyncpa [#allocation26], 1 }
0x17a8   :  { %4137 = vsyncpa [#allocation29], 1 }

</bundles_post_ra>
